<compile_context>
chip_gen: v5e
topology: v5e:2x2
jax: 0.10.0
libtpu: 0.0.40
codegen_flags: <defaults>
</compile_context>

<pallas_src>
import functools

import jax
import jax.numpy as jnp
from jax.experimental import pallas as pl
from jax.experimental.pallas import tpu as pltpu

# Synthetic problem sizes (nb_movies is data-dependent in the original script;
# pick deterministic, deliberately non-128-aligned values to exercise padding).
NB_MOVIES = 300
HIDDEN1 = 20
HIDDEN2 = 10
BATCH = 500

LANE = 128          # TPU lane width; hidden dims and nb_movies pad to it
MAX_TILE_B = 1024   # per-grid-step batch-tile ceiling (review: 512-1024)


def _cdiv(a, b):
    return -(-a // b)


def _round_up(x, m):
    return _cdiv(x, m) * m


def _choose_tiling(batch, max_tile_b):
    """Pick (tile_b, n_steps) so n_steps is even (>=2) for v7x megacore when
    the batch is big enough to split, and tile_b is as fat as possible."""
    if batch <= 32:
        n_steps = 1
    else:
        n_steps = max(2, 2 * _cdiv(batch, 2 * max_tile_b))
    tile_b = _round_up(_cdiv(batch, n_steps), 16)   # 16: bf16 sublane packing
    return tile_b, n_steps


def sae_kernel(x_ref, w1_ref, w23_ref, b123_ref, w4_ref, b4_ref, out_ref):
    """One batch tile of the SAE forward. All operands already in VMEM.

    x_ref:    (TILE_B, M_pad) bf16
    w1_ref:   (M_pad, 128)    bf16
    w23_ref:  (2, 128, 128)   bf16   (stacked fc2 / fc3 weights)
    b123_ref: (3, 128)        f32    (stacked fc1 / fc2 / fc3 biases)
    w4_ref:   (128, M_pad)    bf16
    b4_ref:   (1, M_pad)      f32
    out_ref:  (TILE_B, M_pad) f32 or bf16
    """

    def linear(h_bf16, w, b):
        # bf16 MXU matmul, f32 accumulation, f32 bias add.
        return jnp.dot(h_bf16, w, preferred_element_type=jnp.float32) + b

    x = x_ref[...]                                                     # bf16
    h = jax.nn.sigmoid(linear(x, w1_ref[...], b123_ref[0:1, :]))       # f32 (TILE_B,128)
    h = jax.nn.sigmoid(linear(h.astype(jnp.bfloat16), w23_ref[0], b123_ref[1:2, :]))
    h = jax.nn.sigmoid(linear(h.astype(jnp.bfloat16), w23_ref[1], b123_ref[2:3, :]))
    y = linear(h.astype(jnp.bfloat16), w4_ref[...], b4_ref[...])       # (TILE_B, M_pad)

    out_ref[...] = y.astype(out_ref.dtype)


def _pack_params(params, m_pad, h_pad):
    """Zero-pad to lane-dense shapes, cast weights to bf16, and pack the small
    operands (w2/w3, b1/b2/b3) to cut the per-call DMA descriptor count."""
    def pad2(a, rows, cols):
        return jnp.pad(a, ((0, rows - a.shape[0]), (0, cols - a.shape[1])))

    w1 = pad2(params["w1"], m_pad, h_pad).astype(jnp.bfloat16)
    w23 = jnp.stack([pad2(params["w2"], h_pad, h_pad),
                     pad2(params["w3"], h_pad, h_pad)]).astype(jnp.bfloat16)
    b123 = jnp.concatenate([pad2(params["b1"], 1, h_pad),
                            pad2(params["b2"], 1, h_pad),
                            pad2(params["b3"], 1, h_pad)],
                           axis=0).astype(jnp.float32)
    w4 = pad2(params["w4"], h_pad, m_pad).astype(jnp.bfloat16)
    b4 = pad2(params["b4"], 1, m_pad).astype(jnp.float32)
    return w1, w23, b123, w4, b4


@functools.partial(jax.jit, static_argnames=("out_dtype", "max_tile_b"))
def sae_forward(x, params, out_dtype=jnp.float32, max_tile_b=MAX_TILE_B):
    """x: (batch, nb_movies) float32; params: dict of unpadded weights/biases.

    Returns the PADDED output (b_pad, m_pad); rows [:batch] and columns
    [:nb_movies] hold the real result.  Returning the padded slab avoids an
    extra full-array HBM slice pass -- slice (or fuse) on the consumer side.
    """
    batch, nb_movies = x.shape
    m_pad = _round_up(nb_movies, LANE)
    h_pad = LANE

    tile_b, n_steps = _choose_tiling(batch, max_tile_b)
    b_pad = tile_b * n_steps

    # Single fused XLA pass: pad rows/cols and cast to bf16 (MXU operand).
    xp = jnp.pad(x, ((0, b_pad - batch), (0, m_pad - nb_movies))).astype(jnp.bfloat16)
    w1, w23, b123, w4, b4 = _pack_params(params, m_pad, h_pad)

    def const_spec(shape):
        # Same block every grid step -> stays resident in VMEM across tiles.
        zeros = (0,) * len(shape)
        return pl.BlockSpec(shape, lambda i: zeros)

    out_padded = pl.pallas_call(
        sae_kernel,
        out_shape=jax.ShapeDtypeStruct((b_pad, m_pad), out_dtype),
        grid=(n_steps,),
        in_specs=[
            pl.BlockSpec((tile_b, m_pad), lambda i: (i, 0)),   # x batch tile
            const_spec((m_pad, h_pad)),                         # w1
            const_spec((2, h_pad, h_pad)),                      # w2, w3 stacked
            const_spec((3, h_pad)),                             # b1, b2, b3 stacked
            const_spec((h_pad, m_pad)),                         # w4
            const_spec((1, m_pad)),                             # b4
        ],
        out_specs=pl.BlockSpec((tile_b, m_pad), lambda i: (i, 0)),
        compiler_params=pltpu.CompilerParams(
            dimension_semantics=("parallel",)),  # v7x: batch tiles split over 2 TCs
    )(xp, w1, w23, b123, w4, b4)

    return out_padded


def init_params(key, nb_movies=NB_MOVIES, h1=HIDDEN1, h2=HIDDEN2):
    """Deterministic init mimicking nn.Linear's U(-1/sqrt(in), 1/sqrt(in)).
    Weights stored as (in_features, out_features)."""
    def linear_init(k, fan_in, fan_out):
        kw, kb = jax.random.split(k)
        bound = 1.0 / jnp.sqrt(fan_in)
        w = jax.random.uniform(kw, (fan_in, fan_out), jnp.float32,
                               minval=-bound, maxval=bound)
        b = jax.random.uniform(kb, (1, fan_out), jnp.float32,
                               minval=-bound, maxval=bound)
        return w, b

    k1, k2, k3, k4 = jax.random.split(key, 4)
    w1, b1 = linear_init(k1, nb_movies, h1)
    w2, b2 = linear_init(k2, h1, h2)
    w3, b3 = linear_init(k3, h2, h1)
    w4, b4 = linear_init(k4, h1, nb_movies)
    return {"w1": w1, "b1": b1, "w2": w2, "b2": b2,
            "w3": w3, "b3": b3, "w4": w4, "b4": b4}


def sae_reference(x, p):
    """Pure-JAX reference using the same bf16-operand / f32-accumulate math."""
    def lin(h, w, b):
        return jnp.dot(h.astype(jnp.bfloat16), w.astype(jnp.bfloat16),
                       preferred_element_type=jnp.float32) + b

    h = jax.nn.sigmoid(lin(x, p["w1"], p["b1"]))
    h = jax.nn.sigmoid(lin(h, p["w2"], p["b2"]))
    h = jax.nn.sigmoid(lin(h, p["w3"], p["b3"]))
    return lin(h, p["w4"], p["b4"])


if __name__ == "__main__":
    key = jax.random.PRNGKey(0)
    kx, kp = jax.random.split(key)

    # Synthetic ratings matrix (users x movies); deliberately non-128-aligned.
    x = jax.random.uniform(kx, (BATCH, NB_MOVIES), jnp.float32,
                           minval=0.0, maxval=5.0)
    params = init_params(kp)

    ref = sae_reference(x, params)

    # Default f32-output path (tight check).
    out_padded = jax.block_until_ready(sae_forward(x, params))
    out = out_padded[:BATCH, :NB_MOVIES]   # unpad only for validation
    assert out.shape == (BATCH, NB_MOVIES)
    assert jnp.allclose(out, ref, atol=2e-3, rtol=2e-3), "mismatch vs reference (f32 out)"

    # Optional bf16-output path (halves output HBM traffic); looser tolerance.
    out_bf16_padded = jax.block_until_ready(
        sae_forward(x, params, out_dtype=jnp.bfloat16))
    out_bf16 = out_bf16_padded[:BATCH, :NB_MOVIES].astype(jnp.float32)
    assert jnp.allclose(out_bf16, ref, atol=2e-2, rtol=2e-2), "mismatch vs reference (bf16 out)"

    print("KERNEL_OK")
</pallas_src>

<mosaic_0001>
module attributes {stable_mosaic.version = 11 : i64} {
  func.func @sae_kernel(%arg0: i32, %arg1: memref<256x384xbf16, #tpu.memory_space<vmem>>, %arg2: memref<384x128xbf16, #tpu.memory_space<vmem>>, %arg3: memref<2x128x128xbf16, #tpu.memory_space<vmem>>, %arg4: memref<3x128xf32, #tpu.memory_space<vmem>>, %arg5: memref<128x384xbf16, #tpu.memory_space<vmem>>, %arg6: memref<1x384xf32, #tpu.memory_space<vmem>>, %arg7: memref<256x384xf32, #tpu.memory_space<vmem>>) attributes {dimension_semantics = [#tpu.dimension_semantics<parallel>], iteration_bounds = array<i64: 2>, scalar_prefetch = 0 : i64, scratch_operands = 0 : i64, tpu.core_type = #tpu.core_type<tc>, window_params = [{transform_indices = @transform_0, window_bounds = array<i64: 256, 384>}, {pipeline_mode = #tpu.pipeline_mode<synchronous>, transform_indices = @transform_1, window_bounds = array<i64: 384, 128>}, {pipeline_mode = #tpu.pipeline_mode<synchronous>, transform_indices = @transform_2, window_bounds = array<i64: 2, 128, 128>}, {pipeline_mode = #tpu.pipeline_mode<synchronous>, transform_indices = @transform_3, window_bounds = array<i64: 3, 128>}, {pipeline_mode = #tpu.pipeline_mode<synchronous>, transform_indices = @transform_4, window_bounds = array<i64: 128, 384>}, {pipeline_mode = #tpu.pipeline_mode<synchronous>, transform_indices = @transform_5, window_bounds = array<i64: 1, 384>}, {transform_indices = @transform_6, window_bounds = array<i64: 256, 384>}]} {
    %c0 = arith.constant 0 : index
    %c0_0 = arith.constant 0 : index
    %0 = vector.load %arg1[%c0, %c0_0] : memref<256x384xbf16, #tpu.memory_space<vmem>>, vector<256x384xbf16>
    %c0_1 = arith.constant 0 : index
    %c0_2 = arith.constant 0 : index
    %1 = vector.load %arg2[%c0_1, %c0_2] : memref<384x128xbf16, #tpu.memory_space<vmem>>, vector<384x128xbf16>
    %c0_3 = arith.constant 0 : index
    %c0_4 = arith.constant 0 : index
    %2 = vector.load %arg4[%c0_3, %c0_4] : memref<3x128xf32, #tpu.memory_space<vmem>>, vector<1x128xf32>
    %cst = arith.constant dense<0.000000e+00> : vector<256x128xf32>
    %3 = tpu.matmul %0, %1, %cst {dimension_numbers = #tpu.dot_dimension_numbers<[1], [0], [0], [1], [0, 0, 1, 1], [], []>} : vector<256x384xbf16>, vector<384x128xbf16>, vector<256x128xf32> -> vector<256x128xf32>
    %4 = vector.broadcast %2 : vector<1x128xf32> to vector<256x128xf32>
    %5 = arith.addf %3, %4 : vector<256x128xf32>
    %6 = arith.negf %5 : vector<256x128xf32>
    %7 = math.exp %6 : vector<256x128xf32>
    %cst_5 = arith.constant 1.000000e+00 : f32
    %8 = vector.broadcast %cst_5 : f32 to vector<256x128xf32>
    %9 = arith.addf %8, %7 : vector<256x128xf32>
    %10 = arith.divf %8, %9 : vector<256x128xf32>
    %11 = arith.truncf %10 : vector<256x128xf32> to vector<256x128xbf16>
    %c0_6 = arith.constant 0 : index
    %c0_7 = arith.constant 0 : index
    %c0_8 = arith.constant 0 : index
    %12 = vector.load %arg3[%c0_6, %c0_7, %c0_8] : memref<2x128x128xbf16, #tpu.memory_space<vmem>>, vector<1x128x128xbf16>
    %13 = vector.shape_cast %12 : vector<1x128x128xbf16> to vector<128x128xbf16>
    %c1 = arith.constant 1 : index
    %c0_9 = arith.constant 0 : index
    %14 = vector.load %arg4[%c1, %c0_9] : memref<3x128xf32, #tpu.memory_space<vmem>>, vector<1x128xf32>
    %cst_10 = arith.constant dense<0.000000e+00> : vector<256x128xf32>
    %15 = tpu.matmul %11, %13, %cst_10 {dimension_numbers = #tpu.dot_dimension_numbers<[1], [0], [0], [1], [0, 0, 1, 1], [], []>} : vector<256x128xbf16>, vector<128x128xbf16>, vector<256x128xf32> -> vector<256x128xf32>
    %16 = vector.broadcast %14 : vector<1x128xf32> to vector<256x128xf32>
    %17 = arith.addf %15, %16 : vector<256x128xf32>
    %18 = arith.negf %17 : vector<256x128xf32>
    %19 = math.exp %18 : vector<256x128xf32>
    %cst_11 = arith.constant 1.000000e+00 : f32
    %20 = vector.broadcast %cst_11 : f32 to vector<256x128xf32>
    %21 = arith.addf %20, %19 : vector<256x128xf32>
    %22 = arith.divf %20, %21 : vector<256x128xf32>
    %23 = arith.truncf %22 : vector<256x128xf32> to vector<256x128xbf16>
    %c1_12 = arith.constant 1 : index
    %c0_13 = arith.constant 0 : index
    %c0_14 = arith.constant 0 : index
    %24 = vector.load %arg3[%c1_12, %c0_13, %c0_14] : memref<2x128x128xbf16, #tpu.memory_space<vmem>>, vector<1x128x128xbf16>
    %25 = vector.shape_cast %24 : vector<1x128x128xbf16> to vector<128x128xbf16>
    %c2 = arith.constant 2 : index
    %c0_15 = arith.constant 0 : index
    %26 = vector.load %arg4[%c2, %c0_15] : memref<3x128xf32, #tpu.memory_space<vmem>>, vector<1x128xf32>
    %cst_16 = arith.constant dense<0.000000e+00> : vector<256x128xf32>
    %27 = tpu.matmul %23, %25, %cst_16 {dimension_numbers = #tpu.dot_dimension_numbers<[1], [0], [0], [1], [0, 0, 1, 1], [], []>} : vector<256x128xbf16>, vector<128x128xbf16>, vector<256x128xf32> -> vector<256x128xf32>
    %28 = vector.broadcast %26 : vector<1x128xf32> to vector<256x128xf32>
    %29 = arith.addf %27, %28 : vector<256x128xf32>
    %30 = arith.negf %29 : vector<256x128xf32>
    %31 = math.exp %30 : vector<256x128xf32>
    %cst_17 = arith.constant 1.000000e+00 : f32
    %32 = vector.broadcast %cst_17 : f32 to vector<256x128xf32>
    %33 = arith.addf %32, %31 : vector<256x128xf32>
    %34 = arith.divf %32, %33 : vector<256x128xf32>
    %35 = arith.truncf %34 : vector<256x128xf32> to vector<256x128xbf16>
    %c0_18 = arith.constant 0 : index
    %c0_19 = arith.constant 0 : index
    %36 = vector.load %arg5[%c0_18, %c0_19] : memref<128x384xbf16, #tpu.memory_space<vmem>>, vector<128x384xbf16>
    %c0_20 = arith.constant 0 : index
    %c0_21 = arith.constant 0 : index
    %37 = vector.load %arg6[%c0_20, %c0_21] : memref<1x384xf32, #tpu.memory_space<vmem>>, vector<1x384xf32>
    %cst_22 = arith.constant dense<0.000000e+00> : vector<256x384xf32>
    %38 = tpu.matmul %35, %36, %cst_22 {dimension_numbers = #tpu.dot_dimension_numbers<[1], [0], [0], [1], [0, 0, 1, 1], [], []>} : vector<256x128xbf16>, vector<128x384xbf16>, vector<256x384xf32> -> vector<256x384xf32>
    %39 = vector.broadcast %37 : vector<1x384xf32> to vector<256x384xf32>
    %40 = arith.addf %38, %39 : vector<256x384xf32>
    %c0_23 = arith.constant 0 : index
    %c0_24 = arith.constant 0 : index
    %41 = vector.load %arg7[%c0_23, %c0_24] : memref<256x384xf32, #tpu.memory_space<vmem>>, vector<256x384xf32>
    tpu.vector_store %arg7[%c0_23, %c0_24], %40 {strides = array<i32>} : memref<256x384xf32, #tpu.memory_space<vmem>>, vector<256x384xf32>,
    return
  }
  func.func @transform_0(%arg0: i32) -> (i32, i32) {
    %c0_i32 = arith.constant 0 : i32
    %c0_i32_0 = arith.constant 0 : i32
    return %arg0, %c0_i32 : i32, i32
  }
  func.func @transform_1(%arg0: i32) -> (i32, i32) {
    %c0_i32 = arith.constant 0 : i32
    %c0_i32_0 = arith.constant 0 : i32
    %c0_i32_1 = arith.constant 0 : i32
    return %c0_i32, %c0_i32_0 : i32, i32
  }
  func.func @transform_2(%arg0: i32) -> (i32, i32, i32) {
    %c0_i32 = arith.constant 0 : i32
    %c0_i32_0 = arith.constant 0 : i32
    %c0_i32_1 = arith.constant 0 : i32
    %c0_i32_2 = arith.constant 0 : i32
    return %c0_i32, %c0_i32_0, %c0_i32_1 : i32, i32, i32
  }
  func.func @transform_3(%arg0: i32) -> (i32, i32) {
    %c0_i32 = arith.constant 0 : i32
    %c0_i32_0 = arith.constant 0 : i32
    %c0_i32_1 = arith.constant 0 : i32
    return %c0_i32, %c0_i32_0 : i32, i32
  }
  func.func @transform_4(%arg0: i32) -> (i32, i32) {
    %c0_i32 = arith.constant 0 : i32
    %c0_i32_0 = arith.constant 0 : i32
    %c0_i32_1 = arith.constant 0 : i32
    return %c0_i32, %c0_i32_0 : i32, i32
  }
  func.func @transform_5(%arg0: i32) -> (i32, i32) {
    %c0_i32 = arith.constant 0 : i32
    %c0_i32_0 = arith.constant 0 : i32
    %c0_i32_1 = arith.constant 0 : i32
    return %c0_i32, %c0_i32_0 : i32, i32
  }
  func.func @transform_6(%arg0: i32) -> (i32, i32) {
    %c0_i32 = arith.constant 0 : i32
    %c0_i32_0 = arith.constant 0 : i32
    return %arg0, %c0_i32 : i32, i32
  }
}

</mosaic_0001>

<bundles_post_ra>
// kernel: sae_forward.1
= control target key start
LH: loop header
LB: loop body
LE: loop exit
PB: predicated region body
PF: predicated region fallthrough
CT: control target
= control target key end

     0   :  { %11 = vsyncpa [#allocation3], 0  ;;  %s7512_s0 = inlined_call_operand.vmem [shape: bf16[512,384], index: 0, kind: input, shape index: {}]   ;;  %s7513_s1 = inlined_call_operand.vmem [shape: bf16[384,128], index: 1, kind: input, shape index: {}]   ;;  %s7514_s2 = inlined_call_operand.vmem [shape: bf16[2,128,128], index: 2, kind: input, shape index: {}]   ;;  %s7515_s3 = inlined_call_operand.vmem [shape: f32[3,128], index: 3, kind: input, shape index: {}]   ;;  %s7516_s4 = inlined_call_operand.vmem [shape: bf16[128,384], index: 4, kind: input, shape index: {}]   ;;  %s7517_s5 = inlined_call_operand.vmem [shape: f32[1,384], index: 5, kind: input, shape index: {}]   ;;  %s7518_s6 = inlined_call_operand.hbm [shape: f32[512,384], index: 6, kind: output, shape index: {}]  }
   0x1   :  { %13 = vsyncpa [#allocation3 + $0x1], 0  ;;  %s5050_s21 = smov 0   ;;  %s5052_s22 = smov 0  }
   0x2   :  { %s5054_s23 = smov 0   ;;  %s5056_s24 = smov 0  }
   0x3 LB: > { %s5071_s25 = sadd.s32 4294967295, %s5011_s24   ;;  %s3830_s26 = sadd.s32 4294967294, %s5011_s24   ;;  %s5011_s24 = sphi %s5056_s24, %s7684_s24   ;;  %s5007_s23 = sphi %s5054_s23, %s7683_s23   ;;  %s5003_s22 = sphi %s5052_s22, %s7682_s22   ;;  %s4999_s21 = sphi %s5050_s21, %s7681_s21  }
   0x4   : > { %s5075_s27 = sadd.s32 1, %s5011_s24   ;;  %s157_s28 = sadd.s32 1, %s5007_s23 }
   0x5   : > { %s154_s29 = ssub.s32 %s5011_s24, %s5075_s27  ;;  %p167_p0 = scmp.ne.s32.totalorder %s5007_s23, %s5003_s22 }
   0x6   : > { %p155_p1 = scmp.eq.s32.totalorder %s154_s29, 0  ;;  %p168_p2 = scmp.eq.s32.totalorder %s5071_s25, 1 }
   0x7   : > { %p173_p3 = scmp.ne.s32.totalorder %s5003_s22, %s4999_s21  ;;  %p174_p4 = scmp.eq.s32.totalorder %s3830_s26, 1 }
   0x8   : > { %s5086_s30 = scalar_select %p155_p1, %s5007_s23, %s157_s28  }
   0x9   : > { %p5088_p5 = por %p168_p2, %p167_p0  ;;  %p5092_p6 = por %p174_p4, %p173_p3 }
   0xa   : > { %p3833_p7 = scmp.ge.s32.totalorder %s5011_s24, 1  ;;  %p217_p8 = scmp.lt.s32.totalorder %s5011_s24, 3 }
   0xc   : > { %p218_p9 = pnand %p3833_p7, %p217_p8 }
   0xd   : > { %s3834_s12 = sshll.u32 (!%p218_p9), %s5071_s25, 5  ;;  %s245_s13 = sand.u32 (!%p218_p9), 1, %s5003_s22  }
   0xe   : > { %221 = sbr.rel (%p218_p9) target bundleno = 960 (0x3c0), region = 44  ;;  %p249_p10 = scmp.lt.s32.totalorder (!%p218_p9), %s3834_s12, 63 }
   0xf   : > { %s4513_s16 = smul.u32 (!%p218_p9), 768, %s245_s13 }
  0x10   : > { %s4515_s19 = smul.u32 (!%p218_p9), 768, %s5071_s25 }
  0x12   : > { %s3764_s28 = scalar_lea.hbm (!%p218_p9), %s7518_s6, %s4515_s19 }
  0x13   : > { %v4456_v0 = vld [vmem:[%s7513_s1 + $0x38] sm:$0xff]  ;;  %v4455_v3 = vld [vmem:[%s7513_s1 + $0x30] sm:$0xff]  ;;  %v4454_v6 = vld [vmem:[%s7513_s1 + $0x28] sm:$0xff]  ;;  %s7686_s12 = smov (!%p249_p10, %s3834_s12), 63  ;;  %s3767_s29 = sshll.u32 %s3764_s28, 4  ;;  %s3768_s29 = int_to_ptr.hbm [resolvable:$true] %s3767_s29 }
  0x14   : > { %v4464_v1 = vld [vmem:[%s7513_s1 + $0x78] sm:$0xff]  ;;  %770 = vmatpush.bf16.msra.mxu0 %v4456_v0  ;;  %v4463_v4 = vld [vmem:[%s7513_s1 + $0x70] sm:$0xff]  ;;  %v4462_v7 = vld [vmem:[%s7513_s1 + $0x68] sm:$0xff]  ;;  %s4514_s15 = smul.u32 12, %s7686_s12  ;;  %s3752_s12 = scalar_lea.sflag [#allocation3], %s245_s13 }
  0x15   : > { %v4472_v2 = vld [vmem:[%s7513_s1 + $0xb8] sm:$0xff]  ;;  %859 = vmatpush.bf16.msra.mxu1 %v4464_v1  ;;  %v4471_v5 = vld [vmem:[%s7513_s1 + $0xb0] sm:$0xff]  ;;  %v4470_v8 = vld [vmem:[%s7513_s1 + $0xa8] sm:$0xff]  ;;  %s4963_s10 = sshra.s32 %s3768_s29, 4  ;;  %s4964_s10 = int_to_ptr.hbm [resolvable:$true] %s4963_s10 }
  0x16   : > { %948 = vmatpush.bf16.msra.mxu2 %v4472_v2  ;;  %v4453_v9 = vld [vmem:[%s7513_s1 + $0x20] sm:$0xff]  ;;  %v4452_v12 = vld [vmem:[%s7513_s1 + $0x18] sm:$0xff]  ;;  %v4451_v15 = vld [vmem:[%s7513_s1 + $0x10] sm:$0xff]  ;;  %s5162_s9 = scalar_lea.vmem %s7512_s0, %s4514_s15  ;;  %s7056_s15 = scalar_lea.vmem [#allocation2], %s4513_s16 }
  0x17   : > { %v4461_v10 = vld [vmem:[%s7513_s1 + $0x60] sm:$0xff]  ;;  %v4460_v13 = vld [vmem:[%s7513_s1 + $0x58] sm:$0xff]  ;;  %v4459_v16 = vld [vmem:[%s7513_s1 + $0x50] sm:$0xff]  ;;  %s3765_s25 = sshll.u32 %s7056_s15, 4  ;;  %s4965_s11 = scalar_lea.hbm %s4964_s10, 768  ;;  %s3766_s25 = int_to_ptr.vmem [resolvable:$true] %s3765_s25 }
  0x18   : > { %771 = vmatpush.bf16.msra.mxu0 %v4455_v3  ;;  %v4469_v11 = vld [vmem:[%s7513_s1 + $0xa0] sm:$0xff]  ;;  %v4468_v14 = vld [vmem:[%s7513_s1 + $0x98] sm:$0xff]  ;;  %v4467_v17 = vld [vmem:[%s7513_s1 + $0x90] sm:$0xff]  ;;  %p4966_p11 = scmp.ne.s32.totalorder %s4964_s10, %s4965_s11  ;;  %s4969_s16 = scalar_lea.hbm %s7518_s6, 1536 }
  0x19   : > { %860 = vmatpush.bf16.msra.mxu1 %v4463_v4  ;;  %v4450_v18 = vld [vmem:[%s7513_s1 + $0x8] sm:$0xff]  ;;  %v4449_v21 = vld [vmem:[%s7513_s1] sm:$0xff]  ;;  %v3840_v26 = vld [vmem:[%s5162_s9 + $0xc] sm:$0xf0]  ;;  %p4970_p0 = scmp.lt.s32.totalorder %s4964_s10, %s7518_s6  ;;  %p4971_p1 = scmp.lt.s32.totalorder %s4969_s16, %s4965_s11 }
  0x1a   : > { %949 = vmatpush.bf16.msra.mxu2 %v4471_v5  ;;  %v4458_v19 = vld [vmem:[%s7513_s1 + $0x48] sm:$0xff]  ;;  %v4457_v22 = vld [vmem:[%s7513_s1 + $0x40] sm:$0xff]  ;;  %v4403_v29 = vld [vmem:[%s5162_s9 + $0x10] sm:$0xf0]  ;;  %p4967_p12 = pnand %p4966_p11, %p5088_p5 }
  0x1b   : > { %v4466_v20 = vld [vmem:[%s7513_s1 + $0x88] sm:$0xff]  ;;  %v3838_v23 = vld [vmem:[%s5162_s9] sm:$0xf]  ;;  %v4401_v25 = vld [vmem:[%s5162_s9 + $0x4] sm:$0xf]  ;;  %p4972_p2 = por %p4971_p1, %p4970_p0 }
  0x1c   : > { %772 = vmatpush.bf16.msra.mxu0 %v4454_v6  ;;  %v4402_v24 = vld [vmem:[%s5162_s9 + $0x8] sm:$0xf0]  ;;  %v4465_v27 = vld [vmem:[%s7513_s1 + $0x80] sm:$0xff]  ;;  %v3846_v28 = vld [vmem:[%s5162_s9 + $0x8] sm:$0xf]  ;;  %v3843_v31 = vor.u32 %v4401_v25, %v3840_v26  ;;  %p4968_p13 = pneg %p4967_p12 }
  0x1d   : > { %861 = vmatpush.bf16.msra.mxu1 %v4462_v7  ;;  %v3839_v30 = vor.u32 %v4402_v24, %v3838_v23  ;;  %v3847_v32 = vor.u32 %v4403_v29, %v3846_v28  ;;  %v3850_v33 = vld [vmem:[%s5162_s9 + $0x18] sm:$0xf]  ;;  %v4405_v34 = vld [vmem:[%s5162_s9 + $0x20] sm:$0xf0]  ;;  %v4404_v35 = vld [vmem:[%s5162_s9 + $0x1c] sm:$0xf] }
  0x1e   : > { %950 = vmatpush.bf16.msra.mxu2 %v4470_v8  ;;  %v3852_v36 = vld [vmem:[%s5162_s9 + $0x24] sm:$0xf0]  ;;  %v3858_v37 = vld [vmem:[%s5162_s9 + $0x20] sm:$0xf]  ;;  %v4406_v38 = vld [vmem:[%s5162_s9 + $0x28] sm:$0xf0]  ;;  %v3851_v39 = vor.u32 %v4405_v34, %v3850_v33  ;;  %p4973_p3 = pnand %p4972_p2, %p4968_p13 }
  0x1f   : > { %v3855_v40 = vor.u32 %v4404_v35, %v3852_v36  ;;  %v3859_v41 = vor.u32 %v4406_v38, %v3858_v37  ;;  %v3862_v42 = vld [vmem:[%s5162_s9 + $0x30] sm:$0xf]  ;;  %v4408_v43 = vld [vmem:[%s5162_s9 + $0x38] sm:$0xf0]  ;;  %v4407_v44 = vld [vmem:[%s5162_s9 + $0x34] sm:$0xf] }
  0x20   : > { %773 = vmatpush.bf16.msra.mxu0 %v4453_v9  ;;  %v3864_v45 = vld [vmem:[%s5162_s9 + $0x3c] sm:$0xf0]  ;;  %v3870_v46 = vld [vmem:[%s5162_s9 + $0x38] sm:$0xf]  ;;  %v4409_v47 = vld [vmem:[%s5162_s9 + $0x40] sm:$0xf0]  ;;  %v3863_v48 = vor.u32 %v4408_v43, %v3862_v42 }
  0x21   : > { %862 = vmatpush.bf16.msra.mxu1 %v4461_v10  ;;  %v3867_v49 = vor.u32 %v4407_v44, %v3864_v45  ;;  %v3871_v50 = vor.u32 %v4409_v47, %v3870_v46  ;;  %v3874_v51 = vld [vmem:[%s5162_s9 + $0x48] sm:$0xf]  ;;  %v4411_v52 = vld [vmem:[%s5162_s9 + $0x50] sm:$0xf0]  ;;  %v4410_v53 = vld [vmem:[%s5162_s9 + $0x4c] sm:$0xf] }
  0x22   : > { %951 = vmatpush.bf16.msra.mxu2 %v4469_v11  ;;  %v3876_v54 = vld [vmem:[%s5162_s9 + $0x54] sm:$0xf0]  ;;  %v3882_v55 = vld [vmem:[%s5162_s9 + $0x50] sm:$0xf]  ;;  %v4412_v56 = vld [vmem:[%s5162_s9 + $0x58] sm:$0xf0]  ;;  %v3875_v57 = vor.u32 %v4411_v52, %v3874_v51 }
  0x23   : > { %v3879_v58 = vor.u32 %v4410_v53, %v3876_v54  ;;  %v3883_v59 = vor.u32 %v4412_v56, %v3882_v55  ;;  %v4488_v60 = vld [vmem:[%s7514_s2 + $0x78] sm:$0xff]  ;;  %v3886_v61 = vld [vmem:[%s5162_s9 + $0x60] sm:$0xf]  ;;  %v4414_v62 = vld [vmem:[%s5162_s9 + $0x68] sm:$0xf0] }
  0x24   : > { %774 = vmatpush.bf16.msra.mxu0 %v4452_v12  ;;  %v4413_v63 = vld [vmem:[%s5162_s9 + $0x64] sm:$0xf]  ;;  %v3888_v0 = vld [vmem:[%s5162_s9 + $0x6c] sm:$0xf0]  ;;  %v3894_v1 = vld [vmem:[%s5162_s9 + $0x68] sm:$0xf]  ;;  %v3887_v3 = vor.u32 %v4414_v62, %v3886_v61 }
  0x25   : > { %863 = vmatpush.bf16.msra.mxu1 %v4460_v13  ;;  %v4415_v2 = vld [vmem:[%s5162_s9 + $0x70] sm:$0xf0]  ;;  %v3891_v4 = vor.u32 %v4413_v63, %v3888_v0  ;;  %v3898_v6 = vld [vmem:[%s5162_s9 + $0x78] sm:$0xf]  ;;  %v4417_v7 = vld [vmem:[%s5162_s9 + $0x80] sm:$0xf0] }
  0x26   : > { %952 = vmatpush.bf16.msra.mxu2 %v4468_v14  ;;  %v3895_v5 = vor.u32 %v4415_v2, %v3894_v1  ;;  %v4416_v8 = vld [vmem:[%s5162_s9 + $0x7c] sm:$0xf]  ;;  %v3900_v9 = vld [vmem:[%s5162_s9 + $0x84] sm:$0xf0]  ;;  %v3906_v10 = vld [vmem:[%s5162_s9 + $0x80] sm:$0xf]  ;;  %v3899_v12 = vor.u32 %v4417_v7, %v3898_v6 }
  0x27   : > { %v4418_v11 = vld [vmem:[%s5162_s9 + $0x88] sm:$0xf0]  ;;  %v3903_v13 = vor.u32 %v4416_v8, %v3900_v9  ;;  %v3922_v25 = vld [vmem:[%s5162_s9 + $0xa8] sm:$0xf]  ;;  %v4423_v26 = vld [vmem:[%s5162_s9 + $0xb0] sm:$0xf0] }
  0x28   : > { %775 = vmatpush.bf16.msra.mxu0 %v4451_v15  ;;  %v3907_v14 = vor.u32 %v4418_v11, %v3906_v10  ;;  %v4487_v15 = vld [vmem:[%s7514_s2 + $0x70] sm:$0xff]  ;;  %v3924_v28 = vld [vmem:[%s5162_s9 + $0xb4] sm:$0xf0]  ;;  %v4478_v36 = vld [vmem:[%s7514_s2 + $0x28] sm:$0xff] }
  0x29   : > { %864 = vmatpush.bf16.msra.mxu1 %v4459_v16  ;;  %v3910_v16 = vld [vmem:[%s5162_s9 + $0x90] sm:$0xf]  ;;  %v4480_v33 = vld [vmem:[%s7514_s2 + $0x38] sm:$0xff]  ;;  %v3934_v37 = vld [vmem:[%s5162_s9 + $0xc0] sm:$0xf] }
  0x2a   : > { %953 = vmatpush.bf16.msra.mxu2 %v4467_v17  ;;  %v4420_v17 = vld [vmem:[%s5162_s9 + $0x98] sm:$0xf0]  ;;  %v3930_v29 = vld [vmem:[%s5162_s9 + $0xb0] sm:$0xf]  ;;  %1727 = vmatpush.bf16.msra.mxu3 %v4480_v33  ;;  %v4477_v38 = vld [vmem:[%s7514_s2 + $0x20] sm:$0xff] }
  0x2b   : > { %v4479_v35 = vld [vmem:[%s7514_s2 + $0x30] sm:$0xff]  ;;  %v5249_v42 = vld [vmem:[%s7515_s3] ss:$0 sm:$0xff]  ;;  %v3942_v43 = vld [vmem:[%s5162_s9 + $0xc8] sm:$0xf] }
  0x2c   : > { %776 = vmatpush.bf16.msra.mxu0 %v4450_v18  ;;  %v4419_v18 = vld [vmem:[%s5162_s9 + $0x94] sm:$0xf]  ;;  %v4476_v47 = vld [vmem:[%s7514_s2 + $0x18] sm:$0xff]  ;;  %v4486_v54 = vld [vmem:[%s7514_s2 + $0x68] sm:$0xff] }
  0x2d   : > { %865 = vmatpush.bf16.msra.mxu1 %v4458_v19  ;;  %v3912_v19 = vld [vmem:[%s5162_s9 + $0x9c] sm:$0xf0]  ;;  %v4427_v44 = vld [vmem:[%s5162_s9 + $0xd0] sm:$0xf0]  ;;  %v4474_v56 = vld [vmem:[%s7514_s2 + $0x8] sm:$0xff] }
  0x2e   : > { %954 = vmatpush.bf16.msra.mxu2 %v4466_v20  ;;  %v3918_v20 = vld [vmem:[%s5162_s9 + $0x98] sm:$0xf]  ;;  %v3915_v23 = vor.u32 %v4419_v18, %v3912_v19  ;;  %1728 = vmatpush.bf16.msra.mxu3 %v4479_v35  ;;  %v4475_v52 = vld [vmem:[%s7514_s2 + $0x10] sm:$0xff]  ;;  %v4473_v63 = vld [vmem:[%s7514_s2] sm:$0xff] }
  0x2f   : > { %v3946_v62 = vld [vmem:[%s5162_s9 + $0xd8] sm:$0xf]  ;;  %v4429_v0 = vld [vmem:[%s5162_s9 + $0xe0] sm:$0xf0]  ;;  %v4428_v1 = vld [vmem:[%s5162_s9 + $0xdc] sm:$0xf] }
  0x30   : > { %777 = vmatpush.bf16.msra.mxu0 %v4449_v21  ;;  %v4421_v21 = vld [vmem:[%s5162_s9 + $0xa0] sm:$0xf0]  ;;  %v3948_v2 = vld [vmem:[%s5162_s9 + $0xe4] sm:$0xf0]  ;;  %v3947_v7 = vor.u32 %v4429_v0, %v3946_v62  ;;  %v3984_v0 = vld [vmem:[%s5162_s9 + $0x12c] sm:$0xf0] }
  0x31   : > { %866 = vmatpush.bf16.msra.mxu1 %v4457_v22  ;;  %v3911_v22 = vor.u32 %v4420_v17, %v3910_v16  ;;  %v3919_v24 = vor.u32 %v4421_v21, %v3918_v20  ;;  %v3951_v8 = vor.u32 %v4428_v1, %v3948_v2  ;;  %v4433_v33 = vld [vmem:[%s5162_s9 + $0x100] sm:$0xf0] }
  0x32   : > { %955 = vmatpush.bf16.msra.mxu2 %v4465_v27  ;;  %v4422_v27 = vld [vmem:[%s5162_s9 + $0xac] sm:$0xf]  ;;  %1729 = vmatpush.bf16.msra.mxu3 %v4478_v36 }
  0x33   : > { %778 = vmatmul.bf16.vlgmr.msra.gmra.mxu0 %v3839_v30  ;;  %v4424_v30 = vld [vmem:[%s5162_s9 + $0xb8] sm:$0xf0] }
  0x34   : > { %867 = vmatmul.bf16.vlgmr.msra.gmra.mxu1 %v3843_v31  ;;  %2507 = vmatpush.bf16.msrb.mxu0 %v4488_v60  ;;  %v3923_v31 = vor.u32 %v4423_v26, %v3922_v25  ;;  %v3931_v34 = vor.u32 %v4424_v30, %v3930_v29  ;;  %v4431_v29 = vld [vmem:[%s5162_s9 + $0xf4] sm:$0xf]  ;;  %v3960_v30 = vld [vmem:[%s5162_s9 + $0xfc] sm:$0xf0] }
  0x35   : > { %956 = vmatmul.bf16.vlgmr.msra.gmra.mxu2 %v3847_v32  ;;  %v3927_v32 = vor.u32 %v4422_v27, %v3924_v28  ;;  %v3958_v27 = vld [vmem:[%s5162_s9 + $0xf0] sm:$0xf]  ;;  %v4432_v28 = vld [vmem:[%s5162_s9 + $0xf8] sm:$0xf0] }
  0x36   : > { %1730 = vmatpush.bf16.msra.mxu3 %v4477_v38  ;;  %v3963_v38 = vor.u32 %v4431_v29, %v3960_v30 }
  0x38   : > { %2508 = vmatpush.bf16.msrb.mxu0 %v4487_v15 }
  0x3a   : > { %1731 = vmatpush.bf16.msra.mxu3 %v4476_v47 }
  0x3c   : > { %2509 = vmatpush.bf16.msrb.mxu0 %v4486_v54 }
  0x3e   : > { %1732 = vmatpush.bf16.msra.mxu3 %v4475_v52  ;;  %v4485_v52 = vld [vmem:[%s7514_s2 + $0x60] sm:$0xff] }
  0x40   : > { %2510 = vmatpush.bf16.msrb.mxu0 %v4485_v52 }
  0x42   : > { %1733 = vmatpush.bf16.msra.mxu3 %v4474_v56 }
  0x43   : > { %783 = vmatmul.bf16.gmra.mxu0 %v3851_v39  ;;  %v4426_v39 = vld [vmem:[%s5162_s9 + $0xc8] sm:$0xf0] }
  0x44   : > { %872 = vmatmul.bf16.gmra.mxu1 %v3855_v40  ;;  %v4425_v40 = vld [vmem:[%s5162_s9 + $0xc4] sm:$0xf]  ;;  %v3935_v45 = vor.u32 %v4426_v39, %v3934_v37  ;;  %v3959_v37 = vor.u32 %v4432_v28, %v3958_v27 }
  0x45   : > { %961 = vmatmul.bf16.gmra.mxu2 %v3859_v41  ;;  %v3936_v41 = vld [vmem:[%s5162_s9 + $0xcc] sm:$0xf0] }
  0x46   : > { %v3939_v46 = vor.u32 %v4425_v40, %v3936_v41  ;;  %1734 = vmatpush.bf16.msra.mxu3 %v4473_v63 }
  0x53   : > { %788 = vmatmul.bf16.gmra.mxu0 %v3863_v48 }
  0x54   : > { %877 = vmatmul.bf16.gmra.mxu1 %v3867_v49 }
  0x55   : > { %966 = vmatmul.bf16.gmra.mxu2 %v3871_v50  ;;  %v3943_v50 = vor.u32 %v4427_v44, %v3942_v43 }
  0x63   : > { %793 = vmatmul.bf16.gmra.mxu0 %v3875_v57 }
  0x64   : > { %882 = vmatmul.bf16.gmra.mxu1 %v3879_v58 }
  0x65   : > { %971 = vmatmul.bf16.gmra.mxu2 %v3883_v59 }
  0x73   : > { %798 = vmatmul.bf16.gmra.mxu0 %v3887_v3  ;;  %v3954_v3 = vld [vmem:[%s5162_s9 + $0xe0] sm:$0xf] }
  0x74   : > { %887 = vmatmul.bf16.gmra.mxu1 %v3891_v4  ;;  %v4430_v4 = vld [vmem:[%s5162_s9 + $0xe8] sm:$0xf0] }
  0x75   : > { %976 = vmatmul.bf16.gmra.mxu2 %v3895_v5 }
  0x83   : > { %803 = vmatmul.bf16.gmra.mxu0 %v3899_v12  ;;  %v3955_v12 = vor.u32 %v4430_v4, %v3954_v3 }
  0x84   : > { %892 = vmatmul.bf16.gmra.mxu1 %v3903_v13 }
  0x85   : > { %981 = vmatmul.bf16.gmra.mxu2 %v3907_v14 }
  0x93   : > { %808 = vmatmul.bf16.gmra.mxu0 %v3911_v22 }
  0x94   : > { %897 = vmatmul.bf16.gmra.mxu1 %v3915_v23 }
  0x95   : > { %986 = vmatmul.bf16.gmra.mxu2 %v3919_v24 }
  0xa3   : > { %813 = vmatmul.bf16.gmra.mxu0 %v3923_v31 }
  0xa4   : > { %902 = vmatmul.bf16.gmra.mxu1 %v3927_v32  ;;  %v3966_v32 = vld [vmem:[%s5162_s9 + $0xf8] sm:$0xf] }
  0xa5   : > { %991 = vmatmul.bf16.gmra.mxu2 %v3931_v34  ;;  %v3967_v43 = vor.u32 %v4433_v33, %v3966_v32 }
  0xb0   : > { %v779_v48 = vpop.f32.mrf.mxu0 }
  0xb1   : > { %v868_v49 = vpop.f32.mrf.mxu1  ;;  %v780_v51 = vadd.f32 %v5249_v42, %v779_v48 }
  0xb3   : > { %818 = vmatmul.bf16.gmra.mxu0 %v3935_v45  ;;  %v869_v53 = vadd.f32 %v868_v49, %v780_v51 }
  0xb4   : > { %907 = vmatmul.bf16.gmra.mxu1 %v3939_v46 }
  0xb5   : > { %996 = vmatmul.bf16.gmra.mxu2 %v3943_v50 }
  0xb8   : > { %v957_v55 = vpop.f32.mrf.mxu2  ;;  %v781_v58 = vpop.f32.mrf.mxu0 }
  0xb9   : > { %v958_v57 = vadd.f32 %v957_v55, %v869_v53  ;;  %v870_v59 = vpop.f32.mrf.mxu1  ;;  %v782_v61 = vadd.f32 %v5249_v42, %v781_v58 }
  0xbb   : > { %v4124_v60 = vmul.f32 -1.442695, %v958_v57  ;;  %v871_v5 = vadd.f32 %v870_v59, %v782_v61 }
  0xbd   : > { %4560 = vpow2.f32 %v4124_v60 }
  0xc0   : > { %v959_v6 = vpop.f32.mrf.mxu2  ;;  %v784_v10 = vpop.f32.mrf.mxu0 }
  0xc1   : > { %v960_v9 = vadd.f32 %v959_v6, %v871_v5  ;;  %v873_v11 = vpop.f32.mrf.mxu1  ;;  %v785_v13 = vadd.f32 %v5249_v42, %v784_v10  ;;  %v3970_v6 = vld [vmem:[%s5162_s9 + $0x108] sm:$0xf] }
  0xc3   : > { %v4561_v14 = vpop.eup %4560  ;;  %v4125_v15 = vmul.f32 -1.442695, %v960_v9  ;;  %823 = vmatmul.bf16.gmra.mxu0 %v3947_v7  ;;  %v874_v17 = vadd.f32 %v873_v11, %v785_v13  ;;  %v4435_v11 = vld [vmem:[%s5162_s9 + $0x110] sm:$0xf0]  ;;  %v4434_v13 = vld [vmem:[%s5162_s9 + $0x10c] sm:$0xf] }
  0xc4   : > { %v5277_v16 = vadd.f32 1.0, %v4561_v14  ;;  %912 = vmatmul.bf16.gmra.mxu1 %v3951_v8  ;;  %v3972_v14 = vld [vmem:[%s5162_s9 + $0x114] sm:$0xf0] }
  0xc5   : > { %4562 = vpow2.f32 %v4125_v15  ;;  %1001 = vmatmul.bf16.gmra.mxu2 %v3955_v12 }
  0xc6   : > { %4564 = vrcp.f32 %v5277_v16  ;;  %vm1170_vm1 = vweird.f32 %v5277_v16  ;;  %v1174_v56 = vand.u32 2147483647, %v5277_v16  ;;  %v1176_v57 = vand.u32 2147483648, %v5277_v16 }
  0xc8   : > { %v962_v18 = vpop.f32.mrf.mxu2  ;;  %v786_v20 = vpop.f32.mrf.mxu0  ;;  %vm1175_vm5 = vcmp.eq.f32.partialorder %v1174_v56, 8.507059e+37  ;;  %v1177_v9 = vor.u32 1.1754944e-38, %v1176_v57  ;;  %v3982_v56 = vld [vmem:[%s5162_s9 + $0x120] sm:$0xf] }
  0xc9   : > { %v963_v19 = vadd.f32 %v962_v18, %v874_v17  ;;  %v875_v21 = vpop.f32.mrf.mxu1  ;;  %v787_v24 = vadd.f32 %v5249_v42, %v786_v20  ;;  %v3978_v18 = vld [vmem:[%s5162_s9 + $0x110] sm:$0xf] }
  0xcb   : > { %v4563_v22 = vpop.eup %4562  ;;  %v4126_v23 = vmul.f32 -1.442695, %v963_v19  ;;  %v876_v34 = vadd.f32 %v875_v21, %v787_v24  ;;  %v4436_v19 = vld [vmem:[%s5162_s9 + $0x118] sm:$0xf0]  ;;  %v3971_v24 = vor.u32 %v4435_v11, %v3970_v6 }
  0xcc   : > { %v5281_v25 = vpop.eup %4564  ;;  %v5283_v26 = vadd.f32 1.0, %v4563_v22  ;;  %v3979_v29 = vor.u32 %v4436_v19, %v3978_v18 }
  0xcd   : > { %4566 = vpow2.f32 %v4126_v23  ;;  %v1166_v31 = vmul.f32 %v5281_v25, %v5277_v16  ;;  %vm1171_vm0 = vweird.f32 %v5281_v25 }
  0xce   : > { %4568 = vrcp.f32 %v5283_v26  ;;  %v1191_v58 = vand.u32 2147483648, %v5283_v26  ;;  %v1189_v63 = vand.u32 2147483647, %v5283_v26  ;;  %vm5310_vm3 = vmor %vm1170_vm1, %vm1171_vm0  ;;  %vm1185_vm4 = vweird.f32 %v5283_v26 }
  0xcf   : > { %v1167_v35 = vsub.f32 1.0, %v1166_v31 }
  0xd0   : > { %v964_v36 = vpop.f32.mrf.mxu2  ;;  %v789_v40 = vpop.f32.mrf.mxu0  ;;  %v1192_v10 = vor.u32 1.1754944e-38, %v1191_v58  ;;  %vm1190_vm7 = vcmp.eq.f32.partialorder %v1189_v63, 8.507059e+37  ;;  %v4437_v63 = vld [vmem:[%s5162_s9 + $0x124] sm:$0xf] }
  0xd1   : > { %v965_v39 = vadd.f32 %v964_v36, %v876_v34  ;;  %v878_v41 = vpop.f32.mrf.mxu1  ;;  %v790_v44 = vadd.f32 %v5249_v42, %v789_v40  ;;  %v1168_v47 = vmul.f32 %v5281_v25, %v1167_v35  ;;  %v3987_v11 = vor.u32 %v4437_v63, %v3984_v0 }
  0xd3   : > { %v4567_v45 = vpop.eup %4566  ;;  %v4127_v46 = vmul.f32 -1.442695, %v965_v39  ;;  %828 = vmatmul.bf16.gmra.mxu0 %v3959_v37  ;;  %v879_v50 = vadd.f32 %v878_v41, %v790_v44  ;;  %v1169_v53 = vadd.f32 %v5281_v25, %v1168_v47 }
  0xd4   : > { %v4569_v48 = vpop.eup %4568  ;;  %v5296_v49 = vadd.f32 1.0, %v4567_v45  ;;  %917 = vmatmul.bf16.gmra.mxu1 %v3963_v38 }
  0xd5   : > { %4570 = vpow2.f32 %v4127_v46  ;;  %1006 = vmatmul.bf16.gmra.mxu2 %v3967_v43  ;;  %v1181_v51 = vmul.f32 %v4569_v48, %v5283_v26  ;;  %vm1186_vm2 = vweird.f32 %v4569_v48  ;;  %v1173_v4 = vsel %vm5310_vm3, %v5281_v25, %v1169_v53 }
  0xd6   : > { %4572 = vrcp.f32 %v5296_v49  ;;  %vm1187_vm6 = vmor %vm1185_vm4, %vm1186_vm2  ;;  %v1178_v16 = vsel %vm1175_vm5, %v1177_v9, %v1173_v4  ;;  %v3975_v25 = vor.u32 %v4434_v13, %v3972_v14  ;;  %vm1200_vm9 = vweird.f32 %v5296_v49  ;;  %v3990_v4 = vld [vmem:[%s5162_s9 + $0x128] sm:$0xf] }
  0xd7   : > { %v1182_v54 = vsub.f32 1.0, %v1181_v51  ;;  %v1204_v41 = vand.u32 2147483647, %v5296_v49  ;;  %v1206_v43 = vand.u32 2147483648, %v5296_v49  ;;  %v4440_v51 = vld [vmem:[%s5162_s9 + $0x13c] sm:$0xf] }
  0xd8   : > { %v967_v55 = vpop.f32.mrf.mxu2  ;;  %v791_v60 = vpop.f32.mrf.mxu0 }
  0xd9   : > { %v968_v59 = vadd.f32 %v967_v55, %v879_v50  ;;  %v880_v61 = vpop.f32.mrf.mxu1  ;;  %v1183_v62 = vmul.f32 %v4569_v48, %v1182_v54  ;;  %v792_v3 = vadd.f32 %v5249_v42, %v791_v60  ;;  %vm1205_vm13 = vcmp.eq.f32.partialorder %v1204_v41, 8.507059e+37 }
  0xdb   : > { %v4571_v1 = vpop.eup %4570  ;;  %v4128_v2 = vmul.f32 -1.442695, %v968_v59  ;;  %v1184_v5 = vadd.f32 %v4569_v48, %v1183_v62  ;;  %v881_v20 = vadd.f32 %v880_v61, %v792_v3  ;;  %v1207_v59 = vor.u32 1.1754944e-38, %v1206_v43  ;;  %v4438_v61 = vld [vmem:[%s5162_s9 + $0x128] sm:$0xf0] }
  0xdc   : > { %v5320_v7 = vpop.eup %4572  ;;  %v5322_v8 = vadd.f32 1.0, %v4571_v1  ;;  %v3994_v43 = vld [vmem:[%s5162_s9 + $0x138] sm:$0xf] }
  0xdd   : > { %4574 = vpow2.f32 %v4128_v2  ;;  %v1188_v12 = vsel %vm1187_vm6, %v4569_v48, %v1184_v5  ;;  %v1196_v15 = vmul.f32 %v5320_v7, %v5296_v49  ;;  %vm1201_vm8 = vweird.f32 %v5320_v7  ;;  %v4439_v5 = vld [vmem:[%s5162_s9 + $0x130] sm:$0xf0] }
  0xde   : > { %4576 = vrcp.f32 %v5322_v8  ;;  %v1193_v17 = vsel %vm1190_vm7, %v1192_v10, %v1188_v12  ;;  %v1221_v44 = vand.u32 2147483648, %v5322_v8  ;;  %v1219_v50 = vand.u32 2147483647, %v5322_v8  ;;  %vm5345_vm11 = vmor %vm1200_vm9, %vm1201_vm8 }
  0xdf   : > { %v1645_v21 = vpack.c.bf16 %v1193_v17, %v1178_v16  ;;  %v1197_v22 = vsub.f32 1.0, %v1196_v15  ;;  %vm1215_vm12 = vweird.f32 %v5322_v8  ;;  %v3983_v10 = vor.u32 %v4438_v61, %v3982_v56  ;;  %v4442_v56 = vld [vmem:[%s5162_s9 + $0x148] sm:$0xf0] }
  0xe0   : > { %v969_v23 = vpop.f32.mrf.mxu2  ;;  %v794_v27 = vpop.f32.mrf.mxu0  ;;  %v1222_v60 = vor.u32 1.1754944e-38, %v1221_v44  ;;  %vm1220_vm15 = vcmp.eq.f32.partialorder %v1219_v50, 8.507059e+37  ;;  %v3991_v15 = vor.u32 %v4439_v5, %v3990_v4 }
  0xe1   : > { %v970_v26 = vadd.f32 %v969_v23, %v881_v20  ;;  %1735 = vmatmul.bf16.vlgmr.msra.gmra.mxu3 %v1645_v21  ;;  %v883_v28 = vpop.f32.mrf.mxu1  ;;  %v795_v30 = vadd.f32 %v5249_v42, %v794_v27  ;;  %v1198_v33 = vmul.f32 %v5320_v7, %v1197_v22 }
  0xe3   : > { %v4575_v31 = vpop.eup %4574  ;;  %v4129_v32 = vmul.f32 -1.442695, %v970_v26  ;;  %833 = vmatmul.bf16.gmra.mxu0 %v3971_v24  ;;  %v884_v36 = vadd.f32 %v883_v28, %v795_v30  ;;  %v1199_v38 = vadd.f32 %v5320_v7, %v1198_v33  ;;  %v4484_v24 = vld [vmem:[%s7514_s2 + $0x58] sm:$0xff] }
  0xe4   : > { %v4577_v34 = vpop.eup %4576  ;;  %v5334_v35 = vadd.f32 1.0, %v4575_v31  ;;  %922 = vmatmul.bf16.gmra.mxu1 %v3975_v25  ;;  %2511 = vmatpush.bf16.msrb.mxu0 %v4484_v24 }
  0xe5   : > { %4578 = vpow2.f32 %v4129_v32  ;;  %1011 = vmatmul.bf16.gmra.mxu2 %v3979_v29  ;;  %v1211_v37 = vmul.f32 %v4577_v34, %v5322_v8  ;;  %vm1216_vm10 = vweird.f32 %v4577_v34  ;;  %v1203_v54 = vsel %vm5345_vm11, %v5320_v7, %v1199_v38 }
  0xe6   : > { %4580 = vrcp.f32 %v5334_v35  ;;  %vm1217_vm14 = vmor %vm1215_vm12, %vm1216_vm10  ;;  %v1208_v2 = vsel %vm1205_vm13, %v1207_v59, %v1203_v54  ;;  %vm1230_vm1 = vweird.f32 %v5334_v35  ;;  %v1234_v28 = vand.u32 2147483647, %v5334_v35 }
  0xe7   : > { %v1212_v39 = vsub.f32 1.0, %v1211_v37  ;;  %v1236_v29 = vand.u32 2147483648, %v5334_v35  ;;  %v4008_v37 = vld [vmem:[%s5162_s9 + $0x15c] sm:$0xf0] }
  0xe8   : > { %v972_v40 = vpop.f32.mrf.mxu2  ;;  %v796_v46 = vpop.f32.mrf.mxu0  ;;  %vm1235_vm5 = vcmp.eq.f32.partialorder %v1234_v28, 8.507059e+37  ;;  %v4006_v28 = vld [vmem:[%s5162_s9 + $0x150] sm:$0xf] }
  0xe9   : > { %v973_v45 = vadd.f32 %v972_v40, %v884_v36  ;;  %v885_v47 = vpop.f32.mrf.mxu1  ;;  %v1213_v48 = vmul.f32 %v4577_v34, %v1212_v39  ;;  %v797_v49 = vadd.f32 %v5249_v42, %v796_v46  ;;  %v1237_v46 = vor.u32 1.1754944e-38, %v1236_v29 }
  0xeb   : > { %v4579_v52 = vpop.eup %4578  ;;  %v4130_v53 = vmul.f32 -1.442695, %v973_v45  ;;  %v1214_v55 = vadd.f32 %v4577_v34, %v1213_v48  ;;  %v886_v6 = vadd.f32 %v885_v47, %v797_v49  ;;  %v4441_v48 = vld [vmem:[%s5162_s9 + $0x140] sm:$0xf0] }
  0xec   : > { %v5355_v57 = vpop.eup %4580  ;;  %v5357_v58 = vadd.f32 1.0, %v4579_v52  ;;  %v3996_v52 = vld [vmem:[%s5162_s9 + $0x144] sm:$0xf0]  ;;  %v3995_v61 = vor.u32 %v4441_v48, %v3994_v43 }
  0xed   : > { %4582 = vpow2.f32 %v4130_v53  ;;  %v1218_v62 = vsel %vm1217_vm14, %v4577_v34, %v1214_v55  ;;  %v1226_v1 = vmul.f32 %v5355_v57, %v5334_v35  ;;  %vm1231_vm0 = vweird.f32 %v5355_v57  ;;  %v4002_v55 = vld [vmem:[%s5162_s9 + $0x140] sm:$0xf] }
  0xee   : > { %4584 = vrcp.f32 %v5357_v58  ;;  %v1223_v3 = vsel %vm1220_vm15, %v1222_v60, %v1218_v62  ;;  %v1251_v30 = vand.u32 2147483648, %v5357_v58  ;;  %v1249_v36 = vand.u32 2147483647, %v5357_v58  ;;  %vm5383_vm3 = vmor %vm1230_vm1, %vm1231_vm0 }
  0xef   : > { %v1646_v7 = vpack.c.bf16 %v1223_v3, %v1208_v2  ;;  %v1227_v8 = vsub.f32 1.0, %v1226_v1  ;;  %vm1245_vm4 = vweird.f32 %v5357_v58  ;;  %v3999_v62 = vor.u32 %v4440_v51, %v3996_v52 }
  0xf0   : > { %v974_v9 = vpop.f32.mrf.mxu2  ;;  %v799_v13 = vpop.f32.mrf.mxu0  ;;  %v1252_v47 = vor.u32 1.1754944e-38, %v1251_v30  ;;  %vm1250_vm7 = vcmp.eq.f32.partialorder %v1249_v36, 8.507059e+37  ;;  %v4003_v2 = vor.u32 %v4442_v56, %v4002_v55  ;;  %v4443_v36 = vld [vmem:[%s5162_s9 + $0x154] sm:$0xf] }
  0xf1   : > { %v975_v12 = vadd.f32 %v974_v9, %v886_v6  ;;  %1740 = vmatmul.bf16.gmra.mxu3 %v1646_v7  ;;  %v888_v14 = vpop.f32.mrf.mxu1  ;;  %v800_v16 = vadd.f32 %v5249_v42, %v799_v13  ;;  %v1228_v19 = vmul.f32 %v5355_v57, %v1227_v8  ;;  %v4011_v48 = vor.u32 %v4443_v36, %v4008_v37  ;;  %v4394_v36 = vld [vmem:[%s7516_s4 + $0xb0] sm:$0xf]  ;;  %v4512_v37 = vld [vmem:[%s7516_s4 + $0xb8] sm:$0xf0] }
  0xf3   : > { %v4583_v17 = vpop.eup %4582  ;;  %v4131_v18 = vmul.f32 -1.442695, %v975_v12  ;;  %838 = vmatmul.bf16.gmra.mxu0 %v3983_v10  ;;  %v889_v22 = vadd.f32 %v888_v14, %v800_v16  ;;  %v1229_v25 = vadd.f32 %v5355_v57, %v1228_v19 }
  0xf4   : > { %v4585_v20 = vpop.eup %4584  ;;  %v5369_v21 = vadd.f32 1.0, %v4583_v17  ;;  %927 = vmatmul.bf16.gmra.mxu1 %v3987_v11 }
  0xf5   : > { %4586 = vpow2.f32 %v4131_v18  ;;  %1016 = vmatmul.bf16.gmra.mxu2 %v3991_v15  ;;  %v1241_v23 = vmul.f32 %v4585_v20, %v5357_v58  ;;  %vm1246_vm2 = vweird.f32 %v4585_v20  ;;  %v1233_v40 = vsel %vm5383_vm3, %v5355_v57, %v1229_v25 }
  0xf6   : > { %4588 = vrcp.f32 %v5369_v21  ;;  %vm1247_vm6 = vmor %vm1245_vm4, %vm1246_vm2  ;;  %v1238_v49 = vsel %vm1235_vm5, %v1237_v46, %v1233_v40  ;;  %vm1260_vm9 = vweird.f32 %v5369_v21  ;;  %v1264_v14 = vand.u32 2147483647, %v5369_v21  ;;  %v4014_v40 = vld [vmem:[%s5162_s9 + $0x158] sm:$0xf] }
  0xf7   : > { %v1242_v26 = vsub.f32 1.0, %v1241_v23  ;;  %v1266_v15 = vand.u32 2147483648, %v5369_v21 }
  0xf8   : > { %v977_v27 = vpop.f32.mrf.mxu2  ;;  %v801_v32 = vpop.f32.mrf.mxu0  ;;  %vm1265_vm13 = vcmp.eq.f32.partialorder %v1264_v14, 8.507059e+37 }
  0xf9   : > { %v978_v31 = vadd.f32 %v977_v27, %v889_v22  ;;  %v890_v33 = vpop.f32.mrf.mxu1  ;;  %v1243_v34 = vmul.f32 %v4585_v20, %v1242_v26  ;;  %v802_v39 = vadd.f32 %v5249_v42, %v801_v32 }
  0xfb   : > { %v4587_v38 = vpop.eup %4586  ;;  %v4132_v35 = vmul.f32 -1.442695, %v978_v31  ;;  %v1244_v41 = vadd.f32 %v4585_v20, %v1243_v34  ;;  %v891_v57 = vadd.f32 %v890_v33, %v802_v39  ;;  %v1267_v31 = vor.u32 1.1754944e-38, %v1266_v15  ;;  %v4444_v33 = vld [vmem:[%s5162_s9 + $0x158] sm:$0xf0] }
  0xfc   : > { %v5393_v44 = vpop.eup %4588  ;;  %v5395_v45 = vadd.f32 1.0, %v4587_v38  ;;  %v4018_v15 = vld [vmem:[%s5162_s9 + $0x168] sm:$0xf] }
  0xfd   : > { %4590 = vpow2.f32 %v4132_v35  ;;  %v1248_v50 = vsel %vm1247_vm6, %v4585_v20, %v1244_v41  ;;  %v1256_v53 = vmul.f32 %v5393_v44, %v5369_v21  ;;  %vm1261_vm8 = vweird.f32 %v5393_v44  ;;  %v4445_v41 = vld [vmem:[%s5162_s9 + $0x160] sm:$0xf0] }
  0xfe   : > { %4592 = vrcp.f32 %v5395_v45  ;;  %v1253_v54 = vsel %vm1250_vm7, %v1252_v47, %v1248_v50  ;;  %v1281_v16 = vand.u32 2147483648, %v5395_v45  ;;  %v1279_v22 = vand.u32 2147483647, %v5395_v45  ;;  %vm5418_vm11 = vmor %vm1260_vm9, %vm1261_vm8 }
  0xff   : > { %v1647_v58 = vpack.c.bf16 %v1253_v54, %v1238_v49  ;;  %v1257_v59 = vsub.f32 1.0, %v1256_v53  ;;  %vm1275_vm12 = vweird.f32 %v5395_v45  ;;  %v4007_v47 = vor.u32 %v4444_v33, %v4006_v28  ;;  %v4448_v28 = vld [vmem:[%s5162_s9 + $0x178] sm:$0xf0] }
 0x100   : > { %v979_v60 = vpop.f32.mrf.mxu2  ;;  %v804_v0 = vpop.f32.mrf.mxu0  ;;  %v1282_v32 = vor.u32 1.1754944e-38, %v1281_v16  ;;  %vm1280_vm15 = vcmp.eq.f32.partialorder %v1279_v22, 8.507059e+37  ;;  %v4015_v53 = vor.u32 %v4445_v41, %v4014_v40  ;;  %v4447_v16 = vld [vmem:[%s5162_s9 + $0x170] sm:$0xf0]  ;;  %v4446_v22 = vld [vmem:[%s5162_s9 + $0x16c] sm:$0xf]  ;;  %v4395_v40 = vor.u32 %v4512_v37, %v4394_v36 }
 0x101   : > { %v980_v63 = vadd.f32 %v979_v60, %v891_v57  ;;  %1745 = vmatmul.bf16.gmra.mxu3 %v1647_v58  ;;  %v893_v1 = vpop.f32.mrf.mxu1  ;;  %v805_v3 = vadd.f32 %v5249_v42, %v804_v0  ;;  %v1258_v6 = vmul.f32 %v5393_v44, %v1257_v59 }
 0x102   : > { %3566 = vmatpush.bf16.msrb.mxu3 %v4395_v40 }
 0x103   : > { %v4591_v4 = vpop.eup %4590  ;;  %v4133_v5 = vmul.f32 -1.442695, %v980_v63  ;;  %843 = vmatmul.bf16.gmra.mxu0 %v3995_v61  ;;  %v894_v9 = vadd.f32 %v893_v1, %v805_v3  ;;  %v1259_v11 = vadd.f32 %v5393_v44, %v1258_v6  ;;  %v4483_v61 = vld [vmem:[%s7514_s2 + $0x50] sm:$0xff] }
 0x104   : > { %v4593_v7 = vpop.eup %4592  ;;  %v5407_v8 = vadd.f32 1.0, %v4591_v4  ;;  %932 = vmatmul.bf16.gmra.mxu1 %v3999_v62  ;;  %2512 = vmatpush.bf16.msrb.mxu0 %v4483_v61 }
 0x105   : > { %4594 = vpow2.f32 %v4133_v5  ;;  %1021 = vmatmul.bf16.gmra.mxu2 %v4003_v2  ;;  %v1271_v10 = vmul.f32 %v4593_v7, %v5395_v45  ;;  %vm1276_vm10 = vweird.f32 %v4593_v7  ;;  %v1263_v26 = vsel %vm5418_vm11, %v5393_v44, %v1259_v11 }
 0x106   : > { %4596 = vrcp.f32 %v5407_v8  ;;  %vm1277_vm14 = vmor %vm1275_vm12, %vm1276_vm10  ;;  %v1268_v35 = vsel %vm1265_vm13, %v1267_v31, %v1263_v26  ;;  %vm1290_vm1 = vweird.f32 %v5407_v8  ;;  %v1294_v1 = vand.u32 2147483647, %v5407_v8 }
 0x107   : > { %v1272_v12 = vsub.f32 1.0, %v1271_v10  ;;  %v1296_v2 = vand.u32 2147483648, %v5407_v8 }
 0x108   : > { %v982_v13 = vpop.f32.mrf.mxu2  ;;  %v806_v18 = vpop.f32.mrf.mxu0  ;;  %vm1295_vm5 = vcmp.eq.f32.partialorder %v1294_v1, 8.507059e+37 }
 0x109   : > { %v983_v17 = vadd.f32 %v982_v13, %v894_v9  ;;  %v895_v19 = vpop.f32.mrf.mxu1  ;;  %v1273_v20 = vmul.f32 %v4593_v7, %v1272_v12  ;;  %v807_v21 = vadd.f32 %v5249_v42, %v806_v18 }
 0x10b   : > { %v4595_v24 = vpop.eup %4594  ;;  %v4134_v25 = vmul.f32 -1.442695, %v983_v17  ;;  %v1274_v27 = vadd.f32 %v4593_v7, %v1273_v20  ;;  %v896_v43 = vadd.f32 %v895_v19, %v807_v21  ;;  %v1297_v19 = vor.u32 1.1754944e-38, %v1296_v2 }
 0x10c   : > { %v5428_v29 = vpop.eup %4596  ;;  %v5430_v30 = vadd.f32 1.0, %v4595_v24  ;;  %v4020_v24 = vld [vmem:[%s5162_s9 + $0x174] sm:$0xf0] }
 0x10d   : > { %4598 = vpow2.f32 %v4134_v25  ;;  %v1278_v34 = vsel %vm1277_vm14, %v4593_v7, %v1274_v27  ;;  %v1286_v38 = vmul.f32 %v5428_v29, %v5407_v8  ;;  %vm1291_vm0 = vweird.f32 %v5428_v29  ;;  %v4026_v25 = vld [vmem:[%s5162_s9 + $0x170] sm:$0xf] }
 0x10e   : > { %4600 = vrcp.f32 %v5430_v30  ;;  %v1283_v39 = vsel %vm1280_vm15, %v1282_v32, %v1278_v34  ;;  %v1311_v3 = vand.u32 2147483648, %v5430_v30  ;;  %v1309_v9 = vand.u32 2147483647, %v5430_v30  ;;  %vm5456_vm3 = vmor %vm1290_vm1, %vm1291_vm0 }
 0x10f   : > { %v1648_v44 = vpack.c.bf16 %v1283_v39, %v1268_v35  ;;  %v1287_v45 = vsub.f32 1.0, %v1286_v38  ;;  %vm1305_vm4 = vweird.f32 %v5430_v30  ;;  %v4019_v35 = vor.u32 %v4447_v16, %v4018_v15 }
 0x110   : > { %v984_v46 = vpop.f32.mrf.mxu2  ;;  %v809_v51 = vpop.f32.mrf.mxu0  ;;  %v1312_v20 = vor.u32 1.1754944e-38, %v1311_v3  ;;  %vm1310_vm7 = vcmp.eq.f32.partialorder %v1309_v9, 8.507059e+37  ;;  %v4023_v39 = vor.u32 %v4446_v22, %v4020_v24 }
 0x111   : > { %v985_v50 = vadd.f32 %v984_v46, %v896_v43  ;;  %1750 = vmatmul.bf16.gmra.mxu3 %v1648_v44  ;;  %v898_v52 = vpop.f32.mrf.mxu1  ;;  %v810_v49 = vadd.f32 %v5249_v42, %v809_v51  ;;  %v1288_v56 = vmul.f32 %v5428_v29, %v1287_v45  ;;  %v4027_v45 = vor.u32 %v4448_v28, %v4026_v25 }
 0x113   : > { %v4599_v54 = vpop.eup %4598  ;;  %v4135_v55 = vmul.f32 -1.442695, %v985_v50  ;;  %848 = vmatmul.bf16.gmra.mxu0 %v4007_v47  ;;  %v899_v59 = vadd.f32 %v898_v52, %v810_v49  ;;  %v1289_v62 = vadd.f32 %v5428_v29, %v1288_v56 }
 0x114   : > { %v4601_v57 = vpop.eup %4600  ;;  %v5442_v58 = vadd.f32 1.0, %v4599_v54  ;;  %937 = vmatmul.bf16.gmra.mxu1 %v4011_v48  ;;  %v4386_v54 = vld [vmem:[%s7516_s4 + $0xa8] sm:$0xf] }
 0x115   : > { %4602 = vpow2.f32 %v4135_v55  ;;  %1026 = vmatmul.bf16.gmra.mxu2 %v4015_v53  ;;  %v1301_v60 = vmul.f32 %v4601_v57, %v5430_v30  ;;  %vm1306_vm2 = vweird.f32 %v4601_v57  ;;  %v1293_v13 = vsel %vm5456_vm3, %v5428_v29, %v1289_v62  ;;  %v4510_v29 = vld [vmem:[%s7516_s4 + $0xac] sm:$0xf]  ;;  %v4388_v30 = vld [vmem:[%s7516_s4 + $0xb4] sm:$0xf0]  ;;  %v4511_v55 = vld [vmem:[%s7516_s4 + $0xb0] sm:$0xf0] }
 0x116   : > { %4604 = vrcp.f32 %v5442_v58  ;;  %vm1307_vm6 = vmor %vm1305_vm4, %vm1306_vm2  ;;  %v1298_v26 = vsel %vm1295_vm5, %v1297_v19, %v1293_v13  ;;  %v4391_v34 = vor.u32 %v4510_v29, %v4388_v30  ;;  %vm1320_vm9 = vweird.f32 %v5442_v58 }
 0x117   : > { %v1302_v63 = vsub.f32 1.0, %v1301_v60  ;;  %v1324_v61 = vand.u32 2147483647, %v5442_v58  ;;  %v1326_v62 = vand.u32 2147483648, %v5442_v58 }
 0x118   : > { %v987_v0 = vpop.f32.mrf.mxu2  ;;  %v811_v5 = vpop.f32.mrf.mxu0  ;;  %3477 = vmatpush.bf16.msrb.mxu2 %v4391_v34 }
 0x119   : > { %v988_v4 = vadd.f32 %v987_v0, %v899_v59  ;;  %v900_v6 = vpop.f32.mrf.mxu1  ;;  %v1303_v7 = vmul.f32 %v4601_v57, %v1302_v63  ;;  %v812_v12 = vadd.f32 %v5249_v42, %v811_v5  ;;  %v4387_v59 = vor.u32 %v4511_v55, %v4386_v54 }
 0x11a   : > { %vm1325_vm13 = vcmp.eq.f32.partialorder %v1324_v61, 8.507059e+37  ;;  %v4376_v61 = vld [vmem:[%s7516_s4 + $0x9c] sm:$0xf0] }
 0x11b   : > { %v4603_v8 = vpop.eup %4602  ;;  %v4136_v11 = vmul.f32 -1.442695, %v988_v4  ;;  %v1304_v14 = vadd.f32 %v4601_v57, %v1303_v7  ;;  %v901_v31 = vadd.f32 %v900_v6, %v812_v12  ;;  %3388 = vmatpush.bf16.msrb.mxu1 %v4387_v59  ;;  %v1327_v12 = vor.u32 1.1754944e-38, %v1326_v62 }
 0x11c   : > { %v5467_v17 = vpop.eup %4604  ;;  %v5469_v18 = vadd.f32 1.0, %v4603_v8 }
 0x11d   : > { %4606 = vpow2.f32 %v4136_v11  ;;  %v1308_v23 = vsel %vm1307_vm6, %v4601_v57, %v1304_v14  ;;  %v1316_v21 = vmul.f32 %v5467_v17, %v5442_v58  ;;  %vm1321_vm8 = vweird.f32 %v5467_v17 }
 0x11e   : > { %4608 = vrcp.f32 %v5469_v18  ;;  %v1313_v27 = vsel %vm1310_vm7, %v1312_v20, %v1308_v23  ;;  %v1341_v63 = vand.u32 2147483648, %v5469_v18  ;;  %v1339_v4 = vand.u32 2147483647, %v5469_v18  ;;  %vm5512_vm11 = vmor %vm1320_vm9, %vm1321_vm8 }
 0x11f   : > { %v1649_v32 = vpack.c.bf16 %v1313_v27, %v1298_v26  ;;  %v1317_v33 = vsub.f32 1.0, %v1316_v21  ;;  %vm1335_vm12 = vweird.f32 %v5469_v18 }
 0x120   : > { %v989_v38 = vpop.f32.mrf.mxu2  ;;  %v814_v43 = vpop.f32.mrf.mxu0  ;;  %v1342_v13 = vor.u32 1.1754944e-38, %v1341_v63  ;;  %vm1340_vm15 = vcmp.eq.f32.partialorder %v1339_v4, 8.507059e+37 }
 0x121   : > { %v990_v41 = vadd.f32 %v989_v38, %v901_v31  ;;  %1755 = vmatmul.bf16.gmra.mxu3 %v1649_v32  ;;  %v903_v44 = vpop.f32.mrf.mxu1  ;;  %v815_v46 = vadd.f32 %v5249_v42, %v814_v43  ;;  %v1318_v50 = vmul.f32 %v5467_v17, %v1317_v33  ;;  %v4482_v33 = vld [vmem:[%s7514_s2 + $0x48] sm:$0xff] }
 0x122   : > { %2513 = vmatpush.bf16.msrb.mxu0 %v4482_v33 }
 0x123   : > { %v4607_v47 = vpop.eup %4606  ;;  %v4137_v48 = vmul.f32 -1.442695, %v990_v41  ;;  %853 = vmatmul.bf16.gmra.mxu0 %v4019_v35  ;;  %v904_v53 = vadd.f32 %v903_v44, %v815_v46  ;;  %v1319_v56 = vadd.f32 %v5467_v17, %v1318_v50 }
 0x124   : > { %v4609_v51 = vpop.eup %4608  ;;  %v5493_v52 = vadd.f32 1.0, %v4607_v47  ;;  %942 = vmatmul.bf16.gmra.mxu1 %v4023_v39 }
 0x125   : > { %4610 = vpow2.f32 %v4137_v48  ;;  %1031 = vmatmul.bf16.gmra.mxu2 %v4027_v45  ;;  %v1331_v49 = vmul.f32 %v4609_v51, %v5469_v18  ;;  %vm1336_vm10 = vweird.f32 %v4609_v51  ;;  %v1323_v9 = vsel %vm5512_vm11, %v5467_v17, %v1319_v56 }
 0x126   : > { %4612 = vrcp.f32 %v5493_v52  ;;  %vm1337_vm14 = vmor %vm1335_vm12, %vm1336_vm10  ;;  %v1328_v16 = vsel %vm1325_vm13, %v1327_v12, %v1323_v9  ;;  %vm1350_vm1 = vweird.f32 %v5493_v52  ;;  %v1354_v38 = vand.u32 2147483647, %v5493_v52  ;;  %v5568_v9 = vld [vmem:[%s7515_s3] ss:$0 sm:$0xff] }
 0x127   : > { %v1332_v57 = vsub.f32 1.0, %v1331_v49  ;;  %v1356_v35 = vand.u32 2147483648, %v5493_v52 }
 0x128   : > { %v992_v60 = vpop.f32.mrf.mxu2  ;;  %v816_v1 = vpop.f32.mrf.mxu0  ;;  %vm1355_vm5 = vcmp.eq.f32.partialorder %v1354_v38, 8.507059e+37 }
 0x129   : > { %v993_v0 = vadd.f32 %v992_v60, %v904_v53  ;;  %v905_v2 = vpop.f32.mrf.mxu1  ;;  %v1333_v3 = vmul.f32 %v4609_v51, %v1332_v57  ;;  %v817_v7 = vadd.f32 %v5249_v42, %v816_v1  ;;  %v1357_v54 = vor.u32 1.1754944e-38, %v1356_v35  ;;  %v4507_v60 = vld [vmem:[%s7516_s4 + $0x94] sm:$0xf] }
 0x12a   : > { %v4379_v1 = vor.u32 %v4507_v60, %v4376_v61 }
 0x12b   : > { %v4611_v6 = vpop.eup %4610  ;;  %v4138_v58 = vmul.f32 -1.442695, %v993_v0  ;;  %v1334_v10 = vadd.f32 %v4609_v51, %v1333_v3  ;;  %v906_v19 = vadd.f32 %v905_v2, %v817_v7  ;;  %v4382_v2 = vld [vmem:[%s7516_s4 + $0x98] sm:$0xf]  ;;  %v4509_v3 = vld [vmem:[%s7516_s4 + $0xa0] sm:$0xf0] }
 0x12c   : > { %v5521_v8 = vpop.eup %4612  ;;  %v1146_v11 = vadd.f32 1.0, %v4611_v6  ;;  %v4383_v5 = vor.u32 %v4509_v3, %v4382_v2  ;;  %3478 = vmatpush.bf16.msrb.mxu2 %v4379_v1 }
 0x12d   : > { %4614 = vpow2.f32 %v4138_v58  ;;  %v1338_v14 = vsel %vm1337_vm14, %v4609_v51, %v1334_v10  ;;  %v1346_v15 = vmul.f32 %v5521_v8, %v5493_v52  ;;  %vm1351_vm0 = vweird.f32 %v5521_v8 }
 0x12e   : > { %4616 = vrcp.f32 %v1146_v11  ;;  %v1343_v18 = vsel %vm1340_vm15, %v1342_v13, %v1338_v14  ;;  %v1371_v39 = vand.u32 2147483648, %v1146_v11  ;;  %v1369_v45 = vand.u32 2147483647, %v1146_v11  ;;  %vm5538_vm3 = vmor %vm1350_vm1, %vm1351_vm0  ;;  %3567 = vmatpush.bf16.msrb.mxu3 %v4383_v5 }
 0x12f   : > { %v1650_v20 = vpack.c.bf16 %v1343_v18, %v1328_v16  ;;  %v1347_v17 = vsub.f32 1.0, %v1346_v15  ;;  %vm1365_vm4 = vweird.f32 %v1146_v11  ;;  %v4374_v18 = vld [vmem:[%s7516_s4 + $0x90] sm:$0xf] }
 0x130   : > { %v994_v22 = vpop.f32.mrf.mxu2  ;;  %v819_v24 = vpop.f32.mrf.mxu0  ;;  %v1372_v55 = vor.u32 1.1754944e-38, %v1371_v39  ;;  %vm1370_vm7 = vcmp.eq.f32.partialorder %v1369_v45, 8.507059e+37 }
 0x131   : > { %v995_v23 = vadd.f32 %v994_v22, %v906_v19  ;;  %1760 = vmatmul.bf16.gmra.mxu3 %v1650_v20  ;;  %v908_v25 = vpop.f32.mrf.mxu1  ;;  %v820_v21 = vadd.f32 %v5249_v42, %v819_v24  ;;  %v1348_v28 = vmul.f32 %v5521_v8, %v1347_v17  ;;  %v4508_v19 = vld [vmem:[%s7516_s4 + $0x98] sm:$0xf0] }
 0x132   : > { %v4375_v22 = vor.u32 %v4508_v19, %v4374_v18 }
 0x133   : > { %v4615_v26 = vpop.eup %4614  ;;  %v4139_v27 = vmul.f32 -1.442695, %v995_v23  ;;  %v909_v31 = vadd.f32 %v908_v25, %v820_v21  ;;  %v1349_v34 = vadd.f32 %v5521_v8, %v1348_v28 }
 0x134   : > { %v4617_v29 = vpop.eup %4616  ;;  %v5527_v30 = vadd.f32 1.0, %v4615_v26  ;;  %3389 = vmatpush.bf16.msrb.mxu1 %v4375_v22 }
 0x135   : > { %4618 = vpow2.f32 %v4139_v27  ;;  %v1361_v32 = vmul.f32 %v4617_v29, %v1146_v11  ;;  %vm1366_vm2 = vweird.f32 %v4617_v29  ;;  %v1353_v51 = vsel %vm5538_vm3, %v5521_v8, %v1349_v34 }
 0x136   : > { %4620 = vrcp.f32 %v5527_v30  ;;  %vm1367_vm6 = vmor %vm1365_vm4, %vm1366_vm2  ;;  %vm1380_vm9 = vweird.f32 %v5527_v30  ;;  %v1384_v24 = vand.u32 2147483647, %v5527_v30  ;;  %v1386_v25 = vand.u32 2147483648, %v5527_v30 }
 0x137   : > { %v1362_v36 = vsub.f32 1.0, %v1361_v32 }
 0x138   : > { %v997_v37 = vpop.f32.mrf.mxu2  ;;  %v821_v41 = vpop.f32.mrf.mxu0  ;;  %vm1385_vm13 = vcmp.eq.f32.partialorder %v1384_v24, 8.507059e+37  ;;  %v1387_v39 = vor.u32 1.1754944e-38, %v1386_v25 }
 0x139   : > { %v998_v40 = vadd.f32 %v997_v37, %v909_v31  ;;  %v910_v43 = vpop.f32.mrf.mxu1  ;;  %v1363_v44 = vmul.f32 %v4617_v29, %v1362_v36  ;;  %v822_v50 = vadd.f32 %v5249_v42, %v821_v41  ;;  %v1358_v42 = vsel %vm1355_vm5, %v1357_v54, %v1353_v51 }
 0x13b   : > { %v4619_v47 = vpop.eup %4618  ;;  %v4140_v48 = vmul.f32 -1.442695, %v998_v40  ;;  %v1364_v52 = vadd.f32 %v4617_v29, %v1363_v44  ;;  %v911_v62 = vadd.f32 %v910_v43, %v822_v50 }
 0x13c   : > { %v5546_v53 = vpop.eup %4620  ;;  %v5548_v49 = vadd.f32 1.0, %v4619_v47 }
 0x13d   : > { %4622 = vpow2.f32 %v4140_v48  ;;  %v1368_v56 = vsel %vm1367_vm6, %v4617_v29, %v1364_v52  ;;  %v1376_v57 = vmul.f32 %v5546_v53, %v5527_v30  ;;  %vm1381_vm8 = vweird.f32 %v5546_v53 }
 0x13e   : > { %4624 = vrcp.f32 %v5548_v49  ;;  %v1373_v59 = vsel %vm1370_vm7, %v1372_v55, %v1368_v56  ;;  %v1401_v21 = vand.u32 2147483648, %v5548_v49  ;;  %v1399_v31 = vand.u32 2147483647, %v5548_v49  ;;  %vm5591_vm11 = vmor %vm1380_vm9, %vm1381_vm8 }
 0x13f   : > { %v1651_v63 = vpack.c.bf16 %v1373_v59, %v1358_v42  ;;  %v1377_v0 = vsub.f32 1.0, %v1376_v57  ;;  %vm1395_vm12 = vweird.f32 %v5548_v49 }
 0x140   : > { %v999_v4 = vpop.f32.mrf.mxu2  ;;  %v824_v58 = vpop.f32.mrf.mxu0  ;;  %v1402_v40 = vor.u32 1.1754944e-38, %v1401_v21  ;;  %vm1400_vm15 = vcmp.eq.f32.partialorder %v1399_v31, 8.507059e+37 }
 0x141   : > { %v1000_v6 = vadd.f32 %v999_v4, %v911_v62  ;;  %1765 = vmatmul.bf16.gmra.mxu3 %v1651_v63  ;;  %v913_v7 = vpop.f32.mrf.mxu1  ;;  %v825_v10 = vadd.f32 %v5568_v9, %v824_v58  ;;  %v1378_v12 = vmul.f32 %v5546_v53, %v1377_v0 }
 0x143   : > { %v4623_v8 = vpop.eup %4622  ;;  %v4141_v11 = vmul.f32 -1.442695, %v1000_v6  ;;  %v914_v15 = vadd.f32 %v913_v7, %v825_v10  ;;  %v1379_v20 = vadd.f32 %v5546_v53, %v1378_v12 }
 0x144   : > { %v4625_v13 = vpop.eup %4624  ;;  %v5572_v14 = vadd.f32 1.0, %v4623_v8 }
 0x145   : > { %4626 = vpow2.f32 %v4141_v11  ;;  %v1391_v16 = vmul.f32 %v4625_v13, %v5548_v49  ;;  %vm1396_vm10 = vweird.f32 %v4625_v13  ;;  %v1383_v36 = vsel %vm5591_vm11, %v5546_v53, %v1379_v20 }
 0x146   : > { %4628 = vrcp.f32 %v5572_v14  ;;  %vm1397_vm14 = vmor %vm1395_vm12, %vm1396_vm10  ;;  %v1388_v44 = vsel %vm1385_vm13, %v1387_v39, %v1383_v36  ;;  %vm1410_vm1 = vweird.f32 %v5572_v14  ;;  %v1414_v0 = vand.u32 2147483647, %v5572_v14  ;;  %v4504_v36 = vld [vmem:[%s7516_s4 + $0x7c] sm:$0xf]  ;;  %v4364_v39 = vld [vmem:[%s7516_s4 + $0x84] sm:$0xf0] }
 0x147   : > { %v1392_v17 = vsub.f32 1.0, %v1391_v16  ;;  %v1416_v1 = vand.u32 2147483648, %v5572_v14 }
 0x148   : > { %v1002_v23 = vpop.f32.mrf.mxu2  ;;  %v826_v27 = vpop.f32.mrf.mxu0  ;;  %vm1415_vm5 = vcmp.eq.f32.partialorder %v1414_v0, 8.507059e+37 }
 0x149   : > { %v1003_v26 = vadd.f32 %v1002_v23, %v914_v15  ;;  %v915_v28 = vpop.f32.mrf.mxu1  ;;  %v1393_v29 = vmul.f32 %v4625_v13, %v1392_v17  ;;  %v827_v34 = vadd.f32 %v5568_v9, %v826_v27  ;;  %v1417_v16 = vor.u32 1.1754944e-38, %v1416_v1 }
 0x14b   : > { %v4627_v33 = vpop.eup %4626  ;;  %v4142_v30 = vmul.f32 -1.442695, %v1003_v26  ;;  %v1394_v37 = vadd.f32 %v4625_v13, %v1393_v29  ;;  %v916_v46 = vadd.f32 %v915_v28, %v827_v34  ;;  %v5632_v29 = vld [vmem:[%s7515_s3 + $0x1] ss:$0 sm:$0xff] }
 0x14c   : > { %v5600_v38 = vpop.eup %4628  ;;  %v1150_v35 = vadd.f32 1.0, %v4627_v33 }
 0x14d   : > { %4630 = vpow2.f32 %v4142_v30  ;;  %v1398_v41 = vsel %vm1397_vm14, %v4625_v13, %v1394_v37  ;;  %v1406_v43 = vmul.f32 %v5600_v38, %v5572_v14  ;;  %vm1411_vm0 = vweird.f32 %v5600_v38  ;;  %v4481_v30 = vld [vmem:[%s7514_s2 + $0x40] sm:$0xff] }
 0x14e   : > { %4632 = vrcp.f32 %v1150_v35  ;;  %v1403_v45 = vsel %vm1400_vm15, %v1402_v40, %v1398_v41  ;;  %v1431_v2 = vand.u32 2147483648, %v1150_v35  ;;  %v1429_v58 = vand.u32 2147483647, %v1150_v35  ;;  %vm5614_vm3 = vmor %vm1410_vm1, %vm1411_vm0  ;;  %v4370_v40 = vld [vmem:[%s7516_s4 + $0x80] sm:$0xf]  ;;  %2514 = vmatpush.bf16.msrb.mxu0 %v4481_v30 }
 0x14f   : > { %v1652_v47 = vpack.c.bf16 %v1403_v45, %v1388_v44  ;;  %v1407_v48 = vsub.f32 1.0, %v1406_v43  ;;  %vm1425_vm4 = vweird.f32 %v1150_v35  ;;  %v4506_v45 = vld [vmem:[%s7516_s4 + $0x88] sm:$0xf0] }
 0x150   : > { %v1004_v50 = vpop.f32.mrf.mxu2  ;;  %v829_v52 = vpop.f32.mrf.mxu0  ;;  %v1432_v18 = vor.u32 1.1754944e-38, %v1431_v2  ;;  %vm1430_vm7 = vcmp.eq.f32.partialorder %v1429_v58, 8.507059e+37 }
 0x151   : > { %v1005_v51 = vadd.f32 %v1004_v50, %v916_v46  ;;  %1770 = vmatmul.bf16.gmra.mxu3 %v1652_v47  ;;  %v918_v53 = vpop.f32.mrf.mxu1  ;;  %v830_v49 = vadd.f32 %v5568_v9, %v829_v52  ;;  %v1408_v56 = vmul.f32 %v5600_v38, %v1407_v48  ;;  %v4367_v47 = vor.u32 %v4504_v36, %v4364_v39 }
 0x152   : > { %v4371_v52 = vor.u32 %v4506_v45, %v4370_v40 }
 0x153   : > { %v4631_v54 = vpop.eup %4630  ;;  %v4143_v55 = vmul.f32 -1.442695, %v1005_v51  ;;  %v919_v59 = vadd.f32 %v918_v53, %v830_v49  ;;  %v1409_v61 = vadd.f32 %v5600_v38, %v1408_v56  ;;  %3479 = vmatpush.bf16.msrb.mxu2 %v4367_v47 }
 0x154   : > { %v4633_v57 = vpop.eup %4632  ;;  %v5606_v42 = vadd.f32 1.0, %v4631_v54  ;;  %3568 = vmatpush.bf16.msrb.mxu3 %v4371_v52 }
 0x155   : > { %4634 = vpow2.f32 %v4143_v55  ;;  %v1421_v60 = vmul.f32 %v4633_v57, %v1150_v35  ;;  %vm1426_vm2 = vweird.f32 %v4633_v57  ;;  %v1413_v12 = vsel %vm5614_vm3, %v5600_v38, %v1409_v61 }
 0x156   : > { %4636 = vrcp.f32 %v5606_v42  ;;  %vm1427_vm6 = vmor %vm1425_vm4, %vm1426_vm2  ;;  %v1418_v17 = vsel %vm1415_vm5, %v1417_v16, %v1413_v12  ;;  %v1444_v46 = vand.u32 2147483647, %v5606_v42  ;;  %vm1440_vm9 = vweird.f32 %v5606_v42 }
 0x157   : > { %v1422_v62 = vsub.f32 1.0, %v1421_v60  ;;  %v1446_v49 = vand.u32 2147483648, %v5606_v42 }
 0x158   : > { %v1007_v63 = vpop.f32.mrf.mxu2  ;;  %v831_v4 = vpop.f32.mrf.mxu0  ;;  %vm5669_vm12 = vcmp.eq.f32.partialorder %v1444_v46, 8.507059e+37 }
 0x159   : > { %v1008_v3 = vadd.f32 %v1007_v63, %v919_v59  ;;  %v920_v5 = vpop.f32.mrf.mxu1  ;;  %v1423_v6 = vmul.f32 %v4633_v57, %v1422_v62  ;;  %v832_v11 = vadd.f32 %v5568_v9, %v831_v4 }
 0x15b   : > { %v4635_v10 = vpop.eup %4634  ;;  %v4144_v8 = vmul.f32 -1.442695, %v1008_v3  ;;  %v1424_v13 = vadd.f32 %v4633_v57, %v1423_v6  ;;  %v921_v23 = vadd.f32 %v920_v5, %v832_v11  ;;  %v1447_v6 = vor.u32 1.1754944e-38, %v1446_v49  ;;  %v4505_v11 = vld [vmem:[%s7516_s4 + $0x80] sm:$0xf0] }
 0x15c   : > { %v5622_v14 = vpop.eup %4636  ;;  %v5624_v15 = vadd.f32 1.0, %v4635_v10 }
 0x15d   : > { %4638 = vpow2.f32 %v4144_v8  ;;  %v1428_v19 = vsel %vm1427_vm6, %v4633_v57, %v1424_v13  ;;  %v1436_v20 = vmul.f32 %v5622_v14, %v5606_v42  ;;  %vm1441_vm8 = vweird.f32 %v5622_v14  ;;  %v4362_v8 = vld [vmem:[%s7516_s4 + $0x78] sm:$0xf] }
 0x15e   : > { %4640 = vrcp.f32 %v5624_v15  ;;  %v1433_v22 = vsel %vm1430_vm7, %v1432_v18, %v1428_v19  ;;  %v1459_v54 = vand.u32 2147483647, %v5624_v15  ;;  %v1461_v55 = vand.u32 2147483648, %v5624_v15  ;;  %vm5665_vm11 = vmor %vm1440_vm9, %vm1441_vm8 }
 0x15f   : > { %v1653_v24 = vpack.c.bf16 %v1433_v22, %v1418_v17  ;;  %v1437_v25 = vsub.f32 1.0, %v1436_v20  ;;  %vm1455_vm13 = vweird.f32 %v5624_v15 }
 0x160   : > { %v1009_v21 = vpop.f32.mrf.mxu2  ;;  %v834_v27 = vpop.f32.mrf.mxu0  ;;  %vm1460_vm15 = vcmp.eq.f32.partialorder %v1459_v54, 8.507059e+37  ;;  %v1462_v58 = vor.u32 1.1754944e-38, %v1461_v55 }
 0x161   : > { %v1010_v26 = vadd.f32 %v1009_v21, %v921_v23  ;;  %1775 = vmatmul.bf16.gmra.mxu3 %v1653_v24  ;;  %v923_v28 = vpop.f32.mrf.mxu1  ;;  %v835_v31 = vadd.f32 %v5568_v9, %v834_v27  ;;  %v1438_v34 = vmul.f32 %v5622_v14, %v1437_v25 }
 0x163   : > { %v4639_v32 = vpop.eup %4638  ;;  %v4145_v33 = vmul.f32 -1.442695, %v1010_v26  ;;  %v924_v41 = vadd.f32 %v923_v28, %v835_v31  ;;  %v1439_v50 = vadd.f32 %v5622_v14, %v1438_v34 }
 0x164   : > { %v4641_v37 = vpop.eup %4640  ;;  %v5642_v38 = vadd.f32 1.0, %v4639_v32  ;;  %v1736_v35 = vpop.f32.mrf.mxu3 }
 0x165   : > { %4642 = vpow2.f32 %v4145_v33  ;;  %v1737_v43 = vadd.f32 %v5632_v29, %v1736_v35  ;;  %v1451_v44 = vmul.f32 %v4641_v37, %v5624_v15  ;;  %vm1456_vm10 = vweird.f32 %v4641_v37 }
 0x166   : > { %4644 = vrcp.f32 %v5642_v38  ;;  %v1443_v1 = vsel %vm5665_vm11, %v5622_v14, %v1439_v50  ;;  %vm1457_vm14 = vmor %vm1455_vm13, %vm1456_vm10  ;;  %v4363_v15 = vor.u32 %v4505_v11, %v4362_v8  ;;  %v1474_v24 = vand.u32 2147483647, %v5642_v38 }
 0x167   : > { %v4188_v48 = vmul.f32 -1.442695, %v1737_v43  ;;  %v1452_v51 = vsub.f32 1.0, %v1451_v44  ;;  %v1448_v13 = vsel %vm5669_vm12, %v1447_v6, %v1443_v1  ;;  %v1476_v25 = vand.u32 2147483648, %v5642_v38 }
 0x168   : > { %v1012_v53 = vpop.f32.mrf.mxu2  ;;  %v836_v57 = vpop.f32.mrf.mxu0  ;;  %3390 = vmatpush.bf16.msrb.mxu1 %v4363_v15  ;;  %vm1470_vm1 = vweird.f32 %v5642_v38  ;;  %vm5708_vm2 = vcmp.eq.f32.partialorder %v1474_v24, 8.507059e+37 }
 0x169   : > { %4646 = vpow2.f32 %v4188_v48  ;;  %v1013_v56 = vadd.f32 %v1012_v53, %v924_v41  ;;  %v925_v59 = vpop.f32.mrf.mxu1  ;;  %v1453_v60 = vmul.f32 %v4641_v37, %v1452_v51  ;;  %v837_v0 = vadd.f32 %v5568_v9, %v836_v57 }
 0x16a   : > { %v1477_v41 = vor.u32 1.1754944e-38, %v1476_v25 }
 0x16b   : > { %v4643_v62 = vpop.eup %4642  ;;  %v4146_v63 = vmul.f32 -1.442695, %v1013_v56  ;;  %v1454_v2 = vadd.f32 %v4641_v37, %v1453_v60  ;;  %v926_v18 = vadd.f32 %v925_v59, %v837_v0 }
 0x16c   : > { %v5678_v3 = vpop.eup %4644  ;;  %v5680_v4 = vadd.f32 1.0, %v4643_v62  ;;  %v1738_v5 = vpop.f32.mrf.mxu3 }
 0x16d   : > { %4648 = vpow2.f32 %v4146_v63  ;;  %v1739_v7 = vadd.f32 %v5632_v29, %v1738_v5  ;;  %v1458_v10 = vsel %vm1457_vm14, %v4641_v37, %v1454_v2  ;;  %v1466_v12 = vmul.f32 %v5678_v3, %v5642_v38 }
 0x16e   : > { %4650 = vrcp.f32 %v5680_v4  ;;  %v1463_v14 = vsel %vm1460_vm15, %v1462_v58, %v1458_v10  ;;  %v1489_v32 = vand.u32 2147483647, %v5680_v4  ;;  %vm1471_vm0 = vweird.f32 %v5678_v3 }
 0x16f   : > { %v4647_v16 = vpop.eup %4646  ;;  %v4189_v19 = vmul.f32 -1.442695, %v1739_v7  ;;  %v1654_v20 = vpack.c.bf16 %v1463_v14, %v1448_v13  ;;  %v1467_v17 = vsub.f32 1.0, %v1466_v12  ;;  %v1491_v36 = vand.u32 2147483648, %v5680_v4  ;;  %vm5715_vm3 = vmor %vm1470_vm1, %vm1471_vm0 }
 0x170   : > { %v5694_v22 = vadd.f32 1.0, %v4647_v16  ;;  %v1014_v23 = vpop.f32.mrf.mxu2  ;;  %v839_v26 = vpop.f32.mrf.mxu0  ;;  %vm1485_vm4 = vweird.f32 %v5680_v4  ;;  %vm5720_vm5 = vcmp.eq.f32.partialorder %v1489_v32, 8.507059e+37 }
 0x171   : > { %4652 = vpow2.f32 %v4189_v19  ;;  %v1015_v21 = vadd.f32 %v1014_v23, %v926_v18  ;;  %1780 = vmatmul.bf16.gmra.mxu3 %v1654_v20  ;;  %v928_v27 = vpop.f32.mrf.mxu1  ;;  %v1468_v28 = vmul.f32 %v5678_v3, %v1467_v17  ;;  %v840_v31 = vadd.f32 %v5568_v9, %v839_v26 }
 0x172   : > { %4654 = vrcp.f32 %v5694_v22  ;;  %v1955_v47 = vand.u32 2147483648, %v5694_v22  ;;  %v1492_v53 = vor.u32 1.1754944e-38, %v1491_v36  ;;  %vm1949_vm7 = vweird.f32 %v5694_v22 }
 0x173   : > { %v4649_v33 = vpop.eup %4648  ;;  %v4147_v30 = vmul.f32 -1.442695, %v1015_v21  ;;  %v1469_v34 = vadd.f32 %v5678_v3, %v1468_v28  ;;  %v929_v43 = vadd.f32 %v928_v27, %v840_v31  ;;  %v1953_v56 = vand.u32 2147483647, %v5694_v22 }
 0x174   : > { %v4651_v37 = vpop.eup %4650  ;;  %v5705_v35 = vadd.f32 1.0, %v4649_v33  ;;  %v1741_v39 = vpop.f32.mrf.mxu3  ;;  %v5740_v0 = vor.u32 1.1754944e-38, %v1955_v47 }
 0x175   : > { %4656 = vpow2.f32 %v4147_v30  ;;  %v1742_v44 = vadd.f32 %v5632_v29, %v1741_v39  ;;  %v1481_v45 = vmul.f32 %v4651_v37, %v5680_v4  ;;  %v1473_v51 = vsel %vm5715_vm3, %v5678_v3, %v1469_v34  ;;  %v4352_v39 = vld [vmem:[%s7516_s4 + $0x6c] sm:$0xf0] }
 0x176   : > { %4658 = vrcp.f32 %v5705_v35  ;;  %vm1486_vm6 = vweird.f32 %v4651_v37  ;;  %v1478_v63 = vsel %vm5708_vm2, %v1477_v41, %v1473_v51  ;;  %v1504_v6 = vand.u32 2147483647, %v5705_v35 }
 0x177   : > { %v4653_v48 = vpop.eup %4652  ;;  %v4190_v50 = vmul.f32 -1.442695, %v1742_v44  ;;  %v1482_v52 = vsub.f32 1.0, %v1481_v45  ;;  %vm1487_vm8 = vmor %vm1485_vm4, %vm1486_vm6  ;;  %v1506_v12 = vand.u32 2147483648, %v5705_v35  ;;  %vm5755_vm9 = vcmp.eq.f32.partialorder %v1953_v56, 8.507059e+37 }
 0x178   : > { %v5728_v49 = vpop.eup %4654  ;;  %v5730_v54 = vadd.f32 1.0, %v4653_v48  ;;  %v1017_v55 = vpop.f32.mrf.mxu2  ;;  %vm1500_vm12 = vweird.f32 %v5705_v35  ;;  %vm5803_vm1 = vcmp.eq.f32.partialorder %v1504_v6, 8.507059e+37 }
 0x179   : > { %v1945_v57 = vmul.f32 %v5728_v49, %v5694_v22  ;;  %4660 = vpow2.f32 %v4190_v50  ;;  %v1018_v59 = vadd.f32 %v1017_v55, %v929_v43  ;;  %v841_v60 = vpop.f32.mrf.mxu0  ;;  %v930_v61 = vpop.f32.mrf.mxu1  ;;  %v1483_v42 = vmul.f32 %v4651_v37, %v1482_v52 }
 0x17a   : > { %4662 = vrcp.f32 %v5730_v54  ;;  %v842_v62 = vadd.f32 %v5568_v9, %v841_v60  ;;  %v1968_v8 = vand.u32 2147483647, %v5730_v54  ;;  %v1970_v11 = vand.u32 2147483648, %v5730_v54 }
 0x17b   : > { %v4657_v1 = vpop.eup %4656  ;;  %v1946_v2 = vsub.f32 1.0, %v1945_v57  ;;  %v4148_v3 = vmul.f32 -1.442695, %v1018_v59  ;;  %v1484_v5 = vadd.f32 %v4651_v37, %v1483_v42  ;;  %vm1950_vm10 = vweird.f32 %v5728_v49  ;;  %v4358_v57 = vld [vmem:[%s7516_s4 + $0x68] sm:$0xf] }
 0x17c   : > { %v5743_v58 = vpop.eup %4658  ;;  %v5745_v7 = vadd.f32 1.0, %v4657_v1  ;;  %v1743_v10 = vpop.f32.mrf.mxu3  ;;  %v931_v4 = vadd.f32 %v930_v61, %v842_v62  ;;  %vm1964_vm11 = vweird.f32 %v5730_v54  ;;  %v5771_v27 = vor.u32 1.1754944e-38, %v1970_v11  ;;  %vm5781_vm14 = vmor %vm1949_vm7, %vm1950_vm10  ;;  %v4503_v59 = vld [vmem:[%s7516_s4 + $0x70] sm:$0xf0] }
 0x17d   : > { %4664 = vpow2.f32 %v4148_v3  ;;  %v1744_v13 = vadd.f32 %v5632_v29, %v1743_v10  ;;  %v1488_v14 = vsel %vm1487_vm8, %v4651_v37, %v1484_v5  ;;  %v1947_v15 = vmul.f32 %v5728_v49, %v1946_v2  ;;  %v4501_v37 = vld [vmem:[%s7516_s4 + $0x64] sm:$0xf] }
 0x17e   : > { %4666 = vrcp.f32 %v5745_v7  ;;  %v1493_v18 = vsel %vm5720_vm5, %v1492_v53, %v1488_v14  ;;  %v1496_v24 = vmul.f32 %v5743_v58, %v5705_v35  ;;  %vm1501_vm13 = vweird.f32 %v5743_v58 }
 0x17f   : > { %v4661_v19 = vpop.eup %4660  ;;  %v4191_v20 = vmul.f32 -1.442695, %v1744_v13  ;;  %v1655_v17 = vpack.c.bf16 %v1493_v18, %v1478_v63  ;;  %v1948_v23 = vadd.f32 %v5728_v49, %v1947_v15  ;;  %vm5785_vm15 = vcmp.eq.f32.partialorder %v1968_v8, 8.507059e+37  ;;  %vm5851_vm6 = vmor %vm1500_vm12, %vm1501_vm13 }
 0x180   : > { %v5766_v25 = vpop.eup %4662  ;;  %v5768_v21 = vadd.f32 1.0, %v4661_v19  ;;  %v1019_v26 = vpop.f32.mrf.mxu2  ;;  %v5789_v36 = vor.u32 1.1754944e-38, %v1506_v12  ;;  %v1497_v45 = vsub.f32 1.0, %v1496_v24  ;;  %v1519_v38 = vand.u32 2147483647, %v5745_v7 }
 0x181   : > { %v1960_v28 = vmul.f32 %v5766_v25, %v5730_v54  ;;  %4668 = vpow2.f32 %v4191_v20  ;;  %v1020_v31 = vadd.f32 %v1019_v26, %v931_v4  ;;  %1785 = vmatmul.bf16.gmra.mxu3 %v1655_v17  ;;  %v844_v32 = vpop.f32.mrf.mxu0  ;;  %v933_v33 = vpop.f32.mrf.mxu1  ;;  %v1952_v40 = vsel %vm5781_vm14, %v5728_v49, %v1948_v23 }
 0x182   : > { %4670 = vrcp.f32 %v5768_v21  ;;  %v845_v22 = vadd.f32 %v5568_v9, %v844_v32  ;;  %vm1965_vm0 = vweird.f32 %v5766_v25  ;;  %v1521_v52 = vand.u32 2147483648, %v5745_v7  ;;  %v4350_v32 = vld [vmem:[%s7516_s4 + $0x60] sm:$0xf] }
 0x183   : > { %v4665_v41 = vpop.eup %4664  ;;  %v1961_v43 = vsub.f32 1.0, %v1960_v28  ;;  %v4149_v44 = vmul.f32 -1.442695, %v1020_v31  ;;  %v4355_v53 = vor.u32 %v4501_v37, %v4352_v39  ;;  %v1498_v56 = vmul.f32 %v5743_v58, %v1497_v45  ;;  %vm1966_vm5 = vmor %vm1964_vm11, %vm1965_vm0 }
 0x184   : > { %v5808_v47 = vpop.eup %4666  ;;  %v5810_v48 = vadd.f32 1.0, %v4665_v41  ;;  %v934_v50 = vadd.f32 %v933_v33, %v845_v22  ;;  %v1746_v51 = vpop.f32.mrf.mxu3  ;;  %vm1515_vm2 = vweird.f32 %v5745_v7  ;;  %v1957_v60 = vsel %vm5755_vm9, %v5740_v0, %v1952_v40  ;;  %v4502_v33 = vld [vmem:[%s7516_s4 + $0x68] sm:$0xf0] }
 0x185   : > { %4672 = vpow2.f32 %v4149_v44  ;;  %v1747_v49 = vadd.f32 %v5632_v29, %v1746_v51  ;;  %v1962_v55 = vmul.f32 %v5766_v25, %v1961_v43  ;;  %v1511_v61 = vmul.f32 %v5808_v47, %v5745_v7  ;;  %3480 = vmatpush.bf16.msrb.mxu2 %v4355_v53 }
 0x186   : > { %4674 = vrcp.f32 %v5810_v48  ;;  %vm1516_vm3 = vweird.f32 %v5808_v47  ;;  %v1499_v1 = vadd.f32 %v5743_v58, %v1498_v56  ;;  %vm5832_vm4 = vcmp.eq.f32.partialorder %v1519_v38, 8.507059e+37 }
 0x187   : > { %v4669_v42 = vpop.eup %4668  ;;  %v4192_v62 = vmul.f32 -1.442695, %v1747_v49  ;;  %v1963_v63 = vadd.f32 %v5766_v25, %v1962_v55  ;;  %v1512_v6 = vsub.f32 1.0, %v1511_v61  ;;  %v1522_v10 = vor.u32 1.1754944e-38, %v1521_v52  ;;  %vm1517_vm9 = vmor %vm1515_vm2, %vm1516_vm3 }
 0x188   : > { %v5836_v3 = vpop.eup %4670  ;;  %v5838_v5 = vadd.f32 1.0, %v4669_v42  ;;  %v1022_v0 = vpop.f32.mrf.mxu2  ;;  %v4359_v8 = vor.u32 %v4503_v59, %v4358_v57  ;;  %v1503_v18 = vsel %vm5851_vm6, %v5743_v58, %v1499_v1  ;;  %vm1979_vm7 = vweird.f32 %v5768_v21 }
 0x189   : > { %v1975_v11 = vmul.f32 %v5836_v3, %v5768_v21  ;;  %4676 = vpow2.f32 %v4192_v62  ;;  %v1023_v12 = vadd.f32 %v1022_v0, %v934_v50  ;;  %v846_v13 = vpop.f32.mrf.mxu0  ;;  %v935_v14 = vpop.f32.mrf.mxu1  ;;  %v1967_v15 = vsel %vm1966_vm5, %v5766_v25, %v1963_v63 }
 0x18a   : > { %4678 = vrcp.f32 %v5838_v5  ;;  %v847_v54 = vadd.f32 %v5568_v9, %v846_v13  ;;  %v1972_v4 = vsel %vm5785_vm15, %v5771_v27, %v1967_v15  ;;  %3569 = vmatpush.bf16.msrb.mxu3 %v4359_v8  ;;  %v1513_v17 = vmul.f32 %v5808_v47, %v1512_v6 }
 0x18b   : > { %v4673_v19 = vpop.eup %4672  ;;  %v4150_v20 = vmul.f32 -1.442695, %v1023_v12  ;;  %v2424_v35 = vpack.c.bf16 %v1972_v4, %v1957_v60  ;;  %v1508_v27 = vsel %vm5803_vm1, %v5789_v36, %v1503_v18  ;;  %v1976_v28 = vsub.f32 1.0, %v1975_v11 }
 0x18c   : > { %v5865_v23 = vpop.eup %4674  ;;  %v5867_v24 = vadd.f32 1.0, %v4673_v19  ;;  %v936_v25 = vadd.f32 %v935_v14, %v847_v54  ;;  %v1748_v26 = vpop.f32.mrf.mxu3  ;;  %v1514_v31 = vadd.f32 %v5808_v47, %v1513_v17  ;;  %vm1980_vm8 = vweird.f32 %v5836_v3 }
 0x18d   : > { %4680 = vpow2.f32 %v4150_v20  ;;  %v1749_v58 = vadd.f32 %v5632_v29, %v1748_v26  ;;  %2515 = vmatmul.bf16.vlgmr.msrb.gmra.mxu0 %v2424_v35  ;;  %v1526_v30 = vmul.f32 %v5865_v23, %v5810_v48  ;;  %v4351_v34 = vor.u32 %v4502_v33, %v4350_v32  ;;  %vm1981_vm11 = vmor %vm1979_vm7, %vm1980_vm8 }
 0x18e   : > { %v1977_v36 = vmul.f32 %v5836_v3, %v1976_v28  ;;  %v1983_v37 = vand.u32 2147483647, %v5768_v21  ;;  %4682 = vrcp.f32 %v5867_v24  ;;  %v1518_v40 = vsel %vm1517_vm9, %v5808_v47, %v1514_v31 }
 0x18f   : > { %v4677_v39 = vpop.eup %4676  ;;  %v4193_v22 = vmul.f32 -1.442695, %v1749_v58  ;;  %v1985_v41 = vand.u32 2147483648, %v5768_v21  ;;  %v1523_v7 = vsel %vm5832_vm4, %v1522_v10, %v1518_v40  ;;  %3391 = vmatpush.bf16.msrb.mxu1 %v4351_v34  ;;  %vm1994_vm12 = vweird.f32 %v5838_v5 }
 0x190   : > { %v5892_v43 = vpop.eup %4678  ;;  %v5894_v44 = vadd.f32 1.0, %v4677_v39  ;;  %v1024_v45 = vpop.f32.mrf.mxu2  ;;  %v1978_v46 = vadd.f32 %v5836_v3, %v1977_v36  ;;  %vm1984_vm10 = vcmp.eq.f32.partialorder %v1983_v37, 8.507059e+37  ;;  %v1656_v50 = vpack.c.bf16 %v1523_v7, %v1508_v27 }
 0x191   : > { %4684 = vpow2.f32 %v4193_v22  ;;  %v1025_v38 = vadd.f32 %v1024_v45, %v936_v25  ;;  %v849_v51 = vpop.f32.mrf.mxu0  ;;  %v938_v52 = vpop.f32.mrf.mxu1  ;;  %v1986_v47 = vor.u32 1.1754944e-38, %v1985_v41  ;;  %v1990_v55 = vmul.f32 %v5892_v43, %v5838_v5 }
 0x192   : > { %4686 = vrcp.f32 %v5894_v44  ;;  %v850_v53 = vadd.f32 %v5568_v9, %v849_v51  ;;  %v1982_v49 = vsel %vm1981_vm11, %v5836_v3, %v1978_v46  ;;  %1790 = vmatmul.bf16.gmra.mxu3 %v1656_v50  ;;  %v1998_v60 = vand.u32 2147483647, %v5838_v5 }
 0x193   : > { %v4681_v56 = vpop.eup %4680  ;;  %v4151_v57 = vmul.f32 -1.442695, %v1025_v38  ;;  %v1987_v59 = vsel %vm1984_vm10, %v1986_v47, %v1982_v49  ;;  %v1991_v42 = vsub.f32 1.0, %v1990_v55  ;;  %vm1995_vm13 = vweird.f32 %v5892_v43 }
 0x194   : > { %v5910_v21 = vadd.f32 1.0, %v4681_v56  ;;  %v1751_v61 = vpop.f32.mrf.mxu3  ;;  %v2000_v62 = vand.u32 2147483648, %v5838_v5  ;;  %v5914_v63 = vpop.eup %4682  ;;  %v939_v1 = vadd.f32 %v938_v52, %v850_v53  ;;  %v1527_v3 = vsub.f32 1.0, %v1526_v30  ;;  %vm1996_vm0 = vmor %vm1994_vm12, %vm1995_vm13 }
 0x195   : > { %4688 = vpow2.f32 %v4151_v57  ;;  %v1752_v2 = vadd.f32 %v5632_v29, %v1751_v61  ;;  %v1992_v0 = vmul.f32 %v5892_v43, %v1991_v42  ;;  %vm5919_vm14 = vcmp.eq.f32.partialorder %v1998_v60, 8.507059e+37 }
 0x196   : > { %4690 = vrcp.f32 %v5910_v21  ;;  %v2001_v10 = vor.u32 1.1754944e-38, %v2000_v62  ;;  %v1528_v12 = vmul.f32 %v5865_v23, %v1527_v3  ;;  %vm1531_vm15 = vweird.f32 %v5865_v23 }
 0x197   : > { %v4685_v8 = vpop.eup %4684  ;;  %v4194_v11 = vmul.f32 -1.442695, %v1752_v2  ;;  %v1534_v13 = vand.u32 2147483647, %v5810_v48  ;;  %v1993_v54 = vadd.f32 %v5892_v43, %v1992_v0  ;;  %v1536_v4 = vand.u32 2147483648, %v5810_v48 }
 0x198   : > { %v5926_v14 = vpop.eup %4686  ;;  %v5928_v15 = vadd.f32 1.0, %v4685_v8  ;;  %v1027_v16 = vpop.f32.mrf.mxu2  ;;  %v1541_v18 = vmul.f32 %v5914_v63, %v5867_v24  ;;  %v1529_v17 = vadd.f32 %v5865_v23, %v1528_v12  ;;  %vm1530_vm1 = vweird.f32 %v5810_v48 }
 0x199   : > { %4692 = vpow2.f32 %v4194_v11  ;;  %v1028_v19 = vadd.f32 %v1027_v16, %v939_v1  ;;  %v851_v20 = vpop.f32.mrf.mxu0  ;;  %v940_v35 = vpop.f32.mrf.mxu1  ;;  %v2005_v25 = vmul.f32 %v5926_v14, %v5894_v44  ;;  %v1997_v27 = vsel %vm1996_vm0, %v5892_v43, %v1993_v54  ;;  %vm5947_vm2 = vmor %vm1530_vm1, %vm1531_vm15 }
 0x19a   : > { %4694 = vrcp.f32 %v5928_v15  ;;  %v852_v26 = vadd.f32 %v5568_v9, %v851_v20  ;;  %v2002_v48 = vsel %vm5919_vm14, %v2001_v10, %v1997_v27  ;;  %v1533_v31 = vsel %vm5947_vm2, %v5865_v23, %v1529_v17 }
 0x19b   : > { %v4689_v5 = vpop.eup %4688  ;;  %v4152_v58 = vmul.f32 -1.442695, %v1028_v19  ;;  %vm1535_vm3 = vcmp.eq.f32.partialorder %v1534_v13, 8.507059e+37  ;;  %v2425_v34 = vpack.c.bf16 %v2002_v48, %v1987_v59  ;;  %v1537_v36 = vor.u32 1.1754944e-38, %v1536_v4 }
 0x19c   : > { %v5956_v32 = vpop.eup %4690  ;;  %v5958_v33 = vadd.f32 1.0, %v4689_v5  ;;  %v1753_v30 = vpop.f32.mrf.mxu3  ;;  %v1542_v37 = vsub.f32 1.0, %v1541_v18  ;;  %v941_v22 = vadd.f32 %v940_v35, %v852_v26  ;;  %vm1546_vm4 = vweird.f32 %v5914_v63 }
 0x19d   : > { %v5962_v39 = vmul.f32 %v5956_v32, %v5910_v21  ;;  %4696 = vpow2.f32 %v4152_v58  ;;  %v1754_v40 = vadd.f32 %v5632_v29, %v1753_v30  ;;  %2520 = vmatmul.bf16.gmra.mxu0 %v2425_v34  ;;  %v1538_v23 = vsel %vm1535_vm3, %v1537_v36, %v1533_v31 }
 0x19e   : > { %4698 = vrcp.f32 %v5958_v33  ;;  %v1543_v41 = vmul.f32 %v5914_v63, %v1542_v37  ;;  %v1549_v7 = vand.u32 2147483647, %v5867_v24  ;;  %v1551_v46 = vand.u32 2147483648, %v5867_v24 }
 0x19f   : > { %v4693_v43 = vpop.eup %4692  ;;  %v4195_v45 = vmul.f32 -1.442695, %v1754_v40  ;;  %v2006_v38 = vsub.f32 1.0, %v2005_v25  ;;  %vm1545_vm5 = vweird.f32 %v5867_v24  ;;  %vm2010_vm6 = vweird.f32 %v5926_v14 }
 0x1a0   : > { %v5970_v50 = vpop.eup %4694  ;;  %v5972_v51 = vadd.f32 1.0, %v4693_v43  ;;  %v1029_v52 = vpop.f32.mrf.mxu2  ;;  %v1544_v47 = vadd.f32 %v5914_v63, %v1543_v41  ;;  %vm1547_vm7 = vmor %vm1545_vm5, %vm1546_vm4  ;;  %vm1550_vm8 = vcmp.eq.f32.partialorder %v1549_v7, 8.507059e+37  ;;  %v1552_v49 = vor.u32 1.1754944e-38, %v1551_v46 }
 0x1a1   : > { %4700 = vpow2.f32 %v4195_v45  ;;  %v1030_v53 = vadd.f32 %v1029_v52, %v941_v22  ;;  %v854_v55 = vpop.f32.mrf.mxu0  ;;  %v2007_v59 = vmul.f32 %v5926_v14, %v2006_v38  ;;  %v943_v24 = vpop.f32.mrf.mxu1  ;;  %v2013_v62 = vand.u32 2147483647, %v5894_v44 }
 0x1a2   : > { %4702 = vrcp.f32 %v5972_v51  ;;  %v1548_v56 = vsel %vm1547_vm7, %v5914_v63, %v1544_v47  ;;  %v855_v57 = vadd.f32 %v5568_v9, %v854_v55  ;;  %v2015_v1 = vand.u32 2147483648, %v5894_v44 }
 0x1a3   : > { %v4697_v60 = vpop.eup %4696  ;;  %v4153_v61 = vmul.f32 -1.442695, %v1030_v53  ;;  %v1553_v42 = vsel %vm1550_vm8, %v1552_v49, %v1548_v56  ;;  %v2008_v63 = vadd.f32 %v5926_v14, %v2007_v59  ;;  %vm2009_vm9 = vweird.f32 %v5894_v44  ;;  %v4340_v49 = vld [vmem:[%s7516_s4 + $0x54] sm:$0xf0] }
 0x1a4   : > { %v5983_v2 = vpop.eup %4698  ;;  %v5985_v3 = vadd.f32 1.0, %v4697_v60  ;;  %v1657_v0 = vpack.c.bf16 %v1553_v42, %v1538_v23  ;;  %v1756_v6 = vpop.f32.mrf.mxu3  ;;  %v944_v10 = vadd.f32 %v943_v24, %v855_v57  ;;  %vm5992_vm10 = vmor %vm2009_vm9, %vm2010_vm6  ;;  %v2020_v44 = vmul.f32 %v5970_v50, %v5928_v15  ;;  %v4346_v60 = vld [vmem:[%s7516_s4 + $0x50] sm:$0xf] }
 0x1a5   : > { %4704 = vpow2.f32 %v4153_v61  ;;  %v1757_v8 = vadd.f32 %v5632_v29, %v1756_v6  ;;  %v2012_v12 = vsel %vm5992_vm10, %v5926_v14, %v2008_v63  ;;  %vm2014_vm11 = vcmp.eq.f32.partialorder %v2013_v62, 8.507059e+37  ;;  %v4500_v61 = vld [vmem:[%s7516_s4 + $0x58] sm:$0xf0] }
 0x1a6   : > { %4706 = vrcp.f32 %v5985_v3  ;;  %1795 = vmatmul.bf16.gmra.mxu3 %v1657_v0  ;;  %v2016_v54 = vor.u32 1.1754944e-38, %v2015_v1  ;;  %v2028_v4 = vand.u32 2147483647, %v5928_v15  ;;  %v2021_v35 = vsub.f32 1.0, %v2020_v44  ;;  %v4338_v0 = vld [vmem:[%s7516_s4 + $0x48] sm:$0xf] }
 0x1a7   : > { %v4701_v13 = vpop.eup %4700  ;;  %v4196_v16 = vmul.f32 -1.442695, %v1757_v8  ;;  %v2030_v17 = vand.u32 2147483648, %v5928_v15  ;;  %v1557_v25 = vsub.f32 1.0, %v5962_v39  ;;  %vm2024_vm12 = vweird.f32 %v5928_v15 }
 0x1a8   : > { %v6003_v18 = vpop.eup %4702  ;;  %v6005_v19 = vadd.f32 1.0, %v4701_v13  ;;  %v1032_v20 = vpop.f32.mrf.mxu2  ;;  %v2017_v27 = vsel %vm2014_vm11, %v2016_v54, %v2012_v12  ;;  %v2022_v58 = vmul.f32 %v5970_v50, %v2021_v35  ;;  %vm2025_vm13 = vweird.f32 %v5970_v50 }
 0x1a9   : > { %4708 = vpow2.f32 %v4196_v16  ;;  %v1033_v14 = vadd.f32 %v1032_v20, %v944_v10  ;;  %v856_v26 = vpop.f32.mrf.mxu0  ;;  %v6012_v28 = vmul.f32 %v6003_v18, %v5972_v51  ;;  %vm6018_vm14 = vcmp.eq.f32.partialorder %v2028_v4, 8.507059e+37  ;;  %v945_v40 = vpop.f32.mrf.mxu1  ;;  %vm2026_vm0 = vmor %vm2024_vm12, %vm2025_vm13 }
 0x1aa   : > { %v857_v5 = vadd.f32 %v5568_v9, %v856_v26  ;;  %4710 = vrcp.f32 %v6005_v19  ;;  %v1558_v34 = vmul.f32 %v5956_v32, %v1557_v25  ;;  %v2023_v9 = vadd.f32 %v5970_v50, %v2022_v58 }
 0x1ab   : > { %v4705_v48 = vpop.eup %4704  ;;  %v4154_v31 = vmul.f32 -1.442695, %v1033_v14  ;;  %v2031_v22 = vor.u32 1.1754944e-38, %v2030_v17  ;;  %vm1561_vm15 = vweird.f32 %v5956_v32  ;;  %vm1560_vm1 = vweird.f32 %v5910_v21 }
 0x1ac   : > { %v6023_v36 = vpop.eup %4706  ;;  %v6025_v37 = vadd.f32 1.0, %v4705_v48  ;;  %v1758_v39 = vpop.f32.mrf.mxu3  ;;  %v1559_v41 = vadd.f32 %v5956_v32, %v1558_v34  ;;  %v946_v43 = vadd.f32 %v945_v40, %v857_v5  ;;  %v2027_v45 = vsel %vm2026_vm0, %v5970_v50, %v2023_v9  ;;  %vm6047_vm2 = vmor %vm1560_vm1, %vm1561_vm15 }
 0x1ad   : > { %4712 = vpow2.f32 %v4154_v31  ;;  %v1759_v23 = vadd.f32 %v5632_v29, %v1758_v39  ;;  %v1564_v7 = vand.u32 2147483647, %v5910_v21  ;;  %v1566_v46 = vand.u32 2147483648, %v5910_v21  ;;  %v4498_v21 = vld [vmem:[%s7516_s4 + $0x4c] sm:$0xf] }
 0x1ae   : > { %v6041_v52 = vmul.f32 %v6023_v36, %v5985_v3  ;;  %v2032_v15 = vsel %vm6018_vm14, %v2031_v22, %v2027_v45  ;;  %v1571_v50 = vmul.f32 %v5983_v2, %v5958_v33  ;;  %4714 = vrcp.f32 %v6025_v37 }
 0x1af   : > { %v4709_v38 = vpop.eup %4708  ;;  %v4197_v47 = vmul.f32 -1.442695, %v1759_v23  ;;  %v2426_v56 = vpack.c.bf16 %v2032_v15, %v2017_v27  ;;  %v1563_v59 = vsel %vm6047_vm2, %v5956_v32, %v1559_v41  ;;  %v1567_v62 = vor.u32 1.1754944e-38, %v1566_v46  ;;  %v4499_v32 = vld [vmem:[%s7516_s4 + $0x50] sm:$0xf0] }
 0x1b0   : > { %v6060_v55 = vadd.f32 1.0, %v4709_v38  ;;  %v1034_v57 = vpop.f32.mrf.mxu2  ;;  %v6071_v42 = vpop.eup %4710  ;;  %v1572_v1 = vsub.f32 1.0, %v1571_v50  ;;  %vm1576_vm3 = vweird.f32 %v5983_v2  ;;  %v1579_v6 = vand.u32 2147483647, %v5958_v33  ;;  %v4328_v50 = vld [vmem:[%s7516_s4 + $0x3c] sm:$0xf0] }
 0x1b1   : > { %4716 = vpow2.f32 %v4197_v47  ;;  %v1035_v24 = vadd.f32 %v1034_v57, %v946_v43  ;;  %2525 = vmatmul.bf16.gmra.mxu0 %v2426_v56  ;;  %v1581_v63 = vand.u32 2147483648, %v5958_v33  ;;  %v4343_v12 = vor.u32 %v4498_v21, %v4340_v49 }
 0x1b2   : > { %4718 = vrcp.f32 %v6060_v55  ;;  %v1573_v11 = vmul.f32 %v5983_v2, %v1572_v1  ;;  %v4347_v44 = vor.u32 %v4500_v61, %v4346_v60  ;;  %vm1565_vm4 = vcmp.eq.f32.partialorder %v1564_v7, 8.507059e+37 }
 0x1b3   : > { %v4713_v10 = vpop.eup %4712  ;;  %v4155_v8 = vmul.f32 -1.442695, %v1035_v24  ;;  %vm1575_vm5 = vweird.f32 %v5958_v33  ;;  %v4339_v54 = vor.u32 %v4499_v32, %v4338_v0  ;;  %v1568_v4 = vsel %vm1565_vm4, %v1567_v62, %v1563_v59  ;;  %3481 = vmatpush.bf16.msrb.mxu2 %v4343_v12 }
 0x1b4   : > { %v6084_v13 = vadd.f32 1.0, %v4713_v10  ;;  %v1761_v16 = vpop.f32.mrf.mxu3  ;;  %v1574_v20 = vadd.f32 %v5983_v2, %v1573_v11  ;;  %3570 = vmatpush.bf16.msrb.mxu3 %v4347_v44  ;;  %v2036_v17 = vsub.f32 1.0, %v6012_v28  ;;  %v6090_v25 = vpop.eup %4714  ;;  %vm1577_vm6 = vmor %vm1575_vm5, %vm1576_vm3  ;;  %vm1580_vm7 = vcmp.eq.f32.partialorder %v1579_v6, 8.507059e+37 }
 0x1b5   : > { %v1762_v35 = vadd.f32 %v5632_v29, %v1761_v16  ;;  %4720 = vpow2.f32 %v4155_v8  ;;  %v1582_v14 = vor.u32 1.1754944e-38, %v1581_v63  ;;  %3392 = vmatpush.bf16.msrb.mxu1 %v4339_v54  ;;  %v2043_v33 = vand.u32 2147483647, %v5972_v51 }
 0x1b6   : > { %4722 = vrcp.f32 %v6084_v13  ;;  %v1578_v27 = vsel %vm1577_vm6, %v5983_v2, %v1574_v20  ;;  %v2037_v58 = vmul.f32 %v6003_v18, %v2036_v17  ;;  %v2045_v30 = vand.u32 2147483648, %v5972_v51 }
 0x1b7   : > { %v4717_v26 = vpop.eup %4716  ;;  %v4198_v5 = vmul.f32 -1.442695, %v1762_v35  ;;  %v1583_v31 = vsel %vm1580_vm7, %v1582_v14, %v1578_v27  ;;  %v2050_v34 = vmul.f32 %v6071_v42, %v6005_v19  ;;  %vm2040_vm8 = vweird.f32 %v6003_v18 }
 0x1b8   : > { %v6098_v28 = vpop.eup %4718  ;;  %v6100_v48 = vadd.f32 1.0, %v4717_v26  ;;  %v1658_v39 = vpack.c.bf16 %v1583_v31, %v1568_v4  ;;  %v2038_v9 = vadd.f32 %v6003_v18, %v2037_v58  ;;  %vm2039_vm9 = vweird.f32 %v5972_v51 }
 0x1b9   : > { %4724 = vpow2.f32 %v4198_v5  ;;  %vm6108_vm10 = vcmp.eq.f32.partialorder %v2043_v33, 8.507059e+37  ;;  %v2051_v22 = vsub.f32 1.0, %v2050_v34  ;;  %v2065_v40 = vmul.f32 %v6098_v28, %v6060_v55  ;;  %vm6117_vm11 = vmor %vm2039_vm9, %vm2040_vm8 }
 0x1ba   : > { %4726 = vrcp.f32 %v6100_v48  ;;  %1800 = vmatmul.bf16.gmra.mxu3 %v1658_v39  ;;  %v2058_v23 = vand.u32 2147483647, %v6005_v19  ;;  %v2060_v41 = vand.u32 2147483648, %v6005_v19  ;;  %v2046_v51 = vor.u32 1.1754944e-38, %v2045_v30 }
 0x1bb   : > { %v4721_v43 = vpop.eup %4720  ;;  %v2052_v46 = vmul.f32 %v6071_v42, %v2051_v22  ;;  %vm2055_vm12 = vweird.f32 %v6071_v42  ;;  %v1587_v38 = vsub.f32 1.0, %v6041_v52  ;;  %v2042_v53 = vsel %vm6117_vm11, %v6003_v18, %v2038_v9 }
 0x1bc   : > { %v1763_v45 = vpop.f32.mrf.mxu3  ;;  %v6124_v47 = vpop.eup %4722  ;;  %vm2054_vm13 = vweird.f32 %v6005_v19  ;;  %vm6131_vm14 = vcmp.eq.f32.partialorder %v2058_v23, 8.507059e+37  ;;  %v2061_v49 = vor.u32 1.1754944e-38, %v2060_v41  ;;  %vm1590_vm15 = vweird.f32 %v5985_v3 }
 0x1bd   : > { %v1764_v15 = vadd.f32 %v5632_v29, %v1763_v45  ;;  %v2053_v21 = vadd.f32 %v6071_v42, %v2052_v46  ;;  %v1588_v56 = vmul.f32 %v6023_v36, %v1587_v38  ;;  %vm2056_vm0 = vmor %vm2054_vm13, %vm2055_vm12  ;;  %vm1591_vm1 = vweird.f32 %v6023_v36 }
 0x1be   : > { %v1594_v29 = vand.u32 2147483647, %v5985_v3  ;;  %v1596_v18 = vand.u32 2147483648, %v5985_v3  ;;  %v1601_v61 = vmul.f32 %v6090_v25, %v6025_v37  ;;  %v6149_v62 = vadd.f32 1.0, %v4721_v43  ;;  %vm6157_vm2 = vmor %vm1590_vm15, %vm1591_vm1 }
 0x1bf   : > { %v4725_v52 = vpop.eup %4724  ;;  %v4199_v57 = vmul.f32 -1.442695, %v1764_v15  ;;  %v2057_v59 = vsel %vm2056_vm0, %v6071_v42, %v2053_v21  ;;  %v1589_v60 = vadd.f32 %v6023_v36, %v1588_v56  ;;  %v2047_v1 = vsel %vm6108_vm10, %v2046_v51, %v2042_v53 }
 0x1c0   : > { %v6141_v19 = vadd.f32 1.0, %v4725_v52  ;;  %v6147_v24 = vpop.eup %4726  ;;  %v2062_v0 = vsel %vm6131_vm14, %v2061_v49, %v2057_v59  ;;  %v1616_v32 = vmul.f32 %v6124_v47, %v6084_v13  ;;  %v1602_v10 = vsub.f32 1.0, %v1601_v61  ;;  %v4334_v52 = vld [vmem:[%s7516_s4 + $0x38] sm:$0xf]  ;;  %v4497_v59 = vld [vmem:[%s7516_s4 + $0x40] sm:$0xf0] }
 0x1c1   : > { %4728 = vpow2.f32 %v4199_v57  ;;  %v2427_v6 = vpack.c.bf16 %v2062_v0, %v2047_v1  ;;  %v1593_v63 = vsel %vm6157_vm2, %v6023_v36, %v1589_v60  ;;  %vm1595_vm3 = vcmp.eq.f32.partialorder %v1594_v29, 8.507059e+37  ;;  %v6176_v36 = vld [vmem:[%s7515_s3 + $0x1] ss:$0 sm:$0xff]  ;;  %v4326_v1 = vld [vmem:[%s7516_s4 + $0x30] sm:$0xf] }
 0x1c2   : > { %4730 = vrcp.f32 %v6141_v19  ;;  %v1597_v8 = vor.u32 1.1754944e-38, %v1596_v18  ;;  %v1609_v11 = vand.u32 2147483647, %v6025_v37  ;;  %v1603_v3 = vmul.f32 %v6090_v25, %v1602_v10  ;;  %v4496_v0 = vld [vmem:[%s7516_s4 + $0x38] sm:$0xf0] }
 0x1c3   : > { %2530 = vmatmul.bf16.gmra.mxu0 %v2427_v6  ;;  %vm1606_vm4 = vweird.f32 %v6090_v25  ;;  %v1611_v12 = vand.u32 2147483648, %v6025_v37  ;;  %v2066_v16 = vsub.f32 1.0, %v2065_v40  ;;  %4732 = vrcp.f32 %v6149_v62 }
 0x1c4   : > { %v1766_v44 = vpop.f32.mrf.mxu3  ;;  %v1598_v54 = vsel %vm1595_vm3, %v1597_v8, %v1593_v63  ;;  %vm1605_vm5 = vweird.f32 %v6025_v37  ;;  %v1604_v20 = vadd.f32 %v6090_v25, %v1603_v3  ;;  %vm2069_vm6 = vweird.f32 %v6060_v55 }
 0x1c5   : > { %v1767_v4 = vadd.f32 %v6176_v36, %v1766_v44  ;;  %v2067_v35 = vmul.f32 %v6098_v28, %v2066_v16  ;;  %vm2070_vm7 = vweird.f32 %v6098_v28  ;;  %vm1607_vm8 = vmor %vm1605_vm5, %vm1606_vm4  ;;  %vm1610_vm9 = vcmp.eq.f32.partialorder %v1609_v11, 8.507059e+37 }
 0x1c6   : > { %v1612_v14 = vor.u32 1.1754944e-38, %v1611_v12  ;;  %v2080_v33 = vmul.f32 %v6147_v24, %v6100_v48  ;;  %v1608_v26 = vsel %vm1607_vm8, %v6090_v25, %v1604_v20  ;;  %v2073_v5 = vand.u32 2147483647, %v6060_v55  ;;  %vm6197_vm10 = vmor %vm2069_vm6, %vm2070_vm7 }
 0x1c7   : > { %v4729_v17 = vpop.eup %4728  ;;  %v4200_v37 = vmul.f32 -1.442695, %v1767_v4  ;;  %v2068_v27 = vadd.f32 %v6098_v28, %v2067_v35  ;;  %v2075_v58 = vand.u32 2147483648, %v6060_v55  ;;  %vm2085_vm11 = vweird.f32 %v6147_v24 }
 0x1c8   : > { %v6189_v31 = vpop.eup %4730  ;;  %v6191_v30 = vadd.f32 1.0, %v4729_v17  ;;  %v1613_v34 = vsel %vm1610_vm9, %v1612_v14, %v1608_v26  ;;  %v2081_v25 = vsub.f32 1.0, %v2080_v33  ;;  %v2088_v23 = vand.u32 2147483647, %v6100_v48 }
 0x1c9   : > { %4734 = vpow2.f32 %v4200_v37  ;;  %v1659_v9 = vpack.c.bf16 %v1613_v34, %v1598_v54  ;;  %v2072_v2 = vsel %vm6197_vm10, %v6098_v28, %v2068_v27  ;;  %v6204_v22 = vpop.eup %4732  ;;  %v2090_v55 = vand.u32 2147483648, %v6100_v48 }
 0x1ca   : > { %v2082_v40 = vmul.f32 %v6147_v24, %v2081_v25  ;;  %vm2074_vm12 = vcmp.eq.f32.partialorder %v2073_v5, 8.507059e+37  ;;  %v2076_v43 = vor.u32 1.1754944e-38, %v2075_v58  ;;  %vm2084_vm13 = vweird.f32 %v6100_v48  ;;  %v4495_v48 = vld [vmem:[%s7516_s4 + $0x34] sm:$0xf] }
 0x1cb   : > { %1805 = vmatmul.bf16.gmra.mxu3 %v1659_v9  ;;  %v1617_v45 = vsub.f32 1.0, %v1616_v32  ;;  %v2095_v28 = vmul.f32 %v6189_v31, %v6141_v19  ;;  %4736 = vrcp.f32 %v6191_v30  ;;  %vm2086_vm14 = vmor %vm2084_vm13, %vm2085_vm11  ;;  %v2091_v38 = vor.u32 1.1754944e-38, %v2090_v55 }
 0x1cc   : > { %v1768_v41 = vpop.f32.mrf.mxu3  ;;  %v2083_v51 = vadd.f32 %v6147_v24, %v2082_v40  ;;  %v2077_v46 = vsel %vm2074_vm12, %v2076_v43, %v2072_v2  ;;  %v1631_v53 = vmul.f32 %v6204_v22, %v6149_v62  ;;  %vm2089_vm15 = vcmp.eq.f32.partialorder %v2088_v23, 8.507059e+37 }
 0x1cd   : > { %v1769_v7 = vadd.f32 %v6176_v36, %v1768_v41  ;;  %v1618_v15 = vmul.f32 %v6124_v47, %v1617_v45  ;;  %vm1620_vm0 = vweird.f32 %v6084_v13  ;;  %vm1621_vm1 = vweird.f32 %v6124_v47 }
 0x1ce   : > { %v2087_v56 = vsel %vm2086_vm14, %v6147_v24, %v2083_v51  ;;  %v1624_v18 = vand.u32 2147483647, %v6084_v13  ;;  %v1632_v24 = vsub.f32 1.0, %v1631_v53  ;;  %v1626_v42 = vand.u32 2147483648, %v6084_v13  ;;  %vm6256_vm3 = vmor %vm1620_vm0, %vm1621_vm1  ;;  %v4492_v51 = vld [vmem:[%s7516_s4 + $0x1c] sm:$0xf] }
 0x1cf   : > { %v4735_v21 = vpop.eup %4734  ;;  %v4201_v49 = vmul.f32 -1.442695, %v1769_v7  ;;  %v2092_v29 = vsel %vm2089_vm15, %v2091_v38, %v2087_v56  ;;  %v1619_v61 = vadd.f32 %v6124_v47, %v1618_v15  ;;  %vm1636_vm2 = vweird.f32 %v6204_v22  ;;  %v4494_v56 = vld [vmem:[%s7516_s4 + $0x28] sm:$0xf0] }
 0x1d0   : > { %v6230_v57 = vadd.f32 1.0, %v4735_v21  ;;  %v2428_v60 = vpack.c.bf16 %v2092_v29, %v2077_v46  ;;  %v1641_v32 = vand.u32 2147483648, %v6149_v62  ;;  %v4331_v6 = vor.u32 %v4495_v48, %v4328_v50 }
 0x1d1   : > { %4738 = vpow2.f32 %v4201_v49  ;;  %v6247_v63 = vpop.eup %4736  ;;  %v1633_v10 = vmul.f32 %v6204_v22, %v1632_v24  ;;  %v1639_v8 = vand.u32 2147483647, %v6149_v62  ;;  %v4335_v11 = vor.u32 %v4497_v59, %v4334_v52  ;;  %v4322_v49 = vld [vmem:[%s7516_s4 + $0x20] sm:$0xf] }
 0x1d2   : > { %4740 = vrcp.f32 %v6230_v57  ;;  %3482 = vmatpush.bf16.msrb.mxu2 %v4331_v6  ;;  %v4327_v44 = vor.u32 %v4496_v0, %v4326_v1  ;;  %v2096_v16 = vsub.f32 1.0, %v2095_v28  ;;  %v1623_v54 = vsel %vm6256_vm3, %v6124_v47, %v1619_v61 }
 0x1d3   : > { %2535 = vmatmul.bf16.gmra.mxu0 %v2428_v60  ;;  %v1634_v4 = vadd.f32 %v6204_v22, %v1633_v10  ;;  %vm1635_vm4 = vweird.f32 %v6149_v62  ;;  %3571 = vmatpush.bf16.msrb.mxu3 %v4335_v11  ;;  %v1627_v13 = vor.u32 1.1754944e-38, %v1626_v42  ;;  %v1642_v35 = vor.u32 1.1754944e-38, %v1641_v32 }
 0x1d4   : > { %v1771_v12 = vpop.f32.mrf.mxu3  ;;  %vm1637_vm5 = vmor %vm1635_vm4, %vm1636_vm2  ;;  %3393 = vmatpush.bf16.msrb.mxu1 %v4327_v44  ;;  %v2097_v17 = vmul.f32 %v6189_v31, %v2096_v16  ;;  %v2110_v14 = vmul.f32 %v6247_v63, %v6191_v30  ;;  %vm1625_vm6 = vcmp.eq.f32.partialorder %v1624_v18, 8.507059e+37  ;;  %vm1640_vm7 = vcmp.eq.f32.partialorder %v1639_v8, 8.507059e+37  ;;  %v4314_v16 = vld [vmem:[%s7516_s4 + $0x18] sm:$0xf] }
 0x1d5   : > { %v1772_v20 = vadd.f32 %v6176_v36, %v1771_v12  ;;  %v1638_v47 = vsel %vm1637_vm5, %v6204_v22, %v1634_v4  ;;  %v1628_v26 = vsel %vm1625_vm6, %v1627_v13, %v1623_v54  ;;  %vm2100_vm8 = vweird.f32 %v6189_v31  ;;  %v4493_v54 = vld [vmem:[%s7516_s4 + $0x20] sm:$0xf0] }
 0x1d6   : > { %v1643_v27 = vsel %vm1640_vm7, %v1642_v35, %v1638_v47  ;;  %v2098_v34 = vadd.f32 %v6189_v31, %v2097_v17  ;;  %v2111_v39 = vsub.f32 1.0, %v2110_v14  ;;  %vm2099_vm9 = vweird.f32 %v6141_v19 }
 0x1d7   : > { %v4739_v37 = vpop.eup %4738  ;;  %v4202_v62 = vmul.f32 -1.442695, %v1772_v20  ;;  %v1660_v58 = vpack.c.bf16 %v1643_v27, %v1628_v26  ;;  %v2105_v25 = vand.u32 2147483648, %v6141_v19  ;;  %v2120_v9 = vand.u32 2147483648, %v6191_v30  ;;  %vm6290_vm11 = vmor %vm2099_vm9, %vm2100_vm8 }
 0x1d8   : > { %v6272_v33 = vadd.f32 1.0, %v4739_v37  ;;  %v6275_v5 = vpop.eup %4740  ;;  %v2103_v2 = vand.u32 2147483647, %v6141_v19  ;;  %v2112_v22 = vmul.f32 %v6247_v63, %v2111_v39  ;;  %vm2115_vm10 = vweird.f32 %v6247_v63 }
 0x1d9   : > { %4742 = vpow2.f32 %v4202_v62  ;;  %v2118_v40 = vand.u32 2147483647, %v6191_v30  ;;  %v2125_v23 = vmul.f32 %v6275_v5, %v6230_v57  ;;  %v2102_v19 = vsel %vm6290_vm11, %v6189_v31, %v2098_v34  ;;  %v4316_v31 = vld [vmem:[%s7516_s4 + $0x24] sm:$0xf0] }
 0x1da   : > { %4744 = vrcp.f32 %v6272_v33  ;;  %v2113_v45 = vadd.f32 %v6247_v63, %v2112_v22  ;;  %vm2114_vm12 = vweird.f32 %v6191_v30  ;;  %v2106_v28 = vor.u32 1.1754944e-38, %v2105_v25 }
 0x1db   : > { %1810 = vmatmul.bf16.gmra.mxu3 %v1660_v58  ;;  %vm2116_vm13 = vmor %vm2114_vm12, %vm2115_vm10  ;;  %v2121_v7 = vor.u32 1.1754944e-38, %v2120_v9  ;;  %vm2104_vm14 = vcmp.eq.f32.partialorder %v2103_v2, 8.507059e+37  ;;  %vm2119_vm15 = vcmp.eq.f32.partialorder %v2118_v40, 8.507059e+37  ;;  %v2126_v21 = vsub.f32 1.0, %v2125_v23 }
 0x1dc   : > { %v1773_v55 = vpop.f32.mrf.mxu3  ;;  %v2117_v15 = vsel %vm2116_vm13, %v6247_v63, %v2113_v45  ;;  %v2107_v30 = vsel %vm2104_vm14, %v2106_v28, %v2102_v19  ;;  %v4319_v18 = vor.u32 %v4492_v51, %v4316_v31  ;;  %v4323_v60 = vor.u32 %v4494_v56, %v4322_v49 }
 0x1dd   : > { %v1774_v43 = vadd.f32 %v6176_v36, %v1773_v55  ;;  %v2122_v50 = vsel %vm2119_vm15, %v2121_v7, %v2117_v15  ;;  %v2127_v24 = vmul.f32 %v6275_v5, %v2126_v21  ;;  %vm2130_vm1 = vweird.f32 %v6275_v5 }
 0x1de   : > { %v2429_v52 = vpack.c.bf16 %v2122_v50, %v2107_v30  ;;  %3483 = vmatpush.bf16.msrb.mxu2 %v4319_v18  ;;  %3572 = vmatpush.bf16.msrb.mxu3 %v4323_v60  ;;  %v2150_v63 = vand.u32 2147483648, %v6272_v33  ;;  %vm2144_vm2 = vweird.f32 %v6272_v33  ;;  %v2148_v11 = vand.u32 2147483647, %v6272_v33 }
 0x1df   : > { %v4743_v46 = vpop.eup %4742  ;;  %v4203_v38 = vmul.f32 -1.442695, %v1774_v43  ;;  %v2128_v8 = vadd.f32 %v6275_v5, %v2127_v24  ;;  %vm2129_vm3 = vweird.f32 %v6230_v57  ;;  %v2135_v12 = vand.u32 2147483648, %v6230_v57 }
 0x1e0   : > { %v4745_v53 = vpop.eup %4744  ;;  %v6307_v48 = vadd.f32 1.0, %v4743_v46  ;;  %v2133_v4 = vand.u32 2147483647, %v6230_v57  ;;  %v4315_v13 = vor.u32 %v4493_v54, %v4314_v16  ;;  %vm2131_vm5 = vmor %vm2129_vm3, %vm2130_vm1  ;;  %v2151_v35 = vor.u32 1.1754944e-38, %v2150_v63 }
 0x1e1   : > { %4746 = vpow2.f32 %v4203_v38  ;;  %v2140_v29 = vmul.f32 %v4745_v53, %v6272_v33  ;;  %vm2145_vm0 = vweird.f32 %v4745_v53  ;;  %v2132_v37 = vsel %vm2131_vm5, %v6275_v5, %v2128_v8 }
 0x1e2   : > { %4748 = vrcp.f32 %v6307_v48  ;;  %vm6330_vm4 = vmor %vm2144_vm2, %vm2145_vm0  ;;  %vm2149_vm6 = vcmp.eq.f32.partialorder %v2148_v11, 8.507059e+37  ;;  %3394 = vmatpush.bf16.msrb.mxu1 %v4315_v13  ;;  %v2136_v62 = vor.u32 1.1754944e-38, %v2135_v12  ;;  %vm2134_vm7 = vcmp.eq.f32.partialorder %v2133_v4, 8.507059e+37  ;;  %v6385_v11 = vld [vmem:[%s7515_s3 + $0x2] ss:$0 sm:$0xff] }
 0x1e3   : > { %v2141_v59 = vsub.f32 1.0, %v2140_v29  ;;  %2540 = vmatmul.bf16.gmra.mxu0 %v2429_v52  ;;  %v2165_v46 = vand.u32 2147483648, %v6307_v48  ;;  %vm2159_vm12 = vweird.f32 %v6307_v48  ;;  %v2163_v38 = vand.u32 2147483647, %v6307_v48  ;;  %v4489_v13 = vld [vmem:[%s7516_s4 + $0x4] sm:$0xf] }
 0x1e4   : > { %v1776_v61 = vpop.f32.mrf.mxu3  ;;  %v2137_v27 = vsel %vm2134_vm7, %v2136_v62, %v2132_v37 }
 0x1e5   : > { %v1777_v1 = vadd.f32 %v6176_v36, %v1776_v61  ;;  %v2142_v0 = vmul.f32 %v4745_v53, %v2141_v59  ;;  %v2166_v49 = vor.u32 1.1754944e-38, %v2165_v46  ;;  %vm2164_vm15 = vcmp.eq.f32.partialorder %v2163_v38, 8.507059e+37 }
 0x1e7   : > { %v4747_v42 = vpop.eup %4746  ;;  %v4204_v32 = vmul.f32 -1.442695, %v1777_v1  ;;  %v2143_v6 = vadd.f32 %v4745_v53, %v2142_v0 }
 0x1e8   : > { %v6321_v10 = vadd.f32 1.0, %v4747_v42  ;;  %v6326_v3 = vpop.eup %4748 }
 0x1e9   : > { %4750 = vpow2.f32 %v4204_v32  ;;  %v2147_v20 = vsel %vm6330_vm4, %v4745_v53, %v2143_v6  ;;  %v2155_v17 = vmul.f32 %v6326_v3, %v6307_v48  ;;  %vm2160_vm9 = vweird.f32 %v6326_v3 }
 0x1ea   : > { %4752 = vrcp.f32 %v6321_v10  ;;  %v2152_v57 = vsel %vm2149_vm6, %v2151_v35, %v2147_v20  ;;  %v2180_v19 = vand.u32 2147483648, %v6321_v10  ;;  %vm2174_vm10 = vweird.f32 %v6321_v10  ;;  %vm2161_vm13 = vmor %vm2159_vm12, %vm2160_vm9  ;;  %v4304_v35 = vld [vmem:[%s7516_s4 + $0xc] sm:$0xf0] }
 0x1eb   : > { %v2430_v39 = vpack.c.bf16 %v2152_v57, %v2137_v27  ;;  %v2156_v25 = vsub.f32 1.0, %v2155_v17  ;;  %v2178_v7 = vand.u32 2147483647, %v6321_v10  ;;  %v4310_v17 = vld [vmem:[%s7516_s4 + $0x8] sm:$0xf]  ;;  %v4307_v62 = vor.u32 %v4489_v13, %v4304_v35 }
 0x1ec   : > { %v1778_v14 = vpop.f32.mrf.mxu3  ;;  %v2181_v31 = vor.u32 1.1754944e-38, %v2180_v19  ;;  %v4491_v57 = vld [vmem:[%s7516_s4 + $0x10] sm:$0xf0] }
 0x1ed   : > { %v1779_v47 = vadd.f32 %v6176_v36, %v1778_v14  ;;  %v2157_v22 = vmul.f32 %v6326_v3, %v2156_v25  ;;  %vm2179_vm14 = vcmp.eq.f32.partialorder %v2178_v7, 8.507059e+37  ;;  %v4490_v25 = vld [vmem:[%s7516_s4 + $0x8] sm:$0xf0]  ;;  %3484 = vmatpush.bf16.msrb.mxu2 %v4307_v62 }
 0x1ef   : > { %v4751_v33 = vpop.eup %4750  ;;  %v4205_v26 = vmul.f32 -1.442695, %v1779_v47  ;;  %v2158_v28 = vadd.f32 %v6326_v3, %v2157_v22 }
 0x1f0   : > { %v4753_v58 = vpop.eup %4752  ;;  %v6350_v34 = vadd.f32 1.0, %v4751_v33 }
 0x1f1   : > { %4754 = vpow2.f32 %v4205_v26  ;;  %v2170_v9 = vmul.f32 %v4753_v58, %v6321_v10  ;;  %vm2175_vm8 = vweird.f32 %v4753_v58  ;;  %v2162_v50 = vsel %vm2161_vm13, %v6326_v3, %v2158_v28 }
 0x1f2   : > { %4756 = vrcp.f32 %v6350_v34  ;;  %vm2176_vm11 = vmor %vm2174_vm10, %vm2175_vm8  ;;  %v2167_v48 = vsel %vm2164_vm15, %v2166_v49, %v2162_v50  ;;  %v2195_v63 = vand.u32 2147483648, %v6350_v34  ;;  %vm2189_vm4 = vweird.f32 %v6350_v34 }
 0x1f3   : > { %v2171_v5 = vsub.f32 1.0, %v2170_v9  ;;  %2545 = vmatmul.bf16.gmra.mxu0 %v2430_v39  ;;  %v2193_v37 = vand.u32 2147483647, %v6350_v34  ;;  %v4302_v39 = vld [vmem:[%s7516_s4] sm:$0xf] }
 0x1f4   : > { %v1781_v2 = vpop.f32.mrf.mxu3 }
 0x1f5   : > { %v1782_v40 = vadd.f32 %v6176_v36, %v1781_v2  ;;  %v2172_v23 = vmul.f32 %v4753_v58, %v2171_v5  ;;  %v4303_v2 = vor.u32 %v4490_v25, %v4302_v39  ;;  %vm2194_vm7 = vcmp.eq.f32.partialorder %v2193_v37, 8.507059e+37 }
 0x1f7   : > { %v4755_v55 = vpop.eup %4754  ;;  %v4206_v41 = vmul.f32 -1.442695, %v1782_v40  ;;  %v2173_v43 = vadd.f32 %v4753_v58, %v2172_v23  ;;  %v2196_v23 = vor.u32 1.1754944e-38, %v2195_v63  ;;  %3395 = vmatpush.bf16.msrb.mxu1 %v4303_v2 }
 0x1f8   : > { %v6358_v45 = vadd.f32 1.0, %v4755_v55  ;;  %v6363_v51 = vpop.eup %4756 }
 0x1f9   : > { %4758 = vpow2.f32 %v4206_v41  ;;  %v2177_v15 = vsel %vm2176_vm11, %v4753_v58, %v2173_v43  ;;  %v2185_v53 = vmul.f32 %v6363_v51, %v6350_v34  ;;  %vm2190_vm2 = vweird.f32 %v6363_v51 }
 0x1fa   : > { %4760 = vrcp.f32 %v6358_v45  ;;  %v2182_v56 = vsel %vm2179_vm14, %v2181_v31, %v2177_v15  ;;  %vm2204_vm1 = vweird.f32 %v6358_v45  ;;  %v2210_v12 = vand.u32 2147483648, %v6358_v45  ;;  %vm6422_vm5 = vmor %vm2189_vm4, %vm2190_vm2 }
 0x1fb   : > { %v2431_v60 = vpack.c.bf16 %v2182_v56, %v2167_v48  ;;  %v2186_v61 = vsub.f32 1.0, %v2185_v53  ;;  %v2208_v20 = vand.u32 2147483647, %v6358_v45  ;;  %v4311_v34 = vor.u32 %v4491_v57, %v4310_v17 }
 0x1fc   : > { %v1783_v30 = vpop.f32.mrf.mxu3  ;;  %v2211_v58 = vor.u32 1.1754944e-38, %v2210_v12 }
 0x1fd   : > { %v1784_v21 = vadd.f32 %v6176_v36, %v1783_v30  ;;  %v2187_v42 = vmul.f32 %v6363_v51, %v2186_v61  ;;  %vm2209_vm6 = vcmp.eq.f32.partialorder %v2208_v20, 8.507059e+37  ;;  %3573 = vmatpush.bf16.msrb.mxu3 %v4311_v34 }
 0x1ff   : > { %v4759_v52 = vpop.eup %4758  ;;  %v4207_v29 = vmul.f32 -1.442695, %v1784_v21  ;;  %v2188_v54 = vadd.f32 %v6363_v51, %v2187_v42 }
 0x200   : > { %v4761_v18 = vpop.eup %4760  ;;  %v6375_v59 = vadd.f32 1.0, %v4759_v52 }
 0x201   : > { %4762 = vpow2.f32 %v4207_v29  ;;  %v2200_v24 = vmul.f32 %v4761_v18, %v6358_v45  ;;  %vm2205_vm0 = vweird.f32 %v4761_v18  ;;  %v2192_v5 = vsel %vm6422_vm5, %v6363_v51, %v2188_v54 }
 0x202   : > { %4764 = vrcp.f32 %v6375_v59  ;;  %vm6395_vm3 = vmor %vm2204_vm1, %vm2205_vm0  ;;  %v2197_v19 = vsel %vm2194_vm7, %v2196_v23, %v2192_v5  ;;  %v2225_v21 = vand.u32 2147483648, %v6375_v59  ;;  %vm2219_vm11 = vweird.f32 %v6375_v59 }
 0x203   : > { %v2201_v1 = vsub.f32 1.0, %v2200_v24  ;;  %2550 = vmatmul.bf16.gmra.mxu0 %v2431_v60 }
 0x204   : > { %v1786_v0 = vpop.f32.mrf.mxu3 }
 0x205   : > { %v1787_v32 = vadd.f32 %v6176_v36, %v1786_v0  ;;  %v2202_v6 = vmul.f32 %v4761_v18, %v2201_v1 }
 0x207   : > { %v4763_v10 = vpop.eup %4762  ;;  %v4208_v8 = vmul.f32 -1.442695, %v1787_v32  ;;  %v2203_v3 = vadd.f32 %v4761_v18, %v2202_v6  ;;  %v2223_v32 = vand.u32 2147483647, %v6375_v59 }
 0x208   : > { %v6389_v44 = vpop.eup %4764  ;;  %v6391_v16 = vadd.f32 1.0, %v4763_v10 }
 0x209   : > { %4766 = vpow2.f32 %v4208_v8  ;;  %v2207_v47 = vsel %vm6395_vm3, %v4761_v18, %v2203_v3  ;;  %v2215_v33 = vmul.f32 %v6389_v44, %v6375_v59  ;;  %vm2220_vm8 = vweird.f32 %v6389_v44 }
 0x20a   : > { %4768 = vrcp.f32 %v6391_v16  ;;  %v2516_v14 = vpop.f32.mrf.mxu0  ;;  %v2212_v55 = vsel %vm2209_vm6, %v2211_v58, %v2207_v47  ;;  %v2240_v29 = vand.u32 2147483648, %v6391_v16  ;;  %vm2234_vm10 = vweird.f32 %v6391_v16  ;;  %vm6462_vm13 = vmor %vm2219_vm11, %vm2220_vm8 }
 0x20b   : > { %v2517_v26 = vadd.f32 %v6385_v11, %v2516_v14  ;;  %v2216_v45 = vsub.f32 1.0, %v2215_v33  ;;  %v2432_v51 = vpack.c.bf16 %v2212_v55, %v2197_v19  ;;  %v2238_v0 = vand.u32 2147483647, %v6391_v16 }
 0x20c   : > { %v1788_v9 = vpop.f32.mrf.mxu3  ;;  %v2241_v3 = vor.u32 1.1754944e-38, %v2240_v29  ;;  %vm2224_vm15 = vcmp.eq.f32.partialorder %v2223_v32, 8.507059e+37 }
 0x20d   : > { %v4268_v22 = vmul.f32 -1.442695, %v2517_v26  ;;  %v1789_v40 = vadd.f32 %v6176_v36, %v1788_v9  ;;  %v2217_v31 = vmul.f32 %v6389_v44, %v2216_v45  ;;  %vm2239_vm14 = vcmp.eq.f32.partialorder %v2238_v0, 8.507059e+37 }
 0x20f   : > { %v4767_v41 = vpop.eup %4766  ;;  %4770 = vpow2.f32 %v4268_v22  ;;  %v4209_v43 = vmul.f32 -1.442695, %v1789_v40  ;;  %v2218_v60 = vadd.f32 %v6389_v44, %v2217_v31 }
 0x210   : > { %v4769_v28 = vpop.eup %4768  ;;  %v6436_v7 = vadd.f32 1.0, %v4767_v41 }
 0x211   : > { %4772 = vpow2.f32 %v4209_v43  ;;  %v2230_v46 = vmul.f32 %v4769_v28, %v6391_v16  ;;  %vm2235_vm9 = vweird.f32 %v4769_v28  ;;  %v2222_v59 = vsel %vm6462_vm13, %v6389_v44, %v2218_v60 }
 0x212   : > { %4774 = vrcp.f32 %v6436_v7  ;;  %v2518_v38 = vpop.f32.mrf.mxu0  ;;  %vm2236_vm12 = vmor %vm2234_vm10, %vm2235_vm9  ;;  %v2226_v16 = vor.u32 1.1754944e-38, %v2225_v21  ;;  %v2255_v62 = vand.u32 2147483648, %v6436_v7  ;;  %v2253_v34 = vand.u32 2147483647, %v6436_v7 }
 0x213   : > { %v2519_v15 = vadd.f32 %v6385_v11, %v2518_v38  ;;  %v2231_v53 = vsub.f32 1.0, %v2230_v46  ;;  %2555 = vmatmul.bf16.gmra.mxu0 %v2432_v51  ;;  %vm2249_vm0 = vweird.f32 %v6436_v7 }
 0x214   : > { %v2227_v14 = vsel %vm2224_vm15, %v2226_v16, %v2222_v59  ;;  %v2256_v22 = vor.u32 1.1754944e-38, %v2255_v62  ;;  %vm6496_vm3 = vcmp.eq.f32.partialorder %v2253_v34, 8.507059e+37 }
 0x215   : > { %v4771_v30 = vpop.eup %4770  ;;  %v4269_v50 = vmul.f32 -1.442695, %v2519_v15  ;;  %v2232_v49 = vmul.f32 %v4769_v28, %v2231_v53  ;;  %v1791_v52 = vpop.f32.mrf.mxu3 }
 0x216   : > { %v6443_v56 = vadd.f32 1.0, %v4771_v30  ;;  %v1792_v18 = vadd.f32 %v6176_v36, %v1791_v52 }
 0x217   : > { %v4773_v48 = vpop.eup %4772  ;;  %4776 = vpow2.f32 %v4269_v50  ;;  %v2233_v61 = vadd.f32 %v4769_v28, %v2232_v49 }
 0x218   : > { %v6449_v24 = vpop.eup %4774  ;;  %4778 = vrcp.f32 %v6443_v56  ;;  %v6452_v1 = vadd.f32 1.0, %v4773_v48  ;;  %v4210_v42 = vmul.f32 -1.442695, %v1792_v18  ;;  %vm2729_vm1 = vweird.f32 %v6443_v56 }
 0x219   : > { %v2237_v63 = vsel %vm2236_vm12, %v4769_v28, %v2233_v61  ;;  %v2245_v10 = vmul.f32 %v6449_v24, %v6436_v7  ;;  %vm2250_vm2 = vweird.f32 %v6449_v24  ;;  %v2733_v19 = vand.u32 2147483647, %v6443_v56 }
 0x21a   : > { %4780 = vrcp.f32 %v6452_v1  ;;  %v2521_v8 = vpop.f32.mrf.mxu0  ;;  %v2242_v4 = vsel %vm2239_vm14, %v2241_v3, %v2237_v63  ;;  %v2268_v9 = vand.u32 2147483647, %v6452_v1  ;;  %v2270_v40 = vand.u32 2147483648, %v6452_v1  ;;  %vm6535_vm9 = vmor %vm2249_vm0, %vm2250_vm2 }
 0x21b   : > { %4782 = vpow2.f32 %v4210_v42  ;;  %v2522_v12 = vadd.f32 %v6385_v11, %v2521_v8  ;;  %v2246_v47 = vsub.f32 1.0, %v2245_v10  ;;  %v2433_v33 = vpack.c.bf16 %v2242_v4, %v2227_v14 }
 0x21c   : > { %vm2264_vm4 = vweird.f32 %v6452_v1  ;;  %vm6505_vm6 = vcmp.eq.f32.partialorder %v2268_v9, 8.507059e+37  ;;  %v2271_v53 = vor.u32 1.1754944e-38, %v2270_v40  ;;  %v2735_v30 = vand.u32 2147483648, %v6443_v56 }
 0x21d   : > { %v4777_v54 = vpop.eup %4776  ;;  %v4270_v35 = vmul.f32 -1.442695, %v2522_v12  ;;  %v1793_v17 = vpop.f32.mrf.mxu3  ;;  %v2247_v2 = vmul.f32 %v6449_v24, %v2246_v47  ;;  %vm6556_vm12 = vcmp.eq.f32.partialorder %v2733_v19, 8.507059e+37 }
 0x21e   : > { %v6472_v20 = vpop.eup %4778  ;;  %v6474_v13 = vadd.f32 1.0, %v4777_v54  ;;  %v1794_v44 = vadd.f32 %v6176_v36, %v1793_v17  ;;  %v2736_v12 = vor.u32 1.1754944e-38, %v2735_v30 }
 0x21f   : > { %v2725_v37 = vmul.f32 %v6472_v20, %v6443_v56  ;;  %v2248_v31 = vadd.f32 %v6449_v24, %v2247_v2  ;;  %vm2730_vm7 = vweird.f32 %v6472_v20 }
 0x220   : > { %v6480_v57 = vpop.eup %4780  ;;  %4784 = vrcp.f32 %v6474_v13  ;;  %v4211_v58 = vmul.f32 -1.442695, %v1794_v44  ;;  %v2748_v60 = vand.u32 2147483647, %v6474_v13  ;;  %v2750_v61 = vand.u32 2147483648, %v6474_v13  ;;  %vm6552_vm11 = vmor %vm2729_vm1, %vm2730_vm7 }
 0x221   : > { %v4783_v26 = vpop.eup %4782  ;;  %v2726_v27 = vsub.f32 1.0, %v2725_v37  ;;  %4786 = vpow2.f32 %v4270_v35  ;;  %v2260_v25 = vmul.f32 %v6480_v57, %v6452_v1  ;;  %vm2265_vm5 = vweird.f32 %v6480_v57 }
 0x222   : > { %v6484_v39 = vadd.f32 1.0, %v4783_v26  ;;  %4788 = vpow2.f32 %v4211_v58  ;;  %v2523_v5 = vpop.f32.mrf.mxu0  ;;  %vm6518_vm8 = vmor %vm2264_vm4, %vm2265_vm5  ;;  %v2252_v10 = vsel %vm6535_vm9, %v6449_v24, %v2248_v31  ;;  %vm2744_vm13 = vweird.f32 %v6474_v13 }
 0x223   : > { %2560 = vmatmul.bf16.gmra.mxu0 %v2433_v33  ;;  %v2524_v23 = vadd.f32 %v6385_v11, %v2523_v5  ;;  %v2261_v55 = vsub.f32 1.0, %v2260_v25  ;;  %v2727_v43 = vmul.f32 %v6472_v20, %v2726_v27  ;;  %v2257_v4 = vsel %vm6496_vm3, %v2256_v22, %v2252_v10 }
 0x224   : > { %4790 = vrcp.f32 %v6484_v39  ;;  %vm2749_vm15 = vcmp.eq.f32.partialorder %v2748_v60, 8.507059e+37  ;;  %v2751_v35 = vor.u32 1.1754944e-38, %v2750_v61  ;;  %v2285_v47 = vand.u32 2147483648, %v6484_v39 }
 0x225   : > { %v4271_v28 = vmul.f32 -1.442695, %v2524_v23  ;;  %v2262_v51 = vmul.f32 %v6480_v57, %v2261_v55  ;;  %v2728_v18 = vadd.f32 %v6472_v20, %v2727_v43  ;;  %v2283_v5 = vand.u32 2147483647, %v6484_v39 }
 0x226   : > { %v4785_v45 = vpop.eup %4784  ;;  %vm2279_vm0 = vweird.f32 %v6484_v39  ;;  %v2286_v41 = vor.u32 1.1754944e-38, %v2285_v47 }
 0x227   : > { %v4787_v38 = vpop.eup %4786  ;;  %v2740_v15 = vmul.f32 %v4785_v45, %v6474_v13  ;;  %4792 = vpow2.f32 %v4271_v28  ;;  %v2263_v21 = vadd.f32 %v6480_v57, %v2262_v51  ;;  %vm2745_vm10 = vweird.f32 %v4785_v45 }
 0x228   : > { %v6512_v50 = vadd.f32 1.0, %v4787_v38  ;;  %v4789_v49 = vpop.eup %4788  ;;  %v2732_v16 = vsel %vm6552_vm11, %v6472_v20, %v2728_v18  ;;  %vm2746_vm14 = vmor %vm2744_vm13, %vm2745_vm10  ;;  %vm6590_vm2 = vcmp.eq.f32.partialorder %v2283_v5, 8.507059e+37 }
 0x229   : > { %v2741_v52 = vsub.f32 1.0, %v2740_v15  ;;  %v1796_v29 = vpop.f32.mrf.mxu3  ;;  %v6528_v42 = vadd.f32 1.0, %v4789_v49  ;;  %v2267_v6 = vsel %vm6518_vm8, %v6480_v57, %v2263_v21  ;;  %v2737_v57 = vsel %vm6556_vm12, %v2736_v12, %v2732_v16 }
 0x22a   : > { %v6525_v0 = vpop.eup %4790  ;;  %4794 = vrcp.f32 %v6512_v50  ;;  %v1797_v32 = vadd.f32 %v6176_v36, %v1796_v29  ;;  %v2272_v24 = vsel %vm6505_vm6, %v2271_v53, %v2267_v6  ;;  %v2763_v51 = vand.u32 2147483647, %v6512_v50 }
 0x22b   : > { %v2275_v63 = vmul.f32 %v6525_v0, %v6484_v39  ;;  %v2742_v8 = vmul.f32 %v4785_v45, %v2741_v52  ;;  %4796 = vrcp.f32 %v6528_v42  ;;  %v2434_v13 = vpack.c.bf16 %v2272_v24, %v2257_v4 }
 0x22c   : > { %v4212_v7 = vmul.f32 -1.442695, %v1797_v32  ;;  %v2298_v43 = vand.u32 2147483647, %v6528_v42  ;;  %v2300_v28 = vand.u32 2147483648, %v6528_v42  ;;  %vm2280_vm1 = vweird.f32 %v6525_v0 }
 0x22d   : > { %v2743_v54 = vadd.f32 %v4785_v45, %v2742_v8  ;;  %v4793_v56 = vpop.eup %4792  ;;  %v2276_v44 = vsub.f32 1.0, %v2275_v63  ;;  %vm2294_vm3 = vweird.f32 %v6528_v42  ;;  %vm2759_vm5 = vweird.f32 %v6512_v50  ;;  %vm6604_vm6 = vmor %vm2279_vm0, %vm2280_vm1 }
 0x22e   : > { %4798 = vpow2.f32 %v4212_v7  ;;  %v6568_v17 = vadd.f32 1.0, %v4793_v56  ;;  %v2526_v14 = vpop.f32.mrf.mxu0  ;;  %v2765_v49 = vand.u32 2147483648, %v6512_v50  ;;  %vm6608_vm7 = vcmp.eq.f32.partialorder %v2298_v43, 8.507059e+37 }
 0x22f   : > { %v2747_v37 = vsel %vm2746_vm14, %v4785_v45, %v2743_v54  ;;  %v2527_v20 = vadd.f32 %v6385_v11, %v2526_v14  ;;  %v2277_v2 = vmul.f32 %v6525_v0, %v2276_v44  ;;  %v2301_v60 = vor.u32 1.1754944e-38, %v2300_v28 }
 0x230   : > { %v6571_v62 = vpop.eup %4794  ;;  %v2752_v33 = vsel %vm2749_vm15, %v2751_v35, %v2747_v37  ;;  %4800 = vrcp.f32 %v6568_v17  ;;  %vm6612_vm8 = vcmp.eq.f32.partialorder %v2763_v51, 8.507059e+37  ;;  %v2778_v12 = vand.u32 2147483647, %v6568_v17  ;;  %v6682_v51 = vld [vmem:[%s7515_s3 + $0x1] ss:$0 sm:$0xff] }
 0x231   : > { %v2755_v26 = vmul.f32 %v6571_v62, %v6512_v50  ;;  %v1798_v27 = vpop.f32.mrf.mxu3  ;;  %v3204_v58 = vpack.c.bf16 %v2752_v33, %v2737_v57  ;;  %v4797_v34 = vpop.eup %4796  ;;  %v4272_v25 = vmul.f32 -1.442695, %v2527_v20  ;;  %v2278_v53 = vadd.f32 %v6525_v0, %v2277_v2 }
 0x232   : > { %v1799_v9 = vadd.f32 %v6176_v36, %v1798_v27  ;;  %v2290_v22 = vmul.f32 %v4797_v34, %v6528_v42  ;;  %vm2295_vm4 = vweird.f32 %v4797_v34  ;;  %vm2760_vm10 = vweird.f32 %v6571_v62 }
 0x233   : > { %3396 = vmatmul.bf16.vlgmr.msrb.gmra.mxu1 %v3204_v58  ;;  %3485 = vmatmul.bf16.vlgmr.msrb.gmra.mxu2 %v3204_v58  ;;  %v2756_v40 = vsub.f32 1.0, %v2755_v26  ;;  %4802 = vpow2.f32 %v4272_v25  ;;  %vm6618_vm9 = vmor %vm2294_vm3, %vm2295_vm4  ;;  %v2282_v8 = vsel %vm6604_vm6, %v6525_v0, %v2278_v53  ;;  %v2780_v42 = vand.u32 2147483648, %v6568_v17 }
 0x234   : > { %v4799_v23 = vpop.eup %4798  ;;  %v4213_v55 = vmul.f32 -1.442695, %v1799_v9  ;;  %2565 = vmatmul.bf16.gmra.mxu0 %v2434_v13  ;;  %3574 = vmatmul.bf16.vlgmr.msrb.gmra.mxu3 %v3204_v58  ;;  %v2291_v45 = vsub.f32 1.0, %v2290_v22  ;;  %vm6644_vm12 = vmor %vm2759_vm5, %vm2760_vm10  ;;  %v2766_v56 = vor.u32 1.1754944e-38, %v2765_v49  ;;  %vm2774_vm13 = vweird.f32 %v6568_v17 }
 0x235   : > { %v6585_v19 = vadd.f32 1.0, %v4799_v23  ;;  %v2757_v38 = vmul.f32 %v6571_v62, %v2756_v40  ;;  %v2287_v44 = vsel %vm6590_vm2, %v2286_v41, %v2282_v8  ;;  %v2781_v47 = vor.u32 1.1754944e-38, %v2780_v42 }
 0x236   : > { %4804 = vpow2.f32 %v4213_v55  ;;  %v4801_v15 = vpop.eup %4800  ;;  %v2528_v31 = vpop.f32.mrf.mxu0  ;;  %v2292_v30 = vmul.f32 %v4797_v34, %v2291_v45  ;;  %vm2779_vm15 = vcmp.eq.f32.partialorder %v2778_v12, 8.507059e+37 }
 0x237   : > { %4806 = vrcp.f32 %v6585_v19  ;;  %v2529_v21 = vadd.f32 %v6385_v11, %v2528_v31  ;;  %v2770_v52 = vmul.f32 %v4801_v15, %v6568_v17  ;;  %v2758_v6 = vadd.f32 %v6571_v62, %v2757_v38 }
 0x238   : > { %v2293_v48 = vadd.f32 %v4797_v34, %v2292_v30  ;;  %vm2775_vm11 = vweird.f32 %v4801_v15  ;;  %v2315_v25 = vand.u32 2147483648, %v6585_v19  ;;  %vm2309_vm0 = vweird.f32 %v6585_v19 }
 0x239   : > { %v4803_v32 = vpop.eup %4802  ;;  %v4273_v1 = vmul.f32 -1.442695, %v2529_v21  ;;  %v2771_v63 = vsub.f32 1.0, %v2770_v52  ;;  %v2762_v14 = vsel %vm6644_vm12, %v6571_v62, %v2758_v6  ;;  %vm2776_vm14 = vmor %vm2774_vm13, %vm2775_vm11 }
 0x23a   : > { %v6624_v10 = vadd.f32 1.0, %v4803_v32  ;;  %v2297_v7 = vsel %vm6618_vm9, %v4797_v34, %v2293_v48  ;;  %v2767_v62 = vsel %vm6612_vm8, %v2766_v56, %v2762_v14  ;;  %v2313_v34 = vand.u32 2147483647, %v6585_v19 }
 0x23b   : > { %4808 = vpow2.f32 %v4273_v1  ;;  %v2772_v3 = vmul.f32 %v4801_v15, %v2771_v63  ;;  %v2302_v0 = vsel %vm6608_vm7, %v2301_v60, %v2297_v7  ;;  %v2316_v45 = vor.u32 1.1754944e-38, %v2315_v25 }
 0x23c   : > { %v4805_v59 = vpop.eup %4804  ;;  %4810 = vrcp.f32 %v6624_v10  ;;  %v2435_v20 = vpack.c.bf16 %v2302_v0, %v2287_v44  ;;  %vm6674_vm1 = vcmp.eq.f32.partialorder %v2313_v34, 8.507059e+37  ;;  %vm2789_vm4 = vweird.f32 %v6624_v10 }
 0x23d   : > { %v6633_v24 = vpop.eup %4806  ;;  %v6636_v16 = vadd.f32 1.0, %v4805_v59  ;;  %v1801_v35 = vpop.f32.mrf.mxu3  ;;  %v2773_v37 = vadd.f32 %v4801_v15, %v2772_v3  ;;  %v2793_v53 = vand.u32 2147483647, %v6624_v10  ;;  %v2795_v3 = vand.u32 2147483648, %v6624_v10 }
 0x23e   : > { %v2305_v4 = vmul.f32 %v6633_v24, %v6585_v19  ;;  %v1802_v50 = vadd.f32 %v6176_v36, %v1801_v35  ;;  %vm2310_vm2 = vweird.f32 %v6633_v24 }
 0x23f   : > { %4812 = vrcp.f32 %v6636_v16  ;;  %v2777_v13 = vsel %vm2776_vm14, %v4801_v15, %v2773_v37  ;;  %v2328_v55 = vand.u32 2147483647, %v6636_v16  ;;  %vm2324_vm3 = vweird.f32 %v6636_v16  ;;  %vm6701_vm6 = vmor %vm2309_vm0, %vm2310_vm2 }
 0x240   : > { %v2306_v57 = vsub.f32 1.0, %v2305_v4  ;;  %v4214_v33 = vmul.f32 -1.442695, %v1802_v50  ;;  %v2531_v26 = vpop.f32.mrf.mxu0  ;;  %v2782_v17 = vsel %vm2779_vm15, %v2781_v47, %v2777_v13  ;;  %v2330_v29 = vand.u32 2147483648, %v6636_v16 }
 0x241   : > { %v4809_v27 = vpop.eup %4808  ;;  %v2532_v58 = vadd.f32 %v6385_v11, %v2531_v26  ;;  %v3205_v36 = vpack.c.bf16 %v2782_v17, %v2767_v62  ;;  %vm6690_vm5 = vcmp.eq.f32.partialorder %v2328_v55, 8.507059e+37  ;;  %vm2794_vm12 = vcmp.eq.f32.partialorder %v2793_v53, 8.507059e+37 }
 0x242   : > { %v6664_v9 = vpop.eup %4810  ;;  %v6666_v5 = vadd.f32 1.0, %v4809_v27  ;;  %4814 = vpow2.f32 %v4214_v33  ;;  %v2307_v2 = vmul.f32 %v6633_v24, %v2306_v57  ;;  %v2331_v59 = vor.u32 1.1754944e-38, %v2330_v29 }
 0x243   : > { %v2785_v22 = vmul.f32 %v6664_v9, %v6624_v10  ;;  %v4274_v40 = vmul.f32 -1.442695, %v2532_v58  ;;  %3401 = vmatmul.bf16.gmra.mxu1 %v3205_v36  ;;  %3490 = vmatmul.bf16.gmra.mxu2 %v3205_v36  ;;  %vm2790_vm8 = vweird.f32 %v6664_v9 }
 0x244   : > { %2570 = vmatmul.bf16.gmra.mxu0 %v2435_v20  ;;  %4816 = vrcp.f32 %v6666_v5  ;;  %3579 = vmatmul.bf16.gmra.mxu3 %v3205_v36  ;;  %v2308_v38 = vadd.f32 %v6633_v24, %v2307_v2  ;;  %v2808_v12 = vand.u32 2147483647, %v6666_v5  ;;  %vm6720_vm10 = vmor %vm2789_vm4, %vm2790_vm8  ;;  %v2810_v56 = vand.u32 2147483648, %v6666_v5 }
 0x245   : > { %v4813_v23 = vpop.eup %4812  ;;  %4818 = vpow2.f32 %v4274_v40  ;;  %v1803_v41 = vpop.f32.mrf.mxu3  ;;  %v2786_v15 = vsub.f32 1.0, %v2785_v22  ;;  %v2796_v20 = vor.u32 1.1754944e-38, %v2795_v3  ;;  %vm2804_vm13 = vweird.f32 %v6666_v5 }
 0x246   : > { %v2320_v28 = vmul.f32 %v4813_v23, %v6636_v16  ;;  %v1804_v46 = vadd.f32 %v6682_v51, %v1803_v41  ;;  %vm2325_vm7 = vweird.f32 %v4813_v23  ;;  %v2312_v39 = vsel %vm6701_vm6, %v6633_v24, %v2308_v38 }
 0x247   : > { %v2787_v48 = vmul.f32 %v6664_v9, %v2786_v15  ;;  %vm2326_vm9 = vmor %vm2324_vm3, %vm2325_vm7  ;;  %v2317_v4 = vsel %vm6674_vm1, %v2316_v45, %v2312_v39  ;;  %vm6735_vm14 = vcmp.eq.f32.partialorder %v2808_v12, 8.507059e+37  ;;  %v2811_v36 = vor.u32 1.1754944e-38, %v2810_v56 }
 0x248   : > { %v2321_v31 = vsub.f32 1.0, %v2320_v28  ;;  %v4815_v30 = vpop.eup %4814  ;;  %v4215_v21 = vmul.f32 -1.442695, %v1804_v46  ;;  %v2533_v49 = vpop.f32.mrf.mxu0 }
 0x249   : > { %v6696_v18 = vadd.f32 1.0, %v4815_v30  ;;  %v2534_v60 = vadd.f32 %v6385_v11, %v2533_v49  ;;  %v2788_v6 = vadd.f32 %v6664_v9, %v2787_v48 }
 0x24a   : > { %v2322_v32 = vmul.f32 %v4813_v23, %v2321_v31  ;;  %v4817_v1 = vpop.eup %4816  ;;  %4820 = vpow2.f32 %v4215_v21 }
 0x24b   : > { %v4819_v63 = vpop.eup %4818  ;;  %4822 = vrcp.f32 %v6696_v18  ;;  %v4275_v19 = vmul.f32 -1.442695, %v2534_v60  ;;  %v2800_v7 = vmul.f32 %v4817_v1, %v6666_v5  ;;  %v2792_v10 = vsel %vm6720_vm10, %v6664_v9, %v2788_v6 }
 0x24c   : > { %v2323_v8 = vadd.f32 %v4813_v23, %v2322_v32  ;;  %v6712_v42 = vadd.f32 1.0, %v4819_v63  ;;  %vm2805_vm11 = vweird.f32 %v4817_v1  ;;  %v2797_v58 = vsel %vm2794_vm12, %v2796_v20, %v2792_v10 }
 0x24d   : > { %4824 = vpow2.f32 %v4275_v19  ;;  %v2801_v54 = vsub.f32 1.0, %v2800_v7  ;;  %vm2806_vm15 = vmor %vm2804_vm13, %vm2805_vm11  ;;  %v2343_v34 = vand.u32 2147483647, %v6696_v18  ;;  %v2345_v2 = vand.u32 2147483648, %v6696_v18 }
 0x24e   : > { %v2327_v24 = vsel %vm2326_vm9, %v4813_v23, %v2323_v8  ;;  %4826 = vrcp.f32 %v6712_v42  ;;  %v1806_v16 = vpop.f32.mrf.mxu3  ;;  %v2825_v46 = vand.u32 2147483648, %v6712_v42  ;;  %vm2339_vm0 = vweird.f32 %v6696_v18 }
 0x24f   : > { %v2332_v35 = vsel %vm6690_vm5, %v2331_v59, %v2327_v24  ;;  %v1807_v14 = vadd.f32 %v6682_v51, %v1806_v16  ;;  %v2802_v50 = vmul.f32 %v4817_v1, %v2801_v54  ;;  %vm2819_vm1 = vweird.f32 %v6712_v42 }
 0x250   : > { %v2436_v37 = vpack.c.bf16 %v2332_v35, %v2317_v4  ;;  %v4821_v44 = vpop.eup %4820  ;;  %v2536_v47 = vpop.f32.mrf.mxu0  ;;  %vm6763_vm2 = vcmp.eq.f32.partialorder %v2343_v34, 8.507059e+37  ;;  %v2346_v30 = vor.u32 1.1754944e-38, %v2345_v2  ;;  %v2823_v49 = vand.u32 2147483647, %v6712_v42 }
 0x251   : > { %v6739_v57 = vpop.eup %4822  ;;  %v6741_v33 = vadd.f32 1.0, %v4821_v44  ;;  %v4216_v26 = vmul.f32 -1.442695, %v1807_v14  ;;  %v2537_v62 = vadd.f32 %v6385_v11, %v2536_v47  ;;  %v2803_v17 = vadd.f32 %v4817_v1, %v2802_v50 }
 0x252   : > { %v2335_v27 = vmul.f32 %v6739_v57, %v6696_v18  ;;  %vm2340_vm3 = vweird.f32 %v6739_v57  ;;  %v2826_v39 = vor.u32 1.1754944e-38, %v2825_v46  ;;  %vm6795_vm8 = vcmp.eq.f32.partialorder %v2823_v49, 8.507059e+37 }
 0x253   : > { %v4825_v25 = vpop.eup %4824  ;;  %4828 = vrcp.f32 %v6741_v33  ;;  %v4276_v9 = vmul.f32 -1.442695, %v2537_v62  ;;  %v2807_v5 = vsel %vm2806_vm15, %v4817_v1, %v2803_v17  ;;  %v2358_v21 = vand.u32 2147483647, %v6741_v33  ;;  %vm6782_vm5 = vmor %vm2339_vm0, %vm2340_vm3 }
 0x254   : > { %2575 = vmatmul.bf16.gmra.mxu0 %v2436_v37  ;;  %v6749_v22 = vpop.eup %4826  ;;  %v6751_v40 = vadd.f32 1.0, %v4825_v25  ;;  %4830 = vpow2.f32 %v4216_v26  ;;  %v2812_v23 = vsel %vm6735_vm14, %v2811_v36, %v2807_v5  ;;  %v2336_v55 = vsub.f32 1.0, %v2335_v27 }
 0x255   : > { %v2815_v41 = vmul.f32 %v6749_v22, %v6712_v42  ;;  %4832 = vpow2.f32 %v4276_v9  ;;  %v3206_v43 = vpack.c.bf16 %v2812_v23, %v2797_v58  ;;  %vm2354_vm4 = vweird.f32 %v6741_v33 }
 0x256   : > { %4834 = vrcp.f32 %v6751_v40  ;;  %v1808_v45 = vpop.f32.mrf.mxu3  ;;  %v2337_v28 = vmul.f32 %v6739_v57, %v2336_v55  ;;  %v2360_v8 = vand.u32 2147483648, %v6741_v33  ;;  %vm6786_vm6 = vcmp.eq.f32.partialorder %v2358_v21, 8.507059e+37 }
 0x257   : > { %v1809_v38 = vadd.f32 %v6682_v51, %v1808_v45  ;;  %3406 = vmatmul.bf16.gmra.mxu1 %v3206_v43  ;;  %3495 = vmatmul.bf16.gmra.mxu2 %v3206_v43  ;;  %v2816_v15 = vsub.f32 1.0, %v2815_v41  ;;  %vm2820_vm7 = vweird.f32 %v6749_v22  ;;  %v2840_v56 = vand.u32 2147483648, %v6751_v40 }
 0x258   : > { %v2538_v31 = vpop.f32.mrf.mxu0  ;;  %3584 = vmatmul.bf16.gmra.mxu3 %v3206_v43  ;;  %v2338_v60 = vadd.f32 %v6739_v57, %v2337_v28  ;;  %vm2834_vm10 = vweird.f32 %v6751_v40  ;;  %v2361_v47 = vor.u32 1.1754944e-38, %v2360_v8  ;;  %vm6811_vm11 = vmor %vm2819_vm1, %vm2820_vm7  ;;  %v2838_v13 = vand.u32 2147483647, %v6751_v40 }
 0x259   : > { %v4829_v52 = vpop.eup %4828  ;;  %v4217_v29 = vmul.f32 -1.442695, %v1809_v38  ;;  %v2539_v48 = vadd.f32 %v6385_v11, %v2538_v31  ;;  %v2817_v1 = vmul.f32 %v6749_v22, %v2816_v15  ;;  %v2841_v36 = vor.u32 1.1754944e-38, %v2840_v56 }
 0x25a   : > { %v4831_v61 = vpop.eup %4830  ;;  %v2350_v32 = vmul.f32 %v4829_v52, %v6741_v33  ;;  %v2342_v0 = vsel %vm6782_vm5, %v6739_v57, %v2338_v60  ;;  %vm2355_vm9 = vweird.f32 %v4829_v52  ;;  %vm2839_vm15 = vcmp.eq.f32.partialorder %v2838_v13, 8.507059e+37 }
 0x25b   : > { %v4833_v6 = vpop.eup %4832  ;;  %v6775_v63 = vadd.f32 1.0, %v4831_v61  ;;  %4836 = vpow2.f32 %v4217_v29  ;;  %v4277_v19 = vmul.f32 -1.442695, %v2539_v48  ;;  %v2818_v35 = vadd.f32 %v6749_v22, %v2817_v1  ;;  %vm2356_vm12 = vmor %vm2354_vm4, %vm2355_vm9 }
 0x25c   : > { %v4835_v7 = vpop.eup %4834  ;;  %v6778_v59 = vadd.f32 1.0, %v4833_v6  ;;  %v2351_v12 = vsub.f32 1.0, %v2350_v32  ;;  %v2347_v50 = vsel %vm6763_vm2, %v2346_v30, %v2342_v0 }
 0x25d   : > { %4838 = vrcp.f32 %v6775_v63  ;;  %v2830_v18 = vmul.f32 %v4835_v7, %v6751_v40  ;;  %vm2835_vm13 = vweird.f32 %v4835_v7  ;;  %v2822_v42 = vsel %vm6811_vm11, %v6749_v22, %v2818_v35 }
 0x25e   : > { %4840 = vrcp.f32 %v6778_v59  ;;  %v1811_v16 = vpop.f32.mrf.mxu3  ;;  %v2352_v4 = vmul.f32 %v4829_v52, %v2351_v12  ;;  %vm2836_vm14 = vmor %vm2834_vm10, %vm2835_vm13  ;;  %v2373_v22 = vand.u32 2147483647, %v6775_v63  ;;  %v2827_v46 = vsel %vm6795_vm8, %v2826_v39, %v2822_v42 }
 0x25f   : > { %4842 = vpow2.f32 %v4277_v19  ;;  %v1812_v10 = vadd.f32 %v6682_v51, %v1811_v16  ;;  %v2831_v14 = vsub.f32 1.0, %v2830_v18  ;;  %vm2369_vm0 = vweird.f32 %v6775_v63 }
 0x260   : > { %v2541_v37 = vpop.f32.mrf.mxu0  ;;  %v2353_v44 = vadd.f32 %v4829_v52, %v2352_v4  ;;  %vm6847_vm1 = vcmp.eq.f32.partialorder %v2373_v22, 8.507059e+37  ;;  %vm2849_vm3 = vweird.f32 %v6778_v59  ;;  %v2855_v8 = vand.u32 2147483648, %v6778_v59 }
 0x261   : > { %v4837_v57 = vpop.eup %4836  ;;  %v4218_v26 = vmul.f32 -1.442695, %v1812_v10  ;;  %v2542_v62 = vadd.f32 %v6385_v11, %v2541_v37  ;;  %v2832_v17 = vmul.f32 %v4835_v7, %v2831_v14  ;;  %v2853_v18 = vand.u32 2147483647, %v6778_v59 }
 0x262   : > { %v6820_v27 = vadd.f32 1.0, %v4837_v57  ;;  %v2357_v58 = vsel %vm2356_vm12, %v4829_v52, %v2353_v44  ;;  %v2856_v44 = vor.u32 1.1754944e-38, %v2855_v8 }
 0x263   : > { %v6825_v34 = vpop.eup %4838  ;;  %4844 = vpow2.f32 %v4218_v26  ;;  %v4278_v25 = vmul.f32 -1.442695, %v2542_v62  ;;  %v2362_v9 = vsel %vm6786_vm6, %v2361_v47, %v2357_v58  ;;  %v2833_v5 = vadd.f32 %v4835_v7, %v2832_v17 }
 0x264   : > { %v6829_v33 = vpop.eup %4840  ;;  %v2365_v2 = vmul.f32 %v6825_v34, %v6775_v63  ;;  %4846 = vrcp.f32 %v6820_v27  ;;  %v2437_v23 = vpack.c.bf16 %v2362_v9, %v2347_v50  ;;  %vm2370_vm2 = vweird.f32 %v6825_v34 }
 0x265   : > { %v4843_v55 = vpop.eup %4842  ;;  %v2845_v41 = vmul.f32 %v6829_v33, %v6778_v59  ;;  %4848 = vpow2.f32 %v4278_v25  ;;  %v2837_v43 = vsel %vm2836_vm14, %v4835_v7, %v2833_v5  ;;  %v2388_v1 = vand.u32 2147483647, %v6820_v27  ;;  %vm6868_vm4 = vmor %vm2369_vm0, %vm2370_vm2 }
 0x266   : > { %v6839_v45 = vadd.f32 1.0, %v4843_v55  ;;  %v1813_v28 = vpop.f32.mrf.mxu3  ;;  %2580 = vmatmul.bf16.gmra.mxu0 %v2437_v23  ;;  %v2842_v38 = vsel %vm2839_vm15, %v2841_v36, %v2837_v43  ;;  %v2366_v15 = vsub.f32 1.0, %v2365_v2  ;;  %v2390_v12 = vand.u32 2147483648, %v6820_v27 }
 0x267   : > { %v1814_v40 = vadd.f32 %v6682_v51, %v1813_v28  ;;  %v3207_v31 = vpack.c.bf16 %v2842_v38, %v2827_v46  ;;  %v2846_v49 = vsub.f32 1.0, %v2845_v41  ;;  %v2375_v51 = vand.u32 2147483648, %v6775_v63 }
 0x268   : > { %4850 = vrcp.f32 %v6839_v45  ;;  %v2543_v53 = vpop.f32.mrf.mxu0  ;;  %v2367_v30 = vmul.f32 %v6825_v34, %v2366_v15  ;;  %vm2384_vm5 = vweird.f32 %v6820_v27  ;;  %vm6880_vm6 = vcmp.eq.f32.partialorder %v2388_v1, 8.507059e+37 }
 0x269   : > { %v4845_v52 = vpop.eup %4844  ;;  %v4219_v29 = vmul.f32 -1.442695, %v1814_v40  ;;  %v2544_v48 = vadd.f32 %v6385_v11, %v2543_v53  ;;  %3411 = vmatmul.bf16.gmra.mxu1 %v3207_v31  ;;  %3500 = vmatmul.bf16.gmra.mxu2 %v3207_v31  ;;  %v2847_v24 = vmul.f32 %v6829_v33, %v2846_v49  ;;  %v2376_v63 = vor.u32 1.1754944e-38, %v2375_v51 }
 0x26a   : > { %v4847_v60 = vpop.eup %4846  ;;  %v6854_v61 = vadd.f32 1.0, %v4845_v52  ;;  %3589 = vmatmul.bf16.gmra.mxu3 %v3207_v31  ;;  %v2368_v32 = vadd.f32 %v6825_v34, %v2367_v30  ;;  %vm2850_vm8 = vweird.f32 %v6829_v33  ;;  %v2391_v37 = vor.u32 1.1754944e-38, %v2390_v12 }
 0x26b   : > { %v4849_v39 = vpop.eup %4848  ;;  %4852 = vpow2.f32 %v4219_v29  ;;  %v4279_v6 = vmul.f32 -1.442695, %v2544_v48  ;;  %v2380_v19 = vmul.f32 %v4847_v60, %v6820_v27  ;;  %vm2385_vm7 = vweird.f32 %v4847_v60  ;;  %vm6905_vm12 = vmor %vm2849_vm3, %vm2850_vm8 }
 0x26c   : > { %4854 = vrcp.f32 %v6854_v61  ;;  %v6862_v7 = vadd.f32 1.0, %v4849_v39  ;;  %v2372_v0 = vsel %vm6868_vm4, %v6825_v34, %v2368_v32  ;;  %v2848_v50 = vadd.f32 %v6829_v33, %v2847_v24  ;;  %vm2386_vm10 = vmor %vm2384_vm5, %vm2385_vm7 }
 0x26d   : > { %4856 = vpow2.f32 %v4279_v6  ;;  %v2381_v54 = vsub.f32 1.0, %v2380_v19  ;;  %v2377_v14 = vsel %vm6847_vm1, %v2376_v63, %v2372_v0  ;;  %vm2864_vm9 = vweird.f32 %v6839_v45 }
 0x26e   : > { %v4851_v56 = vpop.eup %4850  ;;  %4858 = vrcp.f32 %v6862_v7  ;;  %v2868_v17 = vand.u32 2147483647, %v6839_v45  ;;  %v2870_v58 = vand.u32 2147483648, %v6839_v45  ;;  %v2852_v23 = vsel %vm6905_vm12, %v6829_v33, %v2848_v50 }
 0x26f   : > { %v2860_v4 = vmul.f32 %v4851_v56, %v6839_v45  ;;  %v2382_v35 = vmul.f32 %v4847_v60, %v2381_v54  ;;  %vm2865_vm11 = vweird.f32 %v4851_v56  ;;  %v2403_v28 = vand.u32 2147483647, %v6854_v61  ;;  %v6931_v45 = vld [vmem:[%s7515_s3 + $0x2] ss:$0 sm:$0xff] }
 0x270   : > { %v2546_v10 = vpop.f32.mrf.mxu0  ;;  %vm2866_vm13 = vmor %vm2864_vm9, %vm2865_vm11  ;;  %v2871_v41 = vor.u32 1.1754944e-38, %v2870_v58  ;;  %vm2854_vm14 = vcmp.eq.f32.partialorder %v2853_v18, 8.507059e+37  ;;  %vm2869_vm15 = vcmp.eq.f32.partialorder %v2868_v17, 8.507059e+37  ;;  %v2405_v53 = vand.u32 2147483648, %v6854_v61 }
 0x271   : > { %v4853_v47 = vpop.eup %4852  ;;  %v2547_v20 = vadd.f32 %v6385_v11, %v2546_v10  ;;  %v2383_v13 = vadd.f32 %v4847_v60, %v2382_v35  ;;  %v2861_v57 = vsub.f32 1.0, %v2860_v4  ;;  %v2857_v15 = vsel %vm2854_vm14, %v2856_v44, %v2852_v23 }
 0x272   : > { %v6891_v26 = vpop.eup %4854  ;;  %v6893_v62 = vadd.f32 1.0, %v4853_v47  ;;  %vm2399_vm0 = vweird.f32 %v6854_v61  ;;  %vm6936_vm2 = vcmp.eq.f32.partialorder %v2403_v28, 8.507059e+37  ;;  %vm2879_vm3 = vweird.f32 %v6862_v7 }
 0x273   : > { %v4857_v42 = vpop.eup %4856  ;;  %v2395_v11 = vmul.f32 %v6891_v26, %v6854_v61  ;;  %v4280_v36 = vmul.f32 -1.442695, %v2547_v20  ;;  %v2387_v34 = vsel %vm2386_vm10, %v4847_v60, %v2383_v13  ;;  %v2862_v27 = vmul.f32 %v4851_v56, %v2861_v57 }
 0x274   : > { %v6909_v9 = vpop.eup %4858  ;;  %4860 = vrcp.f32 %v6893_v62  ;;  %v6912_v5 = vadd.f32 1.0, %v4857_v42  ;;  %v2392_v2 = vsel %vm6880_vm6, %v2391_v37, %v2387_v34  ;;  %vm2400_vm1 = vweird.f32 %v6891_v26 }
 0x275   : > { %v2875_v59 = vmul.f32 %v6909_v9, %v6862_v7  ;;  %4862 = vpow2.f32 %v4280_v36  ;;  %v2438_v22 = vpack.c.bf16 %v2392_v2, %v2377_v14  ;;  %v2863_v55 = vadd.f32 %v4851_v56, %v2862_v27  ;;  %vm6956_vm5 = vmor %vm2399_vm0, %vm2400_vm1 }
 0x276   : > { %4864 = vrcp.f32 %v6912_v5  ;;  %v2396_v43 = vsub.f32 1.0, %v2395_v11  ;;  %v2883_v29 = vand.u32 2147483647, %v6862_v7  ;;  %v2406_v19 = vor.u32 1.1754944e-38, %v2405_v53 }
 0x277   : > { %2585 = vmatmul.bf16.gmra.mxu0 %v2438_v22  ;;  %v2867_v46 = vsel %vm2866_vm13, %v4851_v56, %v2863_v55  ;;  %v2876_v33 = vsub.f32 1.0, %v2875_v59  ;;  %vm2414_vm4 = vweird.f32 %v6893_v62  ;;  %v2418_v8 = vand.u32 2147483647, %v6893_v62 }
 0x278   : > { %v2548_v38 = vpop.f32.mrf.mxu0  ;;  %v2872_v40 = vsel %vm2869_vm15, %v2871_v41, %v2867_v46  ;;  %v2397_v31 = vmul.f32 %v6891_v26, %v2396_v43  ;;  %v2420_v24 = vand.u32 2147483648, %v6893_v62  ;;  %vm2880_vm7 = vweird.f32 %v6909_v9 }
 0x279   : > { %v2549_v30 = vadd.f32 %v6931_v45, %v2548_v38  ;;  %v3208_v21 = vpack.c.bf16 %v2872_v40, %v2857_v15  ;;  %v2877_v1 = vmul.f32 %v6909_v9, %v2876_v33  ;;  %v2885_v54 = vand.u32 2147483648, %v6862_v7  ;;  %vm6979_vm10 = vmor %vm2879_vm3, %vm2880_vm7 }
 0x27a   : > { %v4861_v49 = vpop.eup %4860  ;;  %v2398_v60 = vadd.f32 %v6891_v26, %v2397_v31  ;;  %vm6966_vm8 = vcmp.eq.f32.partialorder %v2418_v8, 8.507059e+37  ;;  %vm6970_vm9 = vcmp.eq.f32.partialorder %v2883_v29, 8.507059e+37  ;;  %v2898_v10 = vand.u32 2147483647, %v6912_v5 }
 0x27b   : > { %v4863_v48 = vpop.eup %4862  ;;  %v4281_v51 = vmul.f32 -1.442695, %v2549_v30  ;;  %3416 = vmatmul.bf16.gmra.mxu1 %v3208_v21  ;;  %3505 = vmatmul.bf16.gmra.mxu2 %v3208_v21  ;;  %v2410_v32 = vmul.f32 %v4861_v49, %v6893_v62  ;;  %vm2415_vm6 = vweird.f32 %v4861_v49  ;;  %v2878_v63 = vadd.f32 %v6909_v9, %v2877_v1 }
 0x27c   : > { %v4865_v39 = vpop.eup %4864  ;;  %v6945_v6 = vadd.f32 1.0, %v4863_v48  ;;  %3594 = vmatmul.bf16.gmra.mxu3 %v3208_v21  ;;  %v2402_v18 = vsel %vm6956_vm5, %v6891_v26, %v2398_v60  ;;  %v2900_v14 = vand.u32 2147483648, %v6912_v5  ;;  %vm2416_vm12 = vmor %vm2414_vm4, %vm2415_vm6  ;;  %v2421_v13 = vor.u32 1.1754944e-38, %v2420_v24 }
 0x27d   : > { %v2890_v3 = vmul.f32 %v4865_v39, %v6912_v5  ;;  %4866 = vpow2.f32 %v4281_v51  ;;  %v2411_v12 = vsub.f32 1.0, %v2410_v32  ;;  %vm2895_vm11 = vweird.f32 %v4865_v39 }
 0x27e   : > { %4868 = vrcp.f32 %v6945_v6  ;;  %v2407_v20 = vsel %vm6936_vm2, %v2406_v19, %v2402_v18  ;;  %v2886_v57 = vor.u32 1.1754944e-38, %v2885_v54  ;;  %vm2894_vm13 = vweird.f32 %v6912_v5 }
 0x27f   : > { %v2412_v56 = vmul.f32 %v4861_v49, %v2411_v12  ;;  %v2891_v16 = vsub.f32 1.0, %v2890_v3  ;;  %v2882_v58 = vsel %vm6979_vm10, %v6909_v9, %v2878_v63  ;;  %vm2896_vm14 = vmor %vm2894_vm13, %vm2895_vm11  ;;  %vm2899_vm15 = vcmp.eq.f32.partialorder %v2898_v10, 8.507059e+37 }
 0x280   : > { %v2551_v4 = vpop.f32.mrf.mxu0  ;;  %v2901_v62 = vor.u32 1.1754944e-38, %v2900_v14  ;;  %v2887_v2 = vsel %vm6970_vm9, %v2886_v57, %v2882_v58  ;;  %vm2909_vm1 = vweird.f32 %v6945_v6  ;;  %v2913_v53 = vand.u32 2147483647, %v6945_v6 }
 0x281   : > { %v2552_v37 = vadd.f32 %v6931_v45, %v2551_v4  ;;  %v2413_v50 = vadd.f32 %v4861_v49, %v2412_v56  ;;  %v2892_v47 = vmul.f32 %v4865_v39, %v2891_v16  ;;  %v2915_v30 = vand.u32 2147483648, %v6945_v6 }
 0x282   : > { %vm2914_vm5 = vcmp.eq.f32.partialorder %v2913_v53, 8.507059e+37 }
 0x283   : > { %v4867_v26 = vpop.eup %4866  ;;  %v4282_v17 = vmul.f32 -1.442695, %v2552_v37  ;;  %v2417_v7 = vsel %vm2416_vm12, %v4861_v49, %v2413_v50  ;;  %v2893_v42 = vadd.f32 %v4865_v39, %v2892_v47 }
 0x284   : > { %v4869_v11 = vpop.eup %4868  ;;  %v2705_v36 = vadd.f32 1.0, %v4867_v26  ;;  %v2422_v34 = vsel %vm6966_vm8, %v2421_v13, %v2417_v7 }
 0x285   : > { %v2905_v25 = vmul.f32 %v4869_v11, %v6945_v6  ;;  %4870 = vpow2.f32 %v4282_v17  ;;  %v2439_v27 = vpack.c.bf16 %v2422_v34, %v2407_v20  ;;  %v2897_v5 = vsel %vm2896_vm14, %v4865_v39, %v2893_v42 }
 0x286   : > { %4872 = vrcp.f32 %v2705_v36  ;;  %v2902_v23 = vsel %vm2899_vm15, %v2901_v62, %v2897_v5  ;;  %vm2910_vm0 = vweird.f32 %v4869_v11  ;;  %v2930_v21 = vand.u32 2147483648, %v2705_v36 }
 0x287   : > { %2590 = vmatmul.bf16.gmra.mxu0 %v2439_v27  ;;  %v3209_v9 = vpack.c.bf16 %v2902_v23, %v2887_v2  ;;  %v2906_v59 = vsub.f32 1.0, %v2905_v25  ;;  %v2928_v29 = vand.u32 2147483647, %v2705_v36  ;;  %vm7005_vm3 = vmor %vm2909_vm1, %vm2910_vm0  ;;  %vm2924_vm4 = vweird.f32 %v2705_v36 }
 0x288   : > { %v2553_v22 = vpop.f32.mrf.mxu0  ;;  %v2916_v6 = vor.u32 1.1754944e-38, %v2915_v30  ;;  %v2931_v8 = vor.u32 1.1754944e-38, %v2930_v21 }
 0x289   : > { %v2554_v55 = vadd.f32 %v6931_v45, %v2553_v22  ;;  %v2907_v28 = vmul.f32 %v4869_v11, %v2906_v59  ;;  %vm2929_vm7 = vcmp.eq.f32.partialorder %v2928_v29, 8.507059e+37 }
 0x28b   : > { %v4871_v41 = vpop.eup %4870  ;;  %v4283_v43 = vmul.f32 -1.442695, %v2554_v55  ;;  %3421 = vmatmul.bf16.gmra.mxu1 %v3209_v9  ;;  %3510 = vmatmul.bf16.gmra.mxu2 %v3209_v9  ;;  %v2908_v15 = vadd.f32 %v4869_v11, %v2907_v28 }
 0x28c   : > { %v4873_v46 = vpop.eup %4872  ;;  %v6998_v33 = vadd.f32 1.0, %v4871_v41  ;;  %3599 = vmatmul.bf16.gmra.mxu3 %v3209_v9 }
 0x28d   : > { %v2920_v38 = vmul.f32 %v4873_v46, %v2705_v36  ;;  %4874 = vpow2.f32 %v4283_v43  ;;  %vm2925_vm2 = vweird.f32 %v4873_v46  ;;  %v2912_v32 = vsel %vm7005_vm3, %v4869_v11, %v2908_v15  ;;  %v3252_v43 = vld [vmem:[%s7517_s5] sm:$0x7] }
 0x28e   : > { %4876 = vrcp.f32 %v6998_v33  ;;  %vm2926_vm6 = vmor %vm2924_vm4, %vm2925_vm2  ;;  %v2917_v24 = vsel %vm2914_vm5, %v2916_v6, %v2912_v32  ;;  %vm2939_vm9 = vweird.f32 %v6998_v33  ;;  %v2943_v47 = vand.u32 2147483647, %v6998_v33 }
 0x28f   : > { %v2921_v40 = vsub.f32 1.0, %v2920_v38  ;;  %v2945_v20 = vand.u32 2147483648, %v6998_v33 }
 0x290   : > { %v2556_v31 = vpop.f32.mrf.mxu0  ;;  %vm2944_vm13 = vcmp.eq.f32.partialorder %v2943_v47, 8.507059e+37 }
 0x291   : > { %v2557_v49 = vadd.f32 %v6931_v45, %v2556_v31  ;;  %v2922_v52 = vmul.f32 %v4873_v46, %v2921_v40  ;;  %v2946_v25 = vor.u32 1.1754944e-38, %v2945_v20  ;;  %v7043_v40 = vperm.slane %v3252_v43, 0 }
 0x293   : > { %v4875_v51 = vpop.eup %4874  ;;  %v4284_v60 = vmul.f32 -1.442695, %v2557_v49  ;;  %v2923_v1 = vadd.f32 %v4873_v46, %v2922_v52 }
 0x294   : > { %v4877_v39 = vpop.eup %4876  ;;  %v2707_v19 = vadd.f32 1.0, %v4875_v51 }
 0x295   : > { %v2935_v3 = vmul.f32 %v4877_v39, %v6998_v33  ;;  %4878 = vpow2.f32 %v4284_v60  ;;  %v2927_v12 = vsel %vm2926_vm6, %v4873_v46, %v2923_v1  ;;  %vm2940_vm8 = vweird.f32 %v4877_v39 }
 0x296   : > { %4880 = vrcp.f32 %v2707_v19  ;;  %v2932_v0 = vsel %vm2929_vm7, %v2931_v8, %v2927_v12  ;;  %v2960_v13 = vand.u32 2147483648, %v2707_v19  ;;  %v2958_v17 = vand.u32 2147483647, %v2707_v19  ;;  %vm7020_vm11 = vmor %vm2939_vm9, %vm2940_vm8 }
 0x297   : > { %v3210_v54 = vpack.c.bf16 %v2932_v0, %v2917_v24  ;;  %v2936_v18 = vsub.f32 1.0, %v2935_v3  ;;  %vm2954_vm12 = vweird.f32 %v2707_v19  ;;  %v7069_v24 = vperm.slane %v3252_v43, 2 }
 0x298   : > { %v2558_v56 = vpop.f32.mrf.mxu0  ;;  %v2961_v27 = vor.u32 1.1754944e-38, %v2960_v13  ;;  %vm2959_vm15 = vcmp.eq.f32.partialorder %v2958_v17, 8.507059e+37 }
 0x299   : > { %v2559_v63 = vadd.f32 %v6931_v45, %v2558_v56  ;;  %v2937_v61 = vmul.f32 %v4877_v39, %v2936_v18 }
 0x29b   : > { %v4879_v16 = vpop.eup %4878  ;;  %v4285_v4 = vmul.f32 -1.442695, %v2559_v63  ;;  %3426 = vmatmul.bf16.gmra.mxu1 %v3210_v54  ;;  %3515 = vmatmul.bf16.gmra.mxu2 %v3210_v54  ;;  %v2938_v37 = vadd.f32 %v4877_v39, %v2937_v61 }
 0x29c   : > { %v4881_v35 = vpop.eup %4880  ;;  %v7013_v10 = vadd.f32 1.0, %v4879_v16  ;;  %3604 = vmatmul.bf16.gmra.mxu3 %v3210_v54 }
 0x29d   : > { %v2950_v14 = vmul.f32 %v4881_v35, %v2707_v19  ;;  %4882 = vpow2.f32 %v4285_v4  ;;  %vm2955_vm10 = vweird.f32 %v4881_v35  ;;  %v2942_v11 = vsel %vm7020_vm11, %v4877_v39, %v2938_v37 }
 0x29e   : > { %4884 = vrcp.f32 %v7013_v10  ;;  %vm2956_vm14 = vmor %vm2954_vm12, %vm2955_vm10  ;;  %v2947_v23 = vsel %vm2944_vm13, %v2946_v25, %v2942_v11  ;;  %vm2969_vm0 = vweird.f32 %v7013_v10  ;;  %v2973_v29 = vand.u32 2147483647, %v7013_v10 }
 0x29f   : > { %v2951_v50 = vsub.f32 1.0, %v2950_v14  ;;  %v2975_v48 = vand.u32 2147483648, %v7013_v10  ;;  %v7064_v19 = vperm.slane %v3252_v43, 1 }
 0x2a0   : > { %v2561_v44 = vpop.f32.mrf.mxu0  ;;  %vm2974_vm5 = vcmp.eq.f32.partialorder %v2973_v29, 8.507059e+37 }
 0x2a1   : > { %v2562_v57 = vadd.f32 %v6931_v45, %v2561_v44  ;;  %v2952_v26 = vmul.f32 %v4881_v35, %v2951_v50  ;;  %v2976_v18 = vor.u32 1.1754944e-38, %v2975_v48 }
 0x2a3   : > { %v4883_v58 = vpop.eup %4882  ;;  %v4286_v42 = vmul.f32 -1.442695, %v2562_v57  ;;  %v2953_v36 = vadd.f32 %v4881_v35, %v2952_v26 }
 0x2a4   : > { %v7026_v34 = vpop.eup %4884  ;;  %v7028_v62 = vadd.f32 1.0, %v4883_v58 }
 0x2a5   : > { %v2965_v5 = vmul.f32 %v7026_v34, %v7013_v10  ;;  %4886 = vpow2.f32 %v4286_v42  ;;  %v2957_v2 = vsel %vm2956_vm14, %v4881_v35, %v2953_v36  ;;  %vm2970_vm1 = vweird.f32 %v7026_v34 }
 0x2a6   : > { %4888 = vrcp.f32 %v7028_v62  ;;  %v2962_v9 = vsel %vm2959_vm15, %v2961_v27, %v2957_v2  ;;  %v2990_v51 = vand.u32 2147483648, %v7028_v62  ;;  %v2988_v1 = vand.u32 2147483647, %v7028_v62  ;;  %vm7059_vm3 = vmor %vm2969_vm0, %vm2970_vm1 }
 0x2a7   : > { %v3211_v59 = vpack.c.bf16 %v2962_v9, %v2947_v23  ;;  %v2966_v22 = vsub.f32 1.0, %v2965_v5  ;;  %vm2984_vm4 = vweird.f32 %v7028_v62 }
 0x2a8   : > { %v2563_v55 = vpop.f32.mrf.mxu0  ;;  %v2991_v56 = vor.u32 1.1754944e-38, %v2990_v51  ;;  %vm2989_vm7 = vcmp.eq.f32.partialorder %v2988_v1, 8.507059e+37 }
 0x2a9   : > { %v2564_v41 = vadd.f32 %v6931_v45, %v2563_v55  ;;  %v2967_v33 = vmul.f32 %v7026_v34, %v2966_v22 }
 0x2ab   : > { %v4887_v28 = vpop.eup %4886  ;;  %v4287_v46 = vmul.f32 -1.442695, %v2564_v41  ;;  %3431 = vmatmul.bf16.gmra.mxu1 %v3211_v59  ;;  %3520 = vmatmul.bf16.gmra.mxu2 %v3211_v59  ;;  %v2968_v30 = vadd.f32 %v7026_v34, %v2967_v33 }
 0x2ac   : > { %v4889_v38 = vpop.eup %4888  ;;  %v7041_v15 = vadd.f32 1.0, %v4887_v28  ;;  %3609 = vmatmul.bf16.gmra.mxu3 %v3211_v59 }
 0x2ad   : > { %v2980_v31 = vmul.f32 %v4889_v38, %v7028_v62  ;;  %4890 = vpow2.f32 %v4287_v46  ;;  %vm2985_vm2 = vweird.f32 %v4889_v38  ;;  %v2972_v3 = vsel %vm7059_vm3, %v7026_v34, %v2968_v30 }
 0x2ae   : > { %4892 = vrcp.f32 %v7041_v15  ;;  %vm2986_vm6 = vmor %vm2984_vm4, %vm2985_vm2  ;;  %v2977_v61 = vsel %vm2974_vm5, %v2976_v18, %v2972_v3  ;;  %v3003_v25 = vand.u32 2147483647, %v7041_v15  ;;  %vm2999_vm9 = vweird.f32 %v7041_v15 }
 0x2af   : > { %v2981_v21 = vsub.f32 1.0, %v2980_v31  ;;  %v3005_v59 = vand.u32 2147483648, %v7041_v15 }
 0x2b0   : > { %v3397_v53 = vpop.f32.mrf.mxu1  ;;  %vm3004_vm13 = vcmp.eq.f32.partialorder %v3003_v25, 8.507059e+37 }
 0x2b1   : > { %v2566_v49 = vpop.f32.mrf.mxu0  ;;  %v3398_v52 = vadd.f32 %v3397_v53, %v7043_v40  ;;  %v2982_v32 = vmul.f32 %v4889_v38, %v2981_v21  ;;  %v3006_v21 = vor.u32 1.1754944e-38, %v3005_v59 }
 0x2b2   : > { %v2567_v60 = vadd.f32 %v6931_v45, %v2566_v49 }
 0x2b3   : > { %3655 = vst [vmem:[%s7056_s15] sm:$0xff] %v3398_v52  ;;  %v4891_v6 = vpop.eup %4890  ;;  %v2983_v12 = vadd.f32 %v4889_v38, %v2982_v32 }
 0x2b4   : > { %v4288_v8 = vmul.f32 -1.442695, %v2567_v60  ;;  %v7071_v0 = vpop.eup %4892  ;;  %v7073_v54 = vadd.f32 1.0, %v4891_v6 }
 0x2b5   : > { %v2995_v63 = vmul.f32 %v7071_v0, %v7041_v15  ;;  %v2987_v16 = vsel %vm2986_vm6, %v4889_v38, %v2983_v12  ;;  %vm3000_vm8 = vweird.f32 %v7071_v0 }
 0x2b6   : > { %4894 = vpow2.f32 %v4288_v8  ;;  %v3486_v4 = vpop.f32.mrf.mxu2  ;;  %v2992_v35 = vsel %vm2989_vm7, %v2991_v56, %v2987_v16  ;;  %v3018_v22 = vand.u32 2147483647, %v7073_v54  ;;  %v3020_v55 = vand.u32 2147483648, %v7073_v54  ;;  %vm7104_vm11 = vmor %vm2999_vm9, %vm3000_vm8 }
 0x2b7   : > { %4896 = vrcp.f32 %v7073_v54  ;;  %v3487_v10 = vadd.f32 %v3486_v4, %v7064_v19  ;;  %v3575_v14 = vpop.f32.mrf.mxu3  ;;  %v3212_v37 = vpack.c.bf16 %v2992_v35, %v2977_v61  ;;  %v2996_v47 = vsub.f32 1.0, %v2995_v63 }
 0x2b8   : > { %v3576_v50 = vadd.f32 %v3575_v14, %v7069_v24  ;;  %v3399_v44 = vpop.f32.mrf.mxu1  ;;  %vm3014_vm12 = vweird.f32 %v7073_v54  ;;  %v3021_v49 = vor.u32 1.1754944e-38, %v3020_v55  ;;  %vm3019_vm15 = vcmp.eq.f32.partialorder %v3018_v22, 8.507059e+37 }
 0x2b9   : > { %v2568_v20 = vpop.f32.mrf.mxu0  ;;  %3656 = vst [vmem:[%s7056_s15 + $0x8] sm:$0xff] %v3487_v10  ;;  %v3400_v13 = vadd.f32 %v3399_v44, %v7043_v40  ;;  %v2997_v7 = vmul.f32 %v7071_v0, %v2996_v47 }
 0x2ba   : > { %v2569_v57 = vadd.f32 %v6931_v45, %v2568_v20  ;;  %3657 = vst [vmem:[%s7056_s15 + $0x10] sm:$0xff] %v3576_v50 }
 0x2bb   : > { %3658 = vst [vmem:[%s7056_s15 + $0x18] sm:$0xff] %v3400_v13  ;;  %3436 = vmatmul.bf16.gmra.mxu1 %v3212_v37  ;;  %3525 = vmatmul.bf16.gmra.mxu2 %v3212_v37  ;;  %v2998_v5 = vadd.f32 %v7071_v0, %v2997_v7 }
 0x2bc   : > { %v4895_v26 = vpop.eup %4894  ;;  %v4289_v17 = vmul.f32 -1.442695, %v2569_v57  ;;  %3614 = vmatmul.bf16.gmra.mxu3 %v3212_v37 }
 0x2bd   : > { %v4897_v58 = vpop.eup %4896  ;;  %v7087_v42 = vadd.f32 1.0, %v4895_v26  ;;  %v3002_v15 = vsel %vm7104_vm11, %v7071_v0, %v2998_v5 }
 0x2be   : > { %v3010_v11 = vmul.f32 %v4897_v58, %v7073_v54  ;;  %4898 = vpow2.f32 %v4289_v17  ;;  %v3488_v36 = vpop.f32.mrf.mxu2  ;;  %vm3015_vm10 = vweird.f32 %v4897_v58  ;;  %v3007_v48 = vsel %vm3004_vm13, %v3006_v21, %v3002_v15 }
 0x2bf   : > { %4900 = vrcp.f32 %v7087_v42  ;;  %v3489_v34 = vadd.f32 %v3488_v36, %v7064_v19  ;;  %v3577_v62 = vpop.f32.mrf.mxu3  ;;  %vm3016_vm14 = vmor %vm3014_vm12, %vm3015_vm10  ;;  %v3033_v35 = vand.u32 2147483647, %v7087_v42  ;;  %v3035_v50 = vand.u32 2147483648, %v7087_v42 }
 0x2c0   : > { %v3578_v27 = vadd.f32 %v3577_v62, %v7069_v24  ;;  %v3011_v2 = vsub.f32 1.0, %v3010_v11  ;;  %v3402_v9 = vpop.f32.mrf.mxu1  ;;  %vm3029_vm1 = vweird.f32 %v7087_v42 }
 0x2c1   : > { %v2571_v23 = vpop.f32.mrf.mxu0  ;;  %3659 = vst [vmem:[%s7056_s15 + $0x20] sm:$0xff] %v3489_v34  ;;  %v3403_v43 = vadd.f32 %v3402_v9, %v7043_v40  ;;  %vm7147_vm4 = vcmp.eq.f32.partialorder %v3033_v35, 8.507059e+37 }
 0x2c2   : > { %v2572_v41 = vadd.f32 %v6931_v45, %v2571_v23  ;;  %3660 = vst [vmem:[%s7056_s15 + $0x28] sm:$0xff] %v3578_v27  ;;  %v3012_v28 = vmul.f32 %v4897_v58, %v3011_v2  ;;  %v3036_v2 = vor.u32 1.1754944e-38, %v3035_v50 }
 0x2c3   : > { %3661 = vst [vmem:[%s7056_s15 + $0x30] sm:$0xff] %v3403_v43 }
 0x2c4   : > { %v4899_v33 = vpop.eup %4898  ;;  %v4290_v38 = vmul.f32 -1.442695, %v2572_v41  ;;  %v3013_v31 = vadd.f32 %v4897_v58, %v3012_v28 }
 0x2c5   : > { %v7113_v53 = vpop.eup %4900  ;;  %v7115_v30 = vadd.f32 1.0, %v4899_v33 }
 0x2c6   : > { %v3025_v52 = vmul.f32 %v7113_v53, %v7087_v42  ;;  %4902 = vpow2.f32 %v4290_v38  ;;  %v3017_v29 = vsel %vm3016_vm14, %v4897_v58, %v3013_v31  ;;  %v3491_v32 = vpop.f32.mrf.mxu2  ;;  %vm3030_vm0 = vweird.f32 %v7113_v53 }
 0x2c7   : > { %4904 = vrcp.f32 %v7115_v30  ;;  %v3022_v51 = vsel %vm3019_vm15, %v3021_v49, %v3017_v29  ;;  %v3580_v1 = vpop.f32.mrf.mxu3  ;;  %v3492_v8 = vadd.f32 %v3491_v32, %v7064_v19  ;;  %v3048_v57 = vand.u32 2147483647, %v7115_v30  ;;  %vm7143_vm3 = vmor %vm3029_vm1, %vm3030_vm0 }
 0x2c8   : > { %v3213_v60 = vpack.c.bf16 %v3022_v51, %v3007_v48  ;;  %v3026_v39 = vsub.f32 1.0, %v3025_v52  ;;  %v3581_v3 = vadd.f32 %v3580_v1, %v7069_v24  ;;  %v3404_v12 = vpop.f32.mrf.mxu1  ;;  %v3050_v26 = vand.u32 2147483648, %v7115_v30 }
 0x2c9   : > { %v2573_v6 = vpop.f32.mrf.mxu0  ;;  %v3405_v54 = vadd.f32 %v3404_v12, %v7043_v40  ;;  %3662 = vst [vmem:[%s7056_s15 + $0x38] sm:$0xff] %v3492_v8  ;;  %vm3044_vm5 = vweird.f32 %v7115_v30  ;;  %vm3049_vm7 = vcmp.eq.f32.partialorder %v3048_v57, 8.507059e+37 }
 0x2ca   : > { %v2574_v0 = vadd.f32 %v6931_v45, %v2573_v6  ;;  %3663 = vst [vmem:[%s7056_s15 + $0x40] sm:$0xff] %v3581_v3  ;;  %v3027_v63 = vmul.f32 %v7113_v53, %v3026_v39  ;;  %v3051_v23 = vor.u32 1.1754944e-38, %v3050_v26 }
 0x2cb   : > { %3441 = vmatmul.bf16.gmra.mxu1 %v3213_v60  ;;  %3530 = vmatmul.bf16.gmra.mxu2 %v3213_v60  ;;  %3664 = vst [vmem:[%s7056_s15 + $0x48] sm:$0xff] %v3405_v54 }
 0x2cc   : > { %v4903_v18 = vpop.eup %4902  ;;  %v4291_v56 = vmul.f32 -1.442695, %v2574_v0  ;;  %3619 = vmatmul.bf16.gmra.mxu3 %v3213_v60  ;;  %v3028_v37 = vadd.f32 %v7113_v53, %v3027_v63 }
 0x2cd   : > { %v4905_v16 = vpop.eup %4904  ;;  %v7127_v4 = vadd.f32 1.0, %v4903_v18 }
 0x2ce   : > { %v3040_v61 = vmul.f32 %v4905_v16, %v7115_v30  ;;  %4906 = vpow2.f32 %v4291_v56  ;;  %v3493_v10 = vpop.f32.mrf.mxu2  ;;  %vm3045_vm2 = vweird.f32 %v4905_v16  ;;  %v3032_v62 = vsel %vm7143_vm3, %v7113_v53, %v3028_v37 }
 0x2cf   : > { %4908 = vrcp.f32 %v7127_v4  ;;  %v3582_v14 = vpop.f32.mrf.mxu3  ;;  %v3494_v20 = vadd.f32 %v3493_v10, %v7064_v19  ;;  %vm3046_vm6 = vmor %vm3044_vm5, %vm3045_vm2  ;;  %v3037_v55 = vsel %vm7147_vm4, %v3036_v2, %v3032_v62  ;;  %v3065_v32 = vand.u32 2147483648, %v7127_v4 }
 0x2d0   : > { %v3041_v44 = vsub.f32 1.0, %v3040_v61  ;;  %v3583_v13 = vadd.f32 %v3582_v14, %v7069_v24  ;;  %vm3059_vm9 = vweird.f32 %v7127_v4  ;;  %v3063_v8 = vand.u32 2147483647, %v7127_v4 }
 0x2d1   : > { %v2576_v47 = vpop.f32.mrf.mxu0  ;;  %3665 = vst [vmem:[%s7056_s15 + $0x50] sm:$0xff] %v3494_v20  ;;  %v3066_v18 = vor.u32 1.1754944e-38, %v3065_v32 }
 0x2d2   : > { %v2577_v17 = vadd.f32 %v6931_v45, %v2576_v47  ;;  %v3042_v7 = vmul.f32 %v4905_v16, %v3041_v44  ;;  %3666 = vst [vmem:[%s7056_s15 + $0x58] sm:$0xff] %v3583_v13  ;;  %vm3064_vm14 = vcmp.eq.f32.partialorder %v3063_v8, 8.507059e+37 }
 0x2d4   : > { %v4907_v36 = vpop.eup %4906  ;;  %v4292_v34 = vmul.f32 -1.442695, %v2577_v17  ;;  %v3043_v25 = vadd.f32 %v4905_v16, %v3042_v7  ;;  %v3407_v5 = vpop.f32.mrf.mxu1 }
 0x2d5   : > { %v7156_v42 = vpop.eup %4908  ;;  %v7158_v27 = vadd.f32 1.0, %v4907_v36  ;;  %v3408_v59 = vadd.f32 %v3407_v5, %v7043_v40 }
 0x2d6   : > { %v3055_v9 = vmul.f32 %v7156_v42, %v7127_v4  ;;  %4910 = vpow2.f32 %v4292_v34  ;;  %v3047_v22 = vsel %vm3046_vm6, %v4905_v16, %v3043_v25  ;;  %vm3060_vm8 = vweird.f32 %v7156_v42 }
 0x2d7   : > { %4912 = vrcp.f32 %v7158_v27  ;;  %v3052_v41 = vsel %vm3049_vm7, %v3051_v23, %v3047_v22  ;;  %3667 = vst [vmem:[%s7056_s15 + $0x60] sm:$0xff] %v3408_v59  ;;  %v3080_v6 = vand.u32 2147483648, %v7158_v27  ;;  %v3078_v12 = vand.u32 2147483647, %v7158_v27  ;;  %vm7186_vm11 = vmor %vm3059_vm9, %vm3060_vm8 }
 0x2d8   : > { %v3214_v43 = vpack.c.bf16 %v3052_v41, %v3037_v55  ;;  %v3056_v28 = vsub.f32 1.0, %v3055_v9  ;;  %vm3074_vm12 = vweird.f32 %v7158_v27 }
 0x2d9   : > { %v2578_v46 = vpop.f32.mrf.mxu0  ;;  %v3081_v44 = vor.u32 1.1754944e-38, %v3080_v6  ;;  %vm3079_vm15 = vcmp.eq.f32.partialorder %v3078_v12, 8.507059e+37 }
 0x2da   : > { %v2579_v33 = vadd.f32 %v6931_v45, %v2578_v46  ;;  %v3496_v38 = vpop.f32.mrf.mxu2  ;;  %v3057_v21 = vmul.f32 %v7156_v42, %v3056_v28 }
 0x2db   : > { %3446 = vmatmul.bf16.gmra.mxu1 %v3214_v43  ;;  %3535 = vmatmul.bf16.gmra.mxu2 %v3214_v43  ;;  %v3497_v53 = vadd.f32 %v3496_v38, %v7064_v19  ;;  %v3585_v30 = vpop.f32.mrf.mxu3 }
 0x2dc   : > { %v4911_v15 = vpop.eup %4910  ;;  %v4293_v31 = vmul.f32 -1.442695, %v2579_v33  ;;  %3624 = vmatmul.bf16.gmra.mxu3 %v3214_v43  ;;  %v3586_v29 = vadd.f32 %v3585_v30, %v7069_v24  ;;  %v3409_v48 = vpop.f32.mrf.mxu1  ;;  %v3058_v1 = vadd.f32 %v7156_v42, %v3057_v21 }
 0x2dd   : > { %v4913_v49 = vpop.eup %4912  ;;  %v7170_v52 = vadd.f32 1.0, %v4911_v15  ;;  %3668 = vst [vmem:[%s7056_s15 + $0x68] sm:$0xff] %v3497_v53  ;;  %v3410_v60 = vadd.f32 %v3409_v48, %v7043_v40 }
 0x2de   : > { %v3070_v51 = vmul.f32 %v4913_v49, %v7158_v27  ;;  %4914 = vpow2.f32 %v4293_v31  ;;  %3669 = vst [vmem:[%s7056_s15 + $0x70] sm:$0xff] %v3586_v29  ;;  %vm3075_vm10 = vweird.f32 %v4913_v49  ;;  %v3062_v4 = vsel %vm7186_vm11, %v7156_v42, %v3058_v1 }
 0x2df   : > { %4916 = vrcp.f32 %v7170_v52  ;;  %3670 = vst [vmem:[%s7056_s15 + $0x78] sm:$0xff] %v3410_v60  ;;  %vm3076_vm13 = vmor %vm3074_vm12, %vm3075_vm10  ;;  %v3067_v26 = vsel %vm3064_vm14, %v3066_v18, %v3062_v4  ;;  %vm3089_vm0 = vweird.f32 %v7170_v52  ;;  %v3093_v46 = vand.u32 2147483647, %v7170_v52 }
 0x2e0   : > { %v3071_v39 = vsub.f32 1.0, %v3070_v51  ;;  %v3095_v33 = vand.u32 2147483648, %v7170_v52 }
 0x2e1   : > { %vm3094_vm5 = vcmp.eq.f32.partialorder %v3093_v46, 8.507059e+37 }
 0x2e2   : > { %v3072_v3 = vmul.f32 %v4913_v49, %v3071_v39  ;;  %v3498_v0 = vpop.f32.mrf.mxu2  ;;  %v3096_v48 = vor.u32 1.1754944e-38, %v3095_v33 }
 0x2e3   : > { %v2581_v63 = vpop.f32.mrf.mxu0  ;;  %v3499_v16 = vadd.f32 %v3498_v0, %v7064_v19  ;;  %v3587_v61 = vpop.f32.mrf.mxu3 }
 0x2e4   : > { %v4915_v56 = vpop.eup %4914  ;;  %v3073_v35 = vadd.f32 %v4913_v49, %v3072_v3  ;;  %v2582_v37 = vadd.f32 %v6931_v45, %v2581_v63  ;;  %v3588_v50 = vadd.f32 %v3587_v61, %v7069_v24 }
 0x2e5   : > { %v7195_v10 = vpop.eup %4916  ;;  %v7197_v14 = vadd.f32 1.0, %v4915_v56  ;;  %3671 = vst [vmem:[%s7056_s15 + $0x80] sm:$0xff] %v3499_v16 }
 0x2e6   : > { %v3085_v47 = vmul.f32 %v7195_v10, %v7170_v52  ;;  %v3077_v20 = vsel %vm3076_vm13, %v4913_v49, %v3073_v35  ;;  %v4294_v13 = vmul.f32 -1.442695, %v2582_v37  ;;  %3672 = vst [vmem:[%s7056_s15 + $0x88] sm:$0xff] %v3588_v50  ;;  %v3412_v57 = vpop.f32.mrf.mxu1  ;;  %vm3090_vm1 = vweird.f32 %v7195_v10 }
 0x2e7   : > { %4918 = vrcp.f32 %v7197_v14  ;;  %v3082_v17 = vsel %vm3079_vm15, %v3081_v44, %v3077_v20  ;;  %v3413_v7 = vadd.f32 %v3412_v57, %v7043_v40  ;;  %v3110_v38 = vand.u32 2147483648, %v7197_v14  ;;  %vm7232_vm3 = vmor %vm3089_vm0, %vm3090_vm1 }
 0x2e8   : > { %v3215_v58 = vpack.c.bf16 %v3082_v17, %v3067_v26  ;;  %v3086_v11 = vsub.f32 1.0, %v3085_v47  ;;  %4920 = vpow2.f32 %v4294_v13  ;;  %v3108_v31 = vand.u32 2147483647, %v7197_v14 }
 0x2e9   : > { %3673 = vst [vmem:[%s7056_s15 + $0x90] sm:$0xff] %v3413_v7  ;;  %vm3104_vm4 = vweird.f32 %v7197_v14  ;;  %v3111_v51 = vor.u32 1.1754944e-38, %v3110_v38 }
 0x2ea   : > { %v3087_v34 = vmul.f32 %v7195_v10, %v3086_v11  ;;  %vm3109_vm7 = vcmp.eq.f32.partialorder %v3108_v31, 8.507059e+37 }
 0x2eb   : > { %v2583_v36 = vpop.f32.mrf.mxu0  ;;  %3451 = vmatmul.bf16.gmra.mxu1 %v3215_v58  ;;  %3540 = vmatmul.bf16.gmra.mxu2 %v3215_v58 }
 0x2ec   : > { %v2584_v25 = vadd.f32 %v6931_v45, %v2583_v36  ;;  %3629 = vmatmul.bf16.gmra.mxu3 %v3215_v58  ;;  %v3501_v42 = vpop.f32.mrf.mxu2  ;;  %v3088_v43 = vadd.f32 %v7195_v10, %v3087_v34 }
 0x2ed   : > { %v4919_v62 = vpop.eup %4918  ;;  %v3502_v5 = vadd.f32 %v3501_v42, %v7064_v19  ;;  %v3590_v2 = vpop.f32.mrf.mxu3 }
 0x2ee   : > { %v3100_v27 = vmul.f32 %v4919_v62, %v7197_v14  ;;  %v4921_v23 = vpop.eup %4920  ;;  %v4295_v9 = vmul.f32 -1.442695, %v2584_v25  ;;  %v3591_v59 = vadd.f32 %v3590_v2, %v7069_v24  ;;  %v3414_v22 = vpop.f32.mrf.mxu1  ;;  %vm3105_vm2 = vweird.f32 %v4919_v62 }
 0x2ef   : > { %v7216_v55 = vadd.f32 1.0, %v4921_v23  ;;  %3674 = vst [vmem:[%s7056_s15 + $0x98] sm:$0xff] %v3502_v5  ;;  %v3415_v41 = vadd.f32 %v3414_v22, %v7043_v40  ;;  %v3092_v30 = vsel %vm7232_vm3, %v7195_v10, %v3088_v43  ;;  %vm3106_vm6 = vmor %vm3104_vm4, %vm3105_vm2 }
 0x2f0   : > { %v3101_v28 = vsub.f32 1.0, %v3100_v27  ;;  %4922 = vpow2.f32 %v4295_v9  ;;  %3675 = vst [vmem:[%s7056_s15 + $0xa0] sm:$0xff] %v3591_v59  ;;  %v3097_v8 = vsel %vm3094_vm5, %v3096_v48, %v3092_v30 }
 0x2f1   : > { %4924 = vrcp.f32 %v7216_v55  ;;  %3676 = vst [vmem:[%s7056_s15 + $0xa8] sm:$0xff] %v3415_v41  ;;  %v3123_v11 = vand.u32 2147483647, %v7216_v55  ;;  %v3125_v34 = vand.u32 2147483648, %v7216_v55  ;;  %vm3119_vm9 = vweird.f32 %v7216_v55 }
 0x2f2   : > { %v3102_v15 = vmul.f32 %v4919_v62, %v3101_v28 }
 0x2f3   : > { %vm7281_vm12 = vcmp.eq.f32.partialorder %v3123_v11, 8.507059e+37  ;;  %v3126_v28 = vor.u32 1.1754944e-38, %v3125_v34 }
 0x2f4   : > { %v3103_v21 = vadd.f32 %v4919_v62, %v3102_v15  ;;  %v2586_v49 = vpop.f32.mrf.mxu0  ;;  %v3503_v29 = vpop.f32.mrf.mxu2 }
 0x2f5   : > { %v2587_v52 = vadd.f32 %v6931_v45, %v2586_v49  ;;  %v3504_v60 = vadd.f32 %v3503_v29, %v7064_v19  ;;  %v3592_v32 = vpop.f32.mrf.mxu3 }
 0x2f6   : > { %v3107_v1 = vsel %vm3106_vm6, %v4919_v62, %v3103_v21  ;;  %v4923_v39 = vpop.eup %4922  ;;  %v3593_v6 = vadd.f32 %v3592_v32, %v7069_v24 }
 0x2f7   : > { %v3112_v3 = vsel %vm3109_vm7, %v3111_v51, %v3107_v1  ;;  %v7243_v12 = vpop.eup %4924  ;;  %v7245_v0 = vadd.f32 1.0, %v4923_v39  ;;  %v4296_v54 = vmul.f32 -1.442695, %v2587_v52  ;;  %3677 = vst [vmem:[%s7056_s15 + $0xb0] sm:$0xff] %v3504_v60  ;;  %v4948_v60 = vld [vmem:[%s7515_s3 + $0x2] ss:$0 sm:$0xff] }
 0x2f8   : > { %v3216_v18 = vpack.c.bf16 %v3112_v3, %v3097_v8  ;;  %v3115_v56 = vmul.f32 %v7243_v12, %v7216_v55  ;;  %3678 = vst [vmem:[%s7056_s15 + $0xb8] sm:$0xff] %v3593_v6  ;;  %v3417_v63 = vpop.f32.mrf.mxu1  ;;  %vm3120_vm8 = vweird.f32 %v7243_v12 }
 0x2f9   : > { %4926 = vrcp.f32 %v7245_v0  ;;  %v3418_v16 = vadd.f32 %v3417_v63, %v7043_v40  ;;  %v3140_v62 = vand.u32 2147483648, %v7245_v0  ;;  %v3138_v27 = vand.u32 2147483647, %v7245_v0  ;;  %vm7274_vm11 = vmor %vm3119_vm9, %vm3120_vm8 }
 0x2fa   : > { %4928 = vpow2.f32 %v4296_v54  ;;  %v3116_v61 = vsub.f32 1.0, %v3115_v56  ;;  %vm3134_vm13 = vweird.f32 %v7245_v0 }
 0x2fb   : > { %3679 = vst [vmem:[%s7056_s15 + $0xc0] sm:$0xff] %v3418_v16  ;;  %3456 = vmatmul.bf16.gmra.mxu1 %v3216_v18  ;;  %3545 = vmatmul.bf16.gmra.mxu2 %v3216_v18  ;;  %v3141_v46 = vor.u32 1.1754944e-38, %v3140_v62  ;;  %vm3139_vm15 = vcmp.eq.f32.partialorder %v3138_v27, 8.507059e+37 }
 0x2fc   : > { %v2588_v4 = vpop.f32.mrf.mxu0  ;;  %3634 = vmatmul.bf16.gmra.mxu3 %v3216_v18  ;;  %v3117_v14 = vmul.f32 %v7243_v12, %v3116_v61 }
 0x2fd   : > { %v2589_v35 = vadd.f32 %v6931_v45, %v2588_v4 }
 0x2fe   : > { %v3506_v10 = vpop.f32.mrf.mxu2  ;;  %v3118_v58 = vadd.f32 %v7243_v12, %v3117_v14 }
 0x2ff   : > { %v4927_v37 = vpop.eup %4926  ;;  %v4297_v50 = vmul.f32 -1.442695, %v2589_v35  ;;  %v3507_v44 = vadd.f32 %v3506_v10, %v7064_v19  ;;  %v3595_v47 = vpop.f32.mrf.mxu3 }
 0x300   : > { %v4929_v20 = vpop.eup %4928  ;;  %v3130_v13 = vmul.f32 %v4927_v37, %v7245_v0  ;;  %v3596_v57 = vadd.f32 %v3595_v47, %v7069_v24  ;;  %v3419_v26 = vpop.f32.mrf.mxu1  ;;  %vm3135_vm10 = vweird.f32 %v4927_v37  ;;  %v3122_v9 = vsel %vm7274_vm11, %v7243_v12, %v3118_v58 }
 0x301   : > { %v7259_v17 = vadd.f32 1.0, %v4929_v20  ;;  %4930 = vpow2.f32 %v4297_v50  ;;  %3680 = vst [vmem:[%s7056_s15 + $0xc8] sm:$0xff] %v3507_v44  ;;  %v3420_v7 = vadd.f32 %v3419_v26, %v7043_v40  ;;  %vm3136_vm14 = vmor %vm3134_vm13, %vm3135_vm10  ;;  %v3127_v21 = vsel %vm7281_vm12, %v3126_v28, %v3122_v9 }
 0x302   : > { %3681 = vst [vmem:[%s7056_s15 + $0xd0] sm:$0xff] %v3596_v57  ;;  %v3131_v36 = vsub.f32 1.0, %v3130_v13 }
 0x303   : > { %4932 = vrcp.f32 %v7259_v17  ;;  %3682 = vst [vmem:[%s7056_s15 + $0xd8] sm:$0xff] %v3420_v7  ;;  %v3153_v61 = vand.u32 2147483647, %v7259_v17  ;;  %v3155_v10 = vand.u32 2147483648, %v7259_v17  ;;  %vm3149_vm1 = vweird.f32 %v7259_v17 }
 0x304   : > { %v2591_v25 = vpop.f32.mrf.mxu0  ;;  %v3132_v42 = vmul.f32 %v4927_v37, %v3131_v36 }
 0x305   : > { %v2592_v5 = vadd.f32 %v6931_v45, %v2591_v25  ;;  %vm7326_vm4 = vcmp.eq.f32.partialorder %v3153_v61, 8.507059e+37  ;;  %v3156_v62 = vor.u32 1.1754944e-38, %v3155_v10 }
 0x306   : > { %v3508_v23 = vpop.f32.mrf.mxu2  ;;  %v3133_v22 = vadd.f32 %v4927_v37, %v3132_v42 }
 0x307   : > { %v4931_v55 = vpop.eup %4930  ;;  %v4298_v41 = vmul.f32 -1.442695, %v2592_v5  ;;  %v3509_v45 = vadd.f32 %v3508_v23, %v7064_v19  ;;  %v3597_v43 = vpop.f32.mrf.mxu3 }
 0x308   : > { %v7287_v33 = vadd.f32 1.0, %v4931_v55  ;;  %v3598_v38 = vadd.f32 %v3597_v43, %v7069_v24  ;;  %v3422_v15 = vpop.f32.mrf.mxu1  ;;  %v3137_v31 = vsel %vm3136_vm14, %v4927_v37, %v3133_v22 }
 0x309   : > { %v7290_v53 = vpop.eup %4932  ;;  %4934 = vpow2.f32 %v4298_v41  ;;  %3683 = vst [vmem:[%s7056_s15 + $0xe0] sm:$0xff] %v3509_v45  ;;  %v3423_v30 = vadd.f32 %v3422_v15, %v7043_v40  ;;  %v3142_v49 = vsel %vm3139_vm15, %v3141_v46, %v3137_v31 }
 0x30a   : > { %v3145_v29 = vmul.f32 %v7290_v53, %v7259_v17  ;;  %4936 = vrcp.f32 %v7287_v33  ;;  %3684 = vst [vmem:[%s7056_s15 + $0xe8] sm:$0xff] %v3598_v38  ;;  %v3217_v48 = vpack.c.bf16 %v3142_v49, %v3127_v21  ;;  %vm3150_vm0 = vweird.f32 %v7290_v53 }
 0x30b   : > { %3685 = vst [vmem:[%s7056_s15 + $0xf0] sm:$0xff] %v3423_v30  ;;  %v3170_v14 = vand.u32 2147483648, %v7287_v33  ;;  %v3168_v50 = vand.u32 2147483647, %v7287_v33  ;;  %vm7322_vm3 = vmor %vm3149_vm1, %vm3150_vm0  ;;  %vm3164_vm5 = vweird.f32 %v7287_v33 }
 0x30c   : > { %v2593_v51 = vpop.f32.mrf.mxu0  ;;  %3461 = vmatmul.bf16.gmra.mxu1 %v3217_v48  ;;  %3550 = vmatmul.bf16.gmra.mxu2 %v3217_v48  ;;  %v3146_v52 = vsub.f32 1.0, %v3145_v29 }
 0x30d   : > { %v2594_v32 = vadd.f32 %v4948_v60, %v2593_v51  ;;  %3639 = vmatmul.bf16.gmra.mxu3 %v3217_v48  ;;  %v3171_v25 = vor.u32 1.1754944e-38, %v3170_v14  ;;  %vm3169_vm7 = vcmp.eq.f32.partialorder %v3168_v50, 8.507059e+37 }
 0x30e   : > { %v3511_v1 = vpop.f32.mrf.mxu2  ;;  %v3147_v12 = vmul.f32 %v7290_v53, %v3146_v52 }
 0x30f   : > { %v4935_v39 = vpop.eup %4934  ;;  %v4299_v6 = vmul.f32 -1.442695, %v2594_v32  ;;  %v3512_v8 = vadd.f32 %v3511_v1, %v7064_v19  ;;  %v3600_v3 = vpop.f32.mrf.mxu3 }
 0x310   : > { %v4937_v0 = vpop.eup %4936  ;;  %v7306_v54 = vadd.f32 1.0, %v4935_v39  ;;  %v3601_v18 = vadd.f32 %v3600_v3, %v7069_v24  ;;  %v3424_v56 = vpop.f32.mrf.mxu1  ;;  %v3148_v4 = vadd.f32 %v7290_v53, %v3147_v12 }
 0x311   : > { %v3160_v63 = vmul.f32 %v4937_v0, %v7287_v33  ;;  %4938 = vpow2.f32 %v4299_v6  ;;  %3686 = vst [vmem:[%s7056_s15 + $0xf8] sm:$0xff] %v3512_v8  ;;  %v3425_v16 = vadd.f32 %v3424_v56, %v7043_v40  ;;  %vm3165_vm2 = vweird.f32 %v4937_v0 }
 0x312   : > { %4940 = vrcp.f32 %v7306_v54  ;;  %3687 = vst [vmem:[%s7056_s15 + $0x100] sm:$0xff] %v3601_v18  ;;  %v3152_v17 = vsel %vm7322_vm3, %v7290_v53, %v3148_v4  ;;  %vm3166_vm6 = vmor %vm3164_vm5, %vm3165_vm2  ;;  %vm3179_vm9 = vweird.f32 %v7306_v54  ;;  %v3185_v53 = vand.u32 2147483648, %v7306_v54 }
 0x313   : > { %3688 = vst [vmem:[%s7056_s15 + $0x108] sm:$0xff] %v3425_v16  ;;  %v3161_v35 = vsub.f32 1.0, %v3160_v63  ;;  %v3157_v2 = vsel %vm7326_vm4, %v3156_v62, %v3152_v17  ;;  %v3183_v21 = vand.u32 2147483647, %v7306_v54 }
 0x314   : > { %v3186_v8 = vor.u32 1.1754944e-38, %v3185_v53 }
 0x315   : > { %v3162_v37 = vmul.f32 %v4937_v0, %v3161_v35  ;;  %vm3184_vm14 = vcmp.eq.f32.partialorder %v3183_v21, 8.507059e+37 }
 0x316   : > { %v3513_v44 = vpop.f32.mrf.mxu2 }
 0x317   : > { %v4939_v13 = vpop.eup %4938  ;;  %v3514_v57 = vadd.f32 %v3513_v44, %v7064_v19  ;;  %v3602_v26 = vpop.f32.mrf.mxu3  ;;  %v3163_v7 = vadd.f32 %v4937_v0, %v3162_v37 }
 0x318   : > { %v7335_v58 = vpop.eup %4940  ;;  %v2723_v11 = vadd.f32 1.0, %v4939_v13  ;;  %v3603_v36 = vadd.f32 %v3602_v26, %v7069_v24  ;;  %v3427_v34 = vpop.f32.mrf.mxu1 }
 0x319   : > { %v3175_v42 = vmul.f32 %v7335_v58, %v7306_v54  ;;  %3689 = vst [vmem:[%s7056_s15 + $0x110] sm:$0xff] %v3514_v57  ;;  %v3428_v27 = vadd.f32 %v3427_v34, %v7043_v40  ;;  %v3167_v5 = vsel %vm3166_vm6, %v4937_v0, %v3163_v7  ;;  %vm3180_vm8 = vweird.f32 %v7335_v58 }
 0x31a   : > { %4942 = vrcp.f32 %v2723_v11  ;;  %3690 = vst [vmem:[%s7056_s15 + $0x118] sm:$0xff] %v3603_v36  ;;  %v3172_v23 = vsel %vm3169_vm7, %v3171_v25, %v3167_v5  ;;  %v3200_v30 = vand.u32 2147483648, %v2723_v11  ;;  %v3198_v29 = vand.u32 2147483647, %v2723_v11  ;;  %vm7359_vm11 = vmor %vm3179_vm9, %vm3180_vm8 }
 0x31b   : > { %3691 = vst [vmem:[%s7056_s15 + $0x120] sm:$0xff] %v3428_v27  ;;  %v3218_v9 = vpack.c.bf16 %v3172_v23, %v3157_v2  ;;  %v3176_v59 = vsub.f32 1.0, %v3175_v42  ;;  %vm3194_vm12 = vweird.f32 %v2723_v11 }
 0x31c   : > { %v3201_v3 = vor.u32 1.1754944e-38, %v3200_v30  ;;  %vm3199_vm15 = vcmp.eq.f32.partialorder %v3198_v29, 8.507059e+37 }
 0x31d   : > { %3466 = vmatmul.bf16.gmra.mxu1 %v3218_v9  ;;  %3555 = vmatmul.bf16.gmra.mxu2 %v3218_v9  ;;  %v3177_v45 = vmul.f32 %v7335_v58, %v3176_v59 }
 0x31e   : > { %3644 = vmatmul.bf16.gmra.mxu3 %v3218_v9  ;;  %v3516_v22 = vpop.f32.mrf.mxu2 }
 0x31f   : > { %v3517_v55 = vadd.f32 %v3516_v22, %v7064_v19  ;;  %v3605_v41 = vpop.f32.mrf.mxu3  ;;  %v3178_v15 = vadd.f32 %v7335_v58, %v3177_v45 }
 0x320   : > { %v4943_v43 = vpop.eup %4942  ;;  %v3606_v28 = vadd.f32 %v3605_v41, %v7069_v24  ;;  %v3429_v46 = vpop.f32.mrf.mxu1 }
 0x321   : > { %v3190_v33 = vmul.f32 %v4943_v43, %v2723_v11  ;;  %3692 = vst [vmem:[%s7056_s15 + $0x128] sm:$0xff] %v3517_v55  ;;  %v3430_v38 = vadd.f32 %v3429_v46, %v7043_v40  ;;  %vm3195_vm10 = vweird.f32 %v4943_v43  ;;  %v3182_v32 = vsel %vm7359_vm11, %v7335_v58, %v3178_v15 }
 0x322   : > { %3693 = vst [vmem:[%s7056_s15 + $0x130] sm:$0xff] %v3606_v28  ;;  %vm3196_vm13 = vmor %vm3194_vm12, %vm3195_vm10  ;;  %v3187_v54 = vsel %vm3184_vm14, %v3186_v8, %v3182_v32 }
 0x323   : > { %3694 = vst [vmem:[%s7056_s15 + $0x138] sm:$0xff] %v3430_v38  ;;  %v3191_v31 = vsub.f32 1.0, %v3190_v33 }
 0x325   : > { %v3192_v49 = vmul.f32 %v4943_v43, %v3191_v31 }
 0x326   : > { %v3518_v48 = vpop.f32.mrf.mxu2 }
 0x327   : > { %v3519_v52 = vadd.f32 %v3518_v48, %v7064_v19  ;;  %v3607_v60 = vpop.f32.mrf.mxu3  ;;  %v3193_v1 = vadd.f32 %v4943_v43, %v3192_v49 }
 0x328   : > { %v3608_v39 = vadd.f32 %v3607_v60, %v7069_v24  ;;  %v3432_v6 = vpop.f32.mrf.mxu1 }
 0x329   : > { %3695 = vst [vmem:[%s7056_s15 + $0x140] sm:$0xff] %v3519_v52  ;;  %v3433_v12 = vadd.f32 %v3432_v6, %v7043_v40  ;;  %v3197_v0 = vsel %vm3196_vm13, %v4943_v43, %v3193_v1 }
 0x32a   : > { %3696 = vst [vmem:[%s7056_s15 + $0x148] sm:$0xff] %v3608_v39  ;;  %v3202_v18 = vsel %vm3199_vm15, %v3201_v3, %v3197_v0 }
 0x32b   : > { %3697 = vst [vmem:[%s7056_s15 + $0x150] sm:$0xff] %v3433_v12  ;;  %v3219_v56 = vpack.c.bf16 %v3202_v18, %v3187_v54 }
 0x32d   : > { %3471 = vmatmul.bf16.gmra.mxu1 %v3219_v56  ;;  %3560 = vmatmul.bf16.gmra.mxu2 %v3219_v56 }
 0x32e   : > { %3649 = vmatmul.bf16.gmra.mxu3 %v3219_v56  ;;  %v3521_v63 = vpop.f32.mrf.mxu2 }
 0x32f   : > { %v3522_v16 = vadd.f32 %v3521_v63, %v7064_v19  ;;  %v3610_v61 = vpop.f32.mrf.mxu3 }
 0x330   : > { %v3611_v4 = vadd.f32 %v3610_v61, %v7069_v24  ;;  %v3434_v35 = vpop.f32.mrf.mxu1 }
 0x331   : > { %3698 = vst [vmem:[%s7056_s15 + $0x158] sm:$0xff] %v3522_v16  ;;  %v3435_v10 = vadd.f32 %v3434_v35, %v7043_v40 }
 0x332   : > { %3699 = vst [vmem:[%s7056_s15 + $0x160] sm:$0xff] %v3611_v4 }
 0x333   : > { %3700 = vst [vmem:[%s7056_s15 + $0x168] sm:$0xff] %v3435_v10 }
 0x336   : > { %v3523_v14 = vpop.f32.mrf.mxu2 }
 0x337   : > { %v3524_v37 = vadd.f32 %v3523_v14, %v7064_v19  ;;  %v3612_v50 = vpop.f32.mrf.mxu3 }
 0x338   : > { %v3613_v44 = vadd.f32 %v3612_v50, %v7069_v24  ;;  %v3437_v47 = vpop.f32.mrf.mxu1 }
 0x339   : > { %3701 = vst [vmem:[%s7056_s15 + $0x170] sm:$0xff] %v3524_v37  ;;  %v3438_v20 = vadd.f32 %v3437_v47, %v7043_v40 }
 0x33a   : > { %3702 = vst [vmem:[%s7056_s15 + $0x178] sm:$0xff] %v3613_v44 }
 0x33b   : > { %3703 = vst [vmem:[%s7056_s15 + $0x180] sm:$0xff] %v3438_v20 }
 0x33e   : > { %v3526_v13 = vpop.f32.mrf.mxu2 }
 0x33f   : > { %v3527_v57 = vadd.f32 %v3526_v13, %v7064_v19  ;;  %v3615_v26 = vpop.f32.mrf.mxu3 }
 0x340   : > { %v3616_v17 = vadd.f32 %v3615_v26, %v7069_v24  ;;  %v3439_v7 = vpop.f32.mrf.mxu1 }
 0x341   : > { %3704 = vst [vmem:[%s7056_s15 + $0x188] sm:$0xff] %v3527_v57  ;;  %v3440_v58 = vadd.f32 %v3439_v7, %v7043_v40 }
 0x342   : > { %3705 = vst [vmem:[%s7056_s15 + $0x190] sm:$0xff] %v3616_v17 }
 0x343   : > { %3706 = vst [vmem:[%s7056_s15 + $0x198] sm:$0xff] %v3440_v58 }
 0x346   : > { %v3528_v11 = vpop.f32.mrf.mxu2 }
 0x347   : > { %v3529_v36 = vadd.f32 %v3528_v11, %v7064_v19  ;;  %v3617_v34 = vpop.f32.mrf.mxu3 }
 0x348   : > { %v3618_v62 = vadd.f32 %v3617_v34, %v7069_v24  ;;  %v3442_v25 = vpop.f32.mrf.mxu1 }
 0x349   : > { %3707 = vst [vmem:[%s7056_s15 + $0x1a0] sm:$0xff] %v3529_v36  ;;  %v3443_v42 = vadd.f32 %v3442_v25, %v7043_v40 }
 0x34a   : > { %3708 = vst [vmem:[%s7056_s15 + $0x1a8] sm:$0xff] %v3618_v62 }
 0x34b   : > { %3709 = vst [vmem:[%s7056_s15 + $0x1b0] sm:$0xff] %v3443_v42 }
 0x34e   : > { %v3531_v27 = vpop.f32.mrf.mxu2 }
 0x34f   : > { %v3532_v5 = vadd.f32 %v3531_v27, %v7064_v19  ;;  %v3620_v2 = vpop.f32.mrf.mxu3 }
 0x350   : > { %v3621_v23 = vadd.f32 %v3620_v2, %v7069_v24  ;;  %v3444_v9 = vpop.f32.mrf.mxu1 }
 0x351   : > { %3710 = vst [vmem:[%s7056_s15 + $0x1b8] sm:$0xff] %v3532_v5  ;;  %v3445_v59 = vadd.f32 %v3444_v9, %v7043_v40 }
 0x352   : > { %3711 = vst [vmem:[%s7056_s15 + $0x1c0] sm:$0xff] %v3621_v23 }
 0x353   : > { %3712 = vst [vmem:[%s7056_s15 + $0x1c8] sm:$0xff] %v3445_v59 }
 0x356   : > { %v3533_v22 = vpop.f32.mrf.mxu2 }
 0x357   : > { %v3534_v55 = vadd.f32 %v3533_v22, %v7064_v19  ;;  %v3622_v41 = vpop.f32.mrf.mxu3 }
 0x358   : > { %v3623_v45 = vadd.f32 %v3622_v41, %v7069_v24  ;;  %v3447_v43 = vpop.f32.mrf.mxu1 }
 0x359   : > { %3713 = vst [vmem:[%s7056_s15 + $0x1d0] sm:$0xff] %v3534_v55  ;;  %v3448_v28 = vadd.f32 %v3447_v43, %v7043_v40 }
 0x35a   : > { %3714 = vst [vmem:[%s7056_s15 + $0x1d8] sm:$0xff] %v3623_v45 }
 0x35b   : > { %3715 = vst [vmem:[%s7056_s15 + $0x1e0] sm:$0xff] %v3448_v28 }
 0x35e   : > { %v3536_v46 = vpop.f32.mrf.mxu2 }
 0x35f   : > { %v3537_v33 = vadd.f32 %v3536_v46, %v7064_v19  ;;  %v3625_v38 = vpop.f32.mrf.mxu3 }
 0x360   : > { %v3626_v15 = vadd.f32 %v3625_v38, %v7069_v24  ;;  %v3449_v31 = vpop.f32.mrf.mxu1 }
 0x361   : > { %3716 = vst [vmem:[%s7056_s15 + $0x1e8] sm:$0xff] %v3537_v33  ;;  %v3450_v53 = vadd.f32 %v3449_v31, %v7043_v40 }
 0x362   : > { %3717 = vst [vmem:[%s7056_s15 + $0x1f0] sm:$0xff] %v3626_v15 }
 0x363   : > { %3718 = vst [vmem:[%s7056_s15 + $0x1f8] sm:$0xff] %v3450_v53 }
 0x366   : > { %v3538_v30 = vpop.f32.mrf.mxu2 }
 0x367   : > { %v3539_v21 = vadd.f32 %v3538_v30, %v7064_v19  ;;  %v3627_v49 = vpop.f32.mrf.mxu3 }
 0x368   : > { %v3628_v29 = vadd.f32 %v3627_v49, %v7069_v24  ;;  %v3452_v48 = vpop.f32.mrf.mxu1 }
 0x369   : > { %3719 = vst [vmem:[%s7056_s15 + $0x200] sm:$0xff] %v3539_v21  ;;  %v3453_v51 = vadd.f32 %v3452_v48, %v7043_v40 }
 0x36a   : > { %3720 = vst [vmem:[%s7056_s15 + $0x208] sm:$0xff] %v3628_v29 }
 0x36b   : > { %3721 = vst [vmem:[%s7056_s15 + $0x210] sm:$0xff] %v3453_v51 }
 0x36e   : > { %v3541_v52 = vpop.f32.mrf.mxu2 }
 0x36f   : > { %v3542_v60 = vadd.f32 %v3541_v52, %v7064_v19  ;;  %v3630_v32 = vpop.f32.mrf.mxu3 }
 0x370   : > { %v3631_v1 = vadd.f32 %v3630_v32, %v7069_v24  ;;  %v3454_v39 = vpop.f32.mrf.mxu1 }
 0x371   : > { %3722 = vst [vmem:[%s7056_s15 + $0x218] sm:$0xff] %v3542_v60  ;;  %v3455_v6 = vadd.f32 %v3454_v39, %v7043_v40 }
 0x372   : > { %3723 = vst [vmem:[%s7056_s15 + $0x220] sm:$0xff] %v3631_v1 }
 0x373   : > { %3724 = vst [vmem:[%s7056_s15 + $0x228] sm:$0xff] %v3455_v6 }
 0x376   : > { %v3543_v8 = vpop.f32.mrf.mxu2 }
 0x377   : > { %v3544_v3 = vadd.f32 %v3543_v8, %v7064_v19  ;;  %v3632_v12 = vpop.f32.mrf.mxu3 }
 0x378   : > { %v3633_v0 = vadd.f32 %v3632_v12, %v7069_v24  ;;  %v3457_v54 = vpop.f32.mrf.mxu1 }
 0x379   : > { %3725 = vst [vmem:[%s7056_s15 + $0x230] sm:$0xff] %v3544_v3  ;;  %v3458_v18 = vadd.f32 %v3457_v54, %v7043_v40 }
 0x37a   : > { %3726 = vst [vmem:[%s7056_s15 + $0x238] sm:$0xff] %v3633_v0 }
 0x37b   : > { %3727 = vst [vmem:[%s7056_s15 + $0x240] sm:$0xff] %v3458_v18 }
 0x37e   : > { %v3546_v56 = vpop.f32.mrf.mxu2 }
 0x37f   : > { %v3547_v63 = vadd.f32 %v3546_v56, %v7064_v19  ;;  %v3635_v16 = vpop.f32.mrf.mxu3 }
 0x380   : > { %v3636_v61 = vadd.f32 %v3635_v16, %v7069_v24  ;;  %v3459_v4 = vpop.f32.mrf.mxu1 }
 0x381   : > { %3728 = vst [vmem:[%s7056_s15 + $0x248] sm:$0xff] %v3547_v63  ;;  %v3460_v35 = vadd.f32 %v3459_v4, %v7043_v40 }
 0x382   : > { %3729 = vst [vmem:[%s7056_s15 + $0x250] sm:$0xff] %v3636_v61 }
 0x383   : > { %3730 = vst [vmem:[%s7056_s15 + $0x258] sm:$0xff] %v3460_v35 }
 0x386   : > { %v3548_v10 = vpop.f32.mrf.mxu2 }
 0x387   : > { %v3549_v14 = vadd.f32 %v3548_v10, %v7064_v19  ;;  %v3637_v37 = vpop.f32.mrf.mxu3 }
 0x388   : > { %v3638_v50 = vadd.f32 %v3637_v37, %v7069_v24 }
 0x389   : > { %3731 = vst [vmem:[%s7056_s15 + $0x260] sm:$0xff] %v3549_v14  ;;  %v3462_v44 = vpop.f32.mrf.mxu1 }
 0x38a   : > { %3732 = vst [vmem:[%s7056_s15 + $0x268] sm:$0xff] %v3638_v50  ;;  %v3463_v47 = vadd.f32 %v3462_v44, %v7043_v40 }
 0x38c   : > { %3733 = vst [vmem:[%s7056_s15 + $0x270] sm:$0xff] %v3463_v47 }
 0x38f   : > { %v3551_v20 = vpop.f32.mrf.mxu2 }
 0x390   : > { %v3552_v13 = vadd.f32 %v3551_v20, %v7064_v19  ;;  %v3640_v57 = vpop.f32.mrf.mxu3 }
 0x391   : > { %v3641_v26 = vadd.f32 %v3640_v57, %v7069_v24  ;;  %v3464_v17 = vpop.f32.mrf.mxu1 }
 0x392   : > { %3734 = vst [vmem:[%s7056_s15 + $0x278] sm:$0xff] %v3552_v13  ;;  %v3465_v7 = vadd.f32 %v3464_v17, %v7043_v40 }
 0x393   : > { %3735 = vst [vmem:[%s7056_s15 + $0x280] sm:$0xff] %v3641_v26 }
 0x394   : > { %3736 = vst [vmem:[%s7056_s15 + $0x288] sm:$0xff] %v3465_v7 }
 0x397   : > { %v3553_v58 = vpop.f32.mrf.mxu2 }
 0x398   : > { %v3554_v11 = vadd.f32 %v3553_v58, %v7064_v19  ;;  %v3642_v36 = vpop.f32.mrf.mxu3 }
 0x399   : > { %v3643_v34 = vadd.f32 %v3642_v36, %v7069_v24 }
 0x39a   : > { %3737 = vst [vmem:[%s7056_s15 + $0x290] sm:$0xff] %v3554_v11  ;;  %v3467_v62 = vpop.f32.mrf.mxu1 }
 0x39b   : > { %3738 = vst [vmem:[%s7056_s15 + $0x298] sm:$0xff] %v3643_v34  ;;  %v3468_v25 = vadd.f32 %v3467_v62, %v7043_v40 }
 0x39d   : > { %3739 = vst [vmem:[%s7056_s15 + $0x2a0] sm:$0xff] %v3468_v25 }
 0x3a0   : > { %v3556_v42 = vpop.f32.mrf.mxu2 }
 0x3a1   : > { %v3557_v27 = vadd.f32 %v3556_v42, %v7064_v19  ;;  %v3645_v5 = vpop.f32.mrf.mxu3 }
 0x3a2   : > { %v3646_v2 = vadd.f32 %v3645_v5, %v7069_v24  ;;  %v3469_v23 = vpop.f32.mrf.mxu1 }
 0x3a3   : > { %3740 = vst [vmem:[%s7056_s15 + $0x2a8] sm:$0xff] %v3557_v27  ;;  %v3470_v9 = vadd.f32 %v3469_v23, %v7043_v40 }
 0x3a4   : > { %3741 = vst [vmem:[%s7056_s15 + $0x2b0] sm:$0xff] %v3646_v2 }
 0x3a5   : > { %3742 = vst [vmem:[%s7056_s15 + $0x2b8] sm:$0xff] %v3470_v9 }
 0x3a8   : > { %v3558_v59 = vpop.f32.mrf.mxu2 }
 0x3a9   : > { %v3559_v22 = vadd.f32 %v3558_v59, %v7064_v19  ;;  %v3647_v55 = vpop.f32.mrf.mxu3 }
 0x3aa   : > { %v3648_v41 = vadd.f32 %v3647_v55, %v7069_v24  ;;  %v3472_v45 = vpop.f32.mrf.mxu1 }
 0x3ab   : > { %3743 = vst [vmem:[%s7056_s15 + $0x2c0] sm:$0xff] %v3559_v22  ;;  %v3473_v43 = vadd.f32 %v3472_v45, %v7043_v40 }
 0x3ac   : > { %3744 = vst [vmem:[%s7056_s15 + $0x2c8] sm:$0xff] %v3648_v41 }
 0x3ad   : > { %3745 = vst [vmem:[%s7056_s15 + $0x2d0] sm:$0xff] %v3473_v43 }
 0x3b0   : > { %v3561_v28 = vpop.f32.mrf.mxu2 }
 0x3b1   : > { %v3562_v46 = vadd.f32 %v3561_v28, %v7064_v19  ;;  %v3650_v33 = vpop.f32.mrf.mxu3 }
 0x3b2   : > { %v3651_v38 = vadd.f32 %v3650_v33, %v7069_v24  ;;  %v3474_v15 = vpop.f32.mrf.mxu1 }
 0x3b3   : > { %3746 = vst [vmem:[%s7056_s15 + $0x2d8] sm:$0xff] %v3562_v46  ;;  %v3475_v31 = vadd.f32 %v3474_v15, %v7043_v40 }
 0x3b4   : > { %3747 = vst [vmem:[%s7056_s15 + $0x2e0] sm:$0xff] %v3651_v38 }
 0x3b5   : > { %3748 = vst [vmem:[%s7056_s15 + $0x2e8] sm:$0xff] %v3475_v31 }
 0x3b8   : > { %v3563_v53 = vpop.f32.mrf.mxu2 }
 0x3b9   : > { %v3564_v30 = vadd.f32 %v3563_v53, %v7064_v19  ;;  %v3652_v21 = vpop.f32.mrf.mxu3 }
 0x3ba   : > { %v3653_v49 = vadd.f32 %v3652_v21, %v7069_v24 }
 0x3bb   : > { %3749 = vst [vmem:[%s7056_s15 + $0x2f0] sm:$0xff] %v3564_v30 }
 0x3bc   : > { %3750 = vst [vmem:[%s7056_s15 + $0x2f8] sm:$0xff] %v3653_v49 }
 0x3bd   : > { %4976 = shalt.err (!%p4973_p3)
}
 0x3be   : > { %s5013_s13 = smov 384   ;;  %s5014_s15 = smov 24  }
 0x3bf   : > { %4516 = dma.vmem_to_hbm [thread:$0]  (%p5088_p5), %s3766_s25, 12288, %s3768_s29, %s3752_s12, %s5013_s13, %s5013_s13, %s5014_s15  }
 0x3c0 PF: > { %p4522_p4 = scmp.ge.s32.totalorder %s5011_s24, 2  ;;  %s3782_s19 = sand.u32 1, %s4999_s21  }
 0x3c1   : > { %s3783_s20 = scalar_lea.sflag [#allocation3], %s3782_s19 }
 0x3c2   : > { %p4519_p7 = pnand %p4522_p4, %p5092_p6 }
 0x3c4   : > { %p4520_p8 = pneg %p4519_p7 }
 0x3c6   : > { %4994 = dma.done.wait (%p4520_p8), %s3783_s20, 12288  }
 0x3c7   : > { %4996 = vsyncadd (%p4520_p8), %s3783_s20, 4294955008  ;;  %p16_p9 = scmp.ge.s32.totalorder %s5075_s27, 4   ;;  %s7681_s21 = smov %s5003_s22 }
 0x3c8   : > { %s7682_s22 = smov %s5007_s23  ;;  %s7683_s23 = smov %s5086_s30 }
 0x3c9   : > { %s7684_s24 = smov %s5075_s27  ;;  %18 = sbr.rel (!%p16_p9) target bundleno = 3 (0x3), region = 80 }
 0x3ce   :  { %3789 = vsyncpa [#allocation3], 1 }
 0x3cf   :  { %3791 = vsyncpa [#allocation3 + $0x1], 1 }

</bundles_post_ra>
